<compile_context>
chip_gen: v5e
topology: v5e:2x2
jax: 0.10.0
libtpu: 0.0.40
codegen_flags: <defaults>
</compile_context>

<pallas_src>
import functools

import jax
import jax.numpy as jnp
from jax.experimental import pallas as pl
from jax.experimental.pallas import tpu as pltpu

FEAT_DIM = 1792      # EfficientNet-b4 feature channels
HIDDEN_DIM = 64
FC1_DIM = 256
NUM_CLASSES = 10     # `numclasses`
LANE = 128           # lane-dense padded width for hidden / logits outputs


def _cnn_expert1_kernel(feat_ref,
                        w_e2h_ref, b_e2h_ref,
                        w12_ref, b12_ref,
                        w3_ref, b3_ref,
                        hidden_ref, logits_ref,
                        acc_ref, *, inv_hw):
    hw_idx = pl.program_id(1)

    @pl.when(hw_idx == 0)
    def _init():
        acc_ref[...] = jnp.zeros_like(acc_ref)

    # Elementwise (per-lane) accumulation: VALU + vld/vst only, fully hidden
    # under the feature-tile DMA.  The cross-lane reduce is deferred to the
    # finalize step so the XLU is touched once per batch tile instead of once
    # per HW tile.  Cast-up keeps accumulation in f32 even when features are
    # streamed as bf16 (v5e has no bf16 VPU).
    acc_ref[...] += feat_ref[...].astype(jnp.float32)

    @pl.when(hw_idx == pl.num_programs(1) - 1)
    def _finalize():
        # Single cross-lane reduce per batch tile, then the adaptive-avg-pool
        # scale (_avg_pooling to 1x1 + flatten(start_dim=1)).
        pooled = jnp.sum(acc_ref[...], axis=-1) * inv_hw            # (b_tile, 1792)

        # e2h: Linear(1792, 64), zero-padded to 128 output lanes (hidden_state).
        hidden = jnp.dot(pooled, w_e2h_ref[...],
                         preferred_element_type=jnp.float32) + b_e2h_ref[...]
        hidden_ref[0] = hidden                                       # (b_tile, 128)

        # fc: Linear(64,256)+Linear(256,64) folded into one matmul (the padded
        # hidden lanes hit zero rows of w12), then ReLU, then Linear(64, numclasses)
        # zero-padded to 128 lanes.
        h = jnp.dot(hidden, w12_ref[...],
                    preferred_element_type=jnp.float32) + b12_ref[...]
        h = jnp.maximum(h, 0.0)
        logits_ref[0] = jnp.dot(h, w3_ref[...],
                                preferred_element_type=jnp.float32) + b3_ref[...]


def _vmem_capacity_bytes():
    try:
        return int(pltpu.get_tpu_info().vmem_capacity_bytes)
    except Exception:
        return 64 << 20   # conservative fallback (v7x per-TensorCore VMEM)


def _pick_b_tile(batch):
    if batch <= 1:
        return 1
    # >=2 programs on the parallel batch axis (keeps both v7x TensorCores busy),
    # capped at 8 so the per-step feature block stays modest.
    cap = max(1, min(8, batch // 2))
    for cand in range(cap, 0, -1):
        if batch % cand == 0:
            return cand
    return 1


def _pick_hw_tile(hw_total, b_tile, feat_itemsize, vmem_budget):
    # VMEM cost per unit of hw_tile: double-buffered feature block + f32 per-lane acc.
    per_hw_bytes = b_tile * FEAT_DIM * (2 * feat_itemsize + 4)
    max_hw = max(128, vmem_budget // per_hw_bytes)
    if hw_total <= max_hw:
        return hw_total                                 # full spatial extent
    tile = (max_hw // 128) * 128
    while tile >= 128:                                  # largest 128-multiple divisor
        if hw_total % tile == 0:
            return tile
        tile -= 128
    for tile in range(int(max_hw), 0, -1):              # fallback: any divisor that fits
        if hw_total % tile == 0:
            return tile
    return hw_total


def cnn_expert1_forward(features_nchw, params, *, b_tile=None, hw_tile=None):
    """features_nchw: (B, 1792, Hf, Wf) f32/bf16 backbone output (NCHW, like torch)."""
    B, C, Hf, Wf = features_nchw.shape
    assert C == FEAT_DIM
    HW = Hf * Wf

    # Contiguous merge of H,W (no transpose): the feature map is read from HBM
    # exactly once, in whatever dtype the backbone produced (stream bf16 as-is;
    # no standalone f32->bf16 cast pass is added).
    feats = features_nchw.reshape(B, C, HW)
    itemsize = feats.dtype.itemsize

    vmem_cap = _vmem_capacity_bytes()
    if b_tile is None:
        b_tile = _pick_b_tile(B)
    assert B % b_tile == 0
    if hw_tile is None:
        # Keep double-buffered feature blocks + the per-lane accumulator within
        # ~70% of this generation's VMEM, minus ~2 MiB for weights/outputs.
        tile_budget = max(8 << 20, int(0.7 * vmem_cap) - (2 << 20))
        hw_tile = _pick_hw_tile(HW, b_tile, itemsize, tile_budget)
    assert HW % hw_tile == 0

    # Fold the activation-free Linear pair: 64 -> 256 -> 64  ==  one 64x64 matmul.
    w12 = params["w1"] @ params["w2"]                      # (64, 64)
    b12 = params["b1"] @ params["w2"] + params["b2"]       # (1, 64)

    # Lane-dense (128-wide) padded weights so both outputs use unmasked stores.
    w_e2h_p = jnp.pad(params["w_e2h"], ((0, 0), (0, LANE - HIDDEN_DIM)))   # (1792,128)
    b_e2h_p = jnp.pad(params["b_e2h"], ((0, 0), (0, LANE - HIDDEN_DIM)))   # (1,128)
    w12_p = jnp.pad(w12, ((0, LANE - HIDDEN_DIM), (0, 0)))                 # (128,64)
    w3_p = jnp.pad(params["w3"], ((0, 0), (0, LANE - NUM_CLASSES)))        # (64,128)
    b3_p = jnp.pad(params["b3"], ((0, 0), (0, LANE - NUM_CLASSES)))        # (1,128)

    grid = (B // b_tile, HW // hw_tile)

    feat_block = b_tile * C * hw_tile * itemsize
    acc_block = b_tile * C * hw_tile * 4
    weights_bytes = 4 * (w_e2h_p.size + b_e2h_p.size + w12_p.size + b12.size
                         + w3_p.size + b3_p.size)
    out_bytes = 2 * 2 * b_tile * LANE * 4
    needed = 2 * feat_block + acc_block + 2 * weights_bytes + out_bytes
    vmem_limit = int(min(int(0.9 * vmem_cap), max(32 << 20, needed + (8 << 20))))

    flops = (B * C * HW
             + 2 * B * (C * LANE + LANE * HIDDEN_DIM + HIDDEN_DIM * LANE))
    bytes_accessed = feats.size * itemsize + weights_bytes + 2 * B * LANE * 4

    kernel = functools.partial(_cnn_expert1_kernel, inv_hw=1.0 / float(HW))

    hidden_p, logits_p = pl.pallas_call(
        kernel,
        out_shape=(jax.ShapeDtypeStruct((B // b_tile, b_tile, LANE), jnp.float32),
                   jax.ShapeDtypeStruct((B // b_tile, b_tile, LANE), jnp.float32)),
        grid=grid,
        in_specs=[
            pl.BlockSpec((b_tile, C, hw_tile), lambda b, h: (b, 0, h)),
            pl.BlockSpec((FEAT_DIM, LANE), lambda b, h: (0, 0)),
            pl.BlockSpec((1, LANE), lambda b, h: (0, 0)),
            pl.BlockSpec((LANE, HIDDEN_DIM), lambda b, h: (0, 0)),
            pl.BlockSpec((1, HIDDEN_DIM), lambda b, h: (0, 0)),
            pl.BlockSpec((HIDDEN_DIM, LANE), lambda b, h: (0, 0)),
            pl.BlockSpec((1, LANE), lambda b, h: (0, 0)),
        ],
        out_specs=(
            pl.BlockSpec((1, b_tile, LANE), lambda b, h: (b, 0, 0)),
            pl.BlockSpec((1, b_tile, LANE), lambda b, h: (b, 0, 0)),
        ),
        scratch_shapes=[pltpu.VMEM((b_tile, FEAT_DIM, hw_tile), jnp.float32)],
        compiler_params=pltpu.CompilerParams(
            dimension_semantics=("parallel", "arbitrary"),
            vmem_limit_bytes=vmem_limit,
        ),
        cost_estimate=pl.CostEstimate(
            flops=int(flops), transcendentals=0,
            bytes_accessed=int(bytes_accessed)),
    )(feats, w_e2h_p, b_e2h_p, w12_p, b12, w3_p, b3_p)

    hidden = hidden_p.reshape(B, LANE)[:, :HIDDEN_DIM]
    logits = logits_p.reshape(B, LANE)[:, :NUM_CLASSES]
    return hidden, logits


def init_params(key):
    ks = jax.random.split(key, 8)

    def lin(kw, fan_in, fan_out):
        # (in, out) layout (x @ W + b  ==  torch x @ W.T + b); small-scale init.
        return (jax.random.normal(kw, (fan_in, fan_out), jnp.float32)
                * (1.0 / jnp.sqrt(fan_in)))

    return {
        "w_e2h": lin(ks[0], FEAT_DIM, HIDDEN_DIM),
        "b_e2h": jax.random.normal(ks[1], (1, HIDDEN_DIM), jnp.float32) * 0.01,
        "w1":    lin(ks[2], HIDDEN_DIM, FC1_DIM),
        "b1":    jax.random.normal(ks[3], (1, FC1_DIM), jnp.float32) * 0.01,
        "w2":    lin(ks[4], FC1_DIM, HIDDEN_DIM),
        "b2":    jax.random.normal(ks[5], (1, HIDDEN_DIM), jnp.float32) * 0.01,
        "w3":    lin(ks[6], HIDDEN_DIM, NUM_CLASSES),
        "b3":    jax.random.normal(ks[7], (1, NUM_CLASSES), jnp.float32) * 0.01,
    }


def _reference_forward(features_nchw, p):
    pooled = jnp.mean(features_nchw.astype(jnp.float32), axis=(2, 3))  # (B, 1792)
    hidden = pooled @ p["w_e2h"] + p["b_e2h"]
    h = hidden @ p["w1"] + p["b1"]
    h = h @ p["w2"] + p["b2"]
    h = jnp.maximum(h, 0.0)
    logits = h @ p["w3"] + p["b3"]
    return hidden, logits


if __name__ == "__main__":
    key = jax.random.PRNGKey(0)
    k_feat, k_param = jax.random.split(key)

    # Small synthetic EfficientNet-b4 feature map: B=2, C=1792, 16x16 spatial.
    B, Hf, Wf = 2, 16, 16
    features = jax.random.normal(k_feat, (B, FEAT_DIM, Hf, Wf), jnp.float32)
    params = init_params(k_param)

    ref_hidden, ref_logits = _reference_forward(features, params)

    # 1) Default tiling (VMEM/generation aware; full spatial extent here).
    hidden, logits = cnn_expert1_forward(features, params)
    jax.block_until_ready((hidden, logits))
    assert hidden.shape == (B, HIDDEN_DIM) and logits.shape == (B, NUM_CLASSES)
    assert jnp.allclose(hidden, ref_hidden, atol=1e-4, rtol=1e-4)
    assert jnp.allclose(logits, ref_logits, atol=1e-4, rtol=1e-4)

    # 2) hw_tile=128 forces a 2-step spatial reduction to exercise the
    #    multi-step elementwise accumulator path.
    hidden2, logits2 = cnn_expert1_forward(features, params, hw_tile=128)
    jax.block_until_ready((hidden2, logits2))
    assert jnp.allclose(hidden2, ref_hidden, atol=1e-4, rtol=1e-4)
    assert jnp.allclose(logits2, ref_logits, atol=1e-4, rtol=1e-4)

    print("KERNEL_OK")
</pallas_src>

<mosaic_0001>
module attributes {stable_mosaic.version = 11 : i64} {
  func.func @_cnn_expert1_kernel(%arg0: i32, %arg1: i32, %arg2: memref<1x1792x256xf32, #tpu.memory_space<vmem>>, %arg3: memref<1792x128xf32, #tpu.memory_space<vmem>>, %arg4: memref<1x128xf32, #tpu.memory_space<vmem>>, %arg5: memref<128x64xf32, #tpu.memory_space<vmem>>, %arg6: memref<1x64xf32, #tpu.memory_space<vmem>>, %arg7: memref<64x128xf32, #tpu.memory_space<vmem>>, %arg8: memref<1x128xf32, #tpu.memory_space<vmem>>, %arg9: memref<1x1x128xf32, #tpu.memory_space<vmem>>, %arg10: memref<1x1x128xf32, #tpu.memory_space<vmem>>, %arg11: memref<1x1792x256xf32, #tpu.memory_space<vmem>>) attributes {dimension_semantics = [#tpu.dimension_semantics<parallel>, #tpu.dimension_semantics<arbitrary>], iteration_bounds = array<i64: 2, 1>, scalar_prefetch = 0 : i64, scratch_operands = 1 : i64, tpu.core_type = #tpu.core_type<tc>, window_params = [{transform_indices = @transform_0, window_bounds = array<i64: 1, 1792, 256>}, {pipeline_mode = #tpu.pipeline_mode<synchronous>, transform_indices = @transform_1, window_bounds = array<i64: 1792, 128>}, {pipeline_mode = #tpu.pipeline_mode<synchronous>, transform_indices = @transform_2, window_bounds = array<i64: 1, 128>}, {pipeline_mode = #tpu.pipeline_mode<synchronous>, transform_indices = @transform_3, window_bounds = array<i64: 128, 64>}, {pipeline_mode = #tpu.pipeline_mode<synchronous>, transform_indices = @transform_4, window_bounds = array<i64: 1, 64>}, {pipeline_mode = #tpu.pipeline_mode<synchronous>, transform_indices = @transform_5, window_bounds = array<i64: 64, 128>}, {pipeline_mode = #tpu.pipeline_mode<synchronous>, transform_indices = @transform_6, window_bounds = array<i64: 1, 128>}, {transform_indices = @transform_7, window_bounds = array<i64: 1, 1, 128>}, {transform_indices = @transform_8, window_bounds = array<i64: 1, 1, 128>}]} {
    %c0_i32 = arith.constant 0 : i32
    %0 = arith.cmpi eq, %arg1, %c0_i32 : i32
    %1 = arith.extui %0 : i1 to i32
    %c0_i32_0 = arith.constant 0 : i32
    %2 = arith.cmpi ne, %1, %c0_i32_0 : i32
    scf.if %2 {
      %cst = arith.constant 0.000000e+00 : f32
      %10 = vector.broadcast %cst : f32 to vector<1x1792x256xf32>
      %c0_11 = arith.constant 0 : index
      %c0_12 = arith.constant 0 : index
      %c0_13 = arith.constant 0 : index
      %11 = vector.load %arg11[%c0_11, %c0_12, %c0_13] : memref<1x1792x256xf32, #tpu.memory_space<vmem>>, vector<1x1792x256xf32>
      tpu.vector_store %arg11[%c0_11, %c0_12, %c0_13], %10 {strides = array<i32>} : memref<1x1792x256xf32, #tpu.memory_space<vmem>>, vector<1x1792x256xf32>,
    } else {
    }
    %c0 = arith.constant 0 : index
    %c0_1 = arith.constant 0 : index
    %c0_2 = arith.constant 0 : index
    %3 = vector.load %arg11[%c0, %c0_1, %c0_2] : memref<1x1792x256xf32, #tpu.memory_space<vmem>>, vector<1x1792x256xf32>
    %c0_3 = arith.constant 0 : index
    %c0_4 = arith.constant 0 : index
    %c0_5 = arith.constant 0 : index
    %4 = vector.load %arg2[%c0_3, %c0_4, %c0_5] : memref<1x1792x256xf32, #tpu.memory_space<vmem>>, vector<1x1792x256xf32>
    %5 = arith.addf %3, %4 : vector<1x1792x256xf32>
    %c0_6 = arith.constant 0 : index
    %c0_7 = arith.constant 0 : index
    %c0_8 = arith.constant 0 : index
    %6 = vector.load %arg11[%c0_6, %c0_7, %c0_8] : memref<1x1792x256xf32, #tpu.memory_space<vmem>>, vector<1x1792x256xf32>
    tpu.vector_store %arg11[%c0_6, %c0_7, %c0_8], %5 {strides = array<i32>} : memref<1x1792x256xf32, #tpu.memory_space<vmem>>, vector<1x1792x256xf32>,
    %c0_i32_9 = arith.constant 0 : i32
    %7 = arith.cmpi eq, %arg1, %c0_i32_9 : i32
    %8 = arith.extui %7 : i1 to i32
    %c0_i32_10 = arith.constant 0 : i32
    %9 = arith.cmpi ne, %8, %c0_i32_10 : i32
    scf.if %9 {
      %c0_11 = arith.constant 0 : index
      %c0_12 = arith.constant 0 : index
      %c0_13 = arith.constant 0 : index
      %10 = vector.load %arg11[%c0_11, %c0_12, %c0_13] : memref<1x1792x256xf32, #tpu.memory_space<vmem>>, vector<1x1792x256xf32>
      %cst = arith.constant dense<0.000000e+00> : vector<1x1792xf32>
      %11 = vector.multi_reduction <add>, %10, %cst [2] : vector<1x1792x256xf32> to vector<1x1792xf32>
      %cst_14 = arith.constant 3.906250e-03 : f32
      %12 = vector.broadcast %cst_14 : f32 to vector<1x1792xf32>
      %13 = arith.mulf %11, %12 : vector<1x1792xf32>
      %c0_15 = arith.constant 0 : index
      %c0_16 = arith.constant 0 : index
      %14 = vector.load %arg3[%c0_15, %c0_16] : memref<1792x128xf32, #tpu.memory_space<vmem>>, vector<1792x128xf32>
      %cst_17 = arith.constant dense<0.000000e+00> : vector<1x128xf32>
      %15 = tpu.matmul %13, %14, %cst_17 {dimension_numbers = #tpu.dot_dimension_numbers<[1], [0], [0], [1], [0, 0, 1, 1], [], []>} : vector<1x1792xf32>, vector<1792x128xf32>, vector<1x128xf32> -> vector<1x128xf32>
      %c0_18 = arith.constant 0 : index
      %c0_19 = arith.constant 0 : index
      %16 = vector.load %arg4[%c0_18, %c0_19] : memref<1x128xf32, #tpu.memory_space<vmem>>, vector<1x128xf32>
      %17 = arith.addf %15, %16 : vector<1x128xf32>
      %c0_20 = arith.constant 0 : index
      %c0_21 = arith.constant 0 : index
      %c0_22 = arith.constant 0 : index
      %18 = vector.load %arg9[%c0_20, %c0_21, %c0_22] : memref<1x1x128xf32, #tpu.memory_space<vmem>>, vector<1x1x128xf32>
      %19 = vector.shape_cast %18 : vector<1x1x128xf32> to vector<1x128xf32>
      %20 = vector.shape_cast %17 : vector<1x128xf32> to vector<1x1x128xf32>
      tpu.vector_store %arg9[%c0_20, %c0_21, %c0_22], %20 {strides = array<i32>} : memref<1x1x128xf32, #tpu.memory_space<vmem>>, vector<1x1x128xf32>,
      %c0_23 = arith.constant 0 : index
      %c0_24 = arith.constant 0 : index
      %21 = vector.load %arg5[%c0_23, %c0_24] : memref<128x64xf32, #tpu.memory_space<vmem>>, vector<128x64xf32>
      %cst_25 = arith.constant dense<0.000000e+00> : vector<1x64xf32>
      %22 = tpu.matmul %17, %21, %cst_25 {dimension_numbers = #tpu.dot_dimension_numbers<[1], [0], [0], [1], [0, 0, 1, 1], [], []>} : vector<1x128xf32>, vector<128x64xf32>, vector<1x64xf32> -> vector<1x64xf32>
      %c0_26 = arith.constant 0 : index
      %c0_27 = arith.constant 0 : index
      %23 = vector.load %arg6[%c0_26, %c0_27] : memref<1x64xf32, #tpu.memory_space<vmem>>, vector<1x64xf32>
      %24 = arith.addf %22, %23 : vector<1x64xf32>
      %cst_28 = arith.constant 0.000000e+00 : f32
      %25 = vector.broadcast %cst_28 : f32 to vector<1x64xf32>
      %26 = arith.maximumf %24, %25 : vector<1x64xf32>
      %c0_29 = arith.constant 0 : index
      %c0_30 = arith.constant 0 : index
      %27 = vector.load %arg7[%c0_29, %c0_30] : memref<64x128xf32, #tpu.memory_space<vmem>>, vector<64x128xf32>
      %cst_31 = arith.constant dense<0.000000e+00> : vector<1x128xf32>
      %28 = tpu.matmul %26, %27, %cst_31 {dimension_numbers = #tpu.dot_dimension_numbers<[1], [0], [0], [1], [0, 0, 1, 1], [], []>} : vector<1x64xf32>, vector<64x128xf32>, vector<1x128xf32> -> vector<1x128xf32>
      %c0_32 = arith.constant 0 : index
      %c0_33 = arith.constant 0 : index
      %29 = vector.load %arg8[%c0_32, %c0_33] : memref<1x128xf32, #tpu.memory_space<vmem>>, vector<1x128xf32>
      %30 = arith.addf %28, %29 : vector<1x128xf32>
      %c0_34 = arith.constant 0 : index
      %c0_35 = arith.constant 0 : index
      %c0_36 = arith.constant 0 : index
      %31 = vector.load %arg10[%c0_34, %c0_35, %c0_36] : memref<1x1x128xf32, #tpu.memory_space<vmem>>, vector<1x1x128xf32>
      %32 = vector.shape_cast %31 : vector<1x1x128xf32> to vector<1x128xf32>
      %33 = vector.shape_cast %30 : vector<1x128xf32> to vector<1x1x128xf32>
      tpu.vector_store %arg10[%c0_34, %c0_35, %c0_36], %33 {strides = array<i32>} : memref<1x1x128xf32, #tpu.memory_space<vmem>>, vector<1x1x128xf32>,
    } else {
    }
    return
  }
  func.func @transform_0(%arg0: i32, %arg1: i32) -> (i32, i32, i32) {
    %c0_i32 = arith.constant 0 : i32
    %c0_i32_0 = arith.constant 0 : i32
    return %arg0, %c0_i32, %arg1 : i32, i32, i32
  }
  func.func @transform_1(%arg0: i32, %arg1: i32) -> (i32, i32) {
    %c0_i32 = arith.constant 0 : i32
    %c0_i32_0 = arith.constant 0 : i32
    %c0_i32_1 = arith.constant 0 : i32
    return %c0_i32, %c0_i32_0 : i32, i32
  }
  func.func @transform_2(%arg0: i32, %arg1: i32) -> (i32, i32) {
    %c0_i32 = arith.constant 0 : i32
    %c0_i32_0 = arith.constant 0 : i32
    %c0_i32_1 = arith.constant 0 : i32
    return %c0_i32, %c0_i32_0 : i32, i32
  }
  func.func @transform_3(%arg0: i32, %arg1: i32) -> (i32, i32) {
    %c0_i32 = arith.constant 0 : i32
    %c0_i32_0 = arith.constant 0 : i32
    %c0_i32_1 = arith.constant 0 : i32
    return %c0_i32, %c0_i32_0 : i32, i32
  }
  func.func @transform_4(%arg0: i32, %arg1: i32) -> (i32, i32) {
    %c0_i32 = arith.constant 0 : i32
    %c0_i32_0 = arith.constant 0 : i32
    %c0_i32_1 = arith.constant 0 : i32
    return %c0_i32, %c0_i32_0 : i32, i32
  }
  func.func @transform_5(%arg0: i32, %arg1: i32) -> (i32, i32) {
    %c0_i32 = arith.constant 0 : i32
    %c0_i32_0 = arith.constant 0 : i32
    %c0_i32_1 = arith.constant 0 : i32
    return %c0_i32, %c0_i32_0 : i32, i32
  }
  func.func @transform_6(%arg0: i32, %arg1: i32) -> (i32, i32) {
    %c0_i32 = arith.constant 0 : i32
    %c0_i32_0 = arith.constant 0 : i32
    %c0_i32_1 = arith.constant 0 : i32
    return %c0_i32, %c0_i32_0 : i32, i32
  }
  func.func @transform_7(%arg0: i32, %arg1: i32) -> (i32, i32, i32) {
    %c0_i32 = arith.constant 0 : i32
    %c0_i32_0 = arith.constant 0 : i32
    %c0_i32_1 = arith.constant 0 : i32
    return %arg0, %c0_i32, %c0_i32_0 : i32, i32, i32
  }
  func.func @transform_8(%arg0: i32, %arg1: i32) -> (i32, i32, i32) {
    %c0_i32 = arith.constant 0 : i32
    %c0_i32_0 = arith.constant 0 : i32
    %c0_i32_1 = arith.constant 0 : i32
    return %arg0, %c0_i32, %c0_i32_0 : i32, i32, i32
  }
}

</mosaic_0001>

<bundles_post_ra>
// kernel: tpu_custom_call.1
= control target key start
LH: loop header
LB: loop body
LE: loop exit
PB: predicated region body
PF: predicated region fallthrough
CT: control target
= control target key end

     0   :  { %s7399_s0 = inlined_call_operand.hbm [shape: f32[2,1792,256], index: 0, kind: input, shape index: {}]   ;;  %s7400_s1 = inlined_call_operand.hbm [shape: f32[1792,128], index: 1, kind: input, shape index: {}]   ;;  %s7401_s2 = inlined_call_operand.hbm [shape: f32[1,128], index: 2, kind: input, shape index: {}]   ;;  %s7402_s3 = inlined_call_operand.vmem [shape: f32[128,64], index: 3, kind: input, shape index: {}]   ;;  %s7403_s4 = inlined_call_operand.hbm [shape: f32[1,64], index: 4, kind: input, shape index: {}]   ;;  %s7404_s5 = inlined_call_operand.hbm [shape: f32[64,128], index: 5, kind: input, shape index: {}]   ;;  %s7405_s6 = inlined_call_operand.hbm [shape: f32[1,128], index: 6, kind: input, shape index: {}]   ;;  %s7406_s7 = inlined_call_operand.hbm [shape: f32[2,1,128], index: 7, kind: output, shape index: {0}]   ;;  %s7407_s8 = inlined_call_operand.hbm [shape: f32[2,1,128], index: 8, kind: output, shape index: {1}]  }
   0x1   :  { %7409 = sst [smem:[#allocation23_spill]] %s7400_s1 }
   0x2   :  { %7410 = sst [smem:[#allocation24_spill]] %s7401_s2 }
   0x3   :  { %7411 = sst [smem:[#allocation25_spill]] %s7403_s4 }
   0x4   :  { %7412 = sst [smem:[#allocation26_spill]] %s7404_s5 }
   0x5   :  { %14 = vsyncpa [#allocation4], 0 }
   0x6   :  { %16 = vsyncpa [#allocation4 + $0x1], 0 }
   0x7   :  { %17 = vsyncpa [#allocation7], 0 }
   0x8   :  { %18 = vsyncpa [#allocation10], 0 }
   0x9   :  { %19 = vsyncpa [#allocation13], 0 }
   0xa   :  { %20 = vsyncpa [#allocation5], 0 }
   0xb   :  { %22 = vsyncpa [#allocation5 + $0x1], 0 }
   0xc   :  { %23 = vsyncpa [#allocation16], 0 }
   0xd   :  { %25 = vsyncpa [#allocation16 + $0x1], 0  ;;  %s5991_s27 = smov 0   ;;  %s5993_s28 = smov 0  }
   0xe   :  { %s5995_s29 = smov 0   ;;  %s5997_s30 = smov 0  }
   0xf   :  { %s5999_s9 = smov 0   ;;  %s6001_s10 = smov 0  }
  0x10 LB: > { %s7408_s11 = sadd.s32 4294967295, %s5935_s10   ;;  %p5487_p0 = scmp.ge.s32.totalorder %s5935_s10, 1  ;;  %s5935_s10 = sphi %s6001_s10, %s31_s10   ;;  %s5931_s9 = sphi %s5999_s9, %s7429_s9   ;;  %s5927_s30 = sphi %s5997_s30, %s7428_s30   ;;  %s5923_s29 = sphi %s5995_s29, %s7427_s29   ;;  %s5919_s28 = sphi %s5993_s28, %s7426_s28   ;;  %s5915_s27 = sphi %s5991_s27, %s7425_s27  }
  0x11   : > { %p6025_p1 = scmp.eq.s32.totalorder %s7408_s11, 0  ;;  %p254_p2 = scmp.lt.s32.totalorder %s5935_s10, 3 }
  0x12   : > { %s7414_s1 = sld [smem:[#allocation23_spill]]  ;;  %s5937_s17 = smov [#allocation6]  }
  0x13   : > { %p6033_p3 = pnand %p5487_p0, %p254_p2  ;;  %s267_s18 = sshll.u32 %s5937_s17, 4  ;;  %s268_s18 = int_to_ptr.vmem [resolvable:$true] %s267_s18 }
  0x14   : > { %p5493_p6 = scmp.ge.s32.totalorder %s5935_s10, 2  ;;  %s7417_s4 = sld [smem:[#allocation25_spill]] }
  0x15   : > { %p5533_p4 = pneg %p6033_p3  ;;  %s5938_s23 = smov 128  }
  0x16   : > { %s5939_s24 = smov 8   ;;  %s5940_s25 = smov [#allocation9]  }
  0x17   : > { %p6041_p5 = pnand %p5533_p4, %p6025_p1  ;;  %s297_s26 = sshll.u32 %s5940_s25, 4  ;;  %s298_s26 = int_to_ptr.vmem [resolvable:$true] %s297_s26 }
  0x18   : > { %s265_s15 = sshll.u32 %s7414_s1, 4  ;;  %s7418_s2 = sld [smem:[#allocation24_spill]]  ;;  %s266_s15 = int_to_ptr.hbm [resolvable:$true] %s265_s15 }
  0x19   : > { %5536 = dma.hbm_to_vmem [thread:$0]  (!%p6041_p5), %s266_s15, 28672, %s268_s18, [#allocation7], %s5938_s23, %s5938_s23, %s5939_s24  }
  0x1a   : > { %s295_s22 = sshll.u32 %s7417_s4, 4  ;;  %s7419_s5 = sld [smem:[#allocation26_spill]]  ;;  %s296_s22 = int_to_ptr.hbm [resolvable:$true] %s295_s22 }
  0x1b   : > { %5542 = dma.hbm_to_vmem [thread:$0]  (!%p6041_p5), %s296_s22, 16, %s298_s26, [#allocation10]  }
  0x1c   : > { %s5941_s1 = smov [#allocation8]   ;;  %s5942_s18 = smov [#allocation11]  }
  0x1d   : > { %s282_s15 = sshll.u32 %s5941_s1, 4  ;;  %s308_s22 = sshll.u32 %s5942_s18, 4  ;;  %s283_s15 = int_to_ptr.vmem [resolvable:$true] %s282_s15  ;;  %s309_s22 = int_to_ptr.vmem [resolvable:$true] %s308_s22 }
  0x1e   : > { %s280_s17 = sshll.u32 %s7418_s2, 4  ;;  %s321_s26 = sshll.u32 %s7405_s6, 4  ;;  %s281_s17 = int_to_ptr.hbm [resolvable:$true] %s280_s17  ;;  %s322_s26 = int_to_ptr.hbm [resolvable:$true] %s321_s26 }
  0x1f   : > { %5539 = dma.hbm_to_vmem [thread:$0]  (!%p6041_p5), %s281_s17, 16, %s283_s15, [#allocation7]  }
  0x20   : > { %s306_s21 = sshll.u32 %s7419_s5, 4  ;;  %s5943_s1 = smov [#allocation12]   ;;  %s307_s21 = int_to_ptr.hbm [resolvable:$true] %s306_s21 }
  0x21   : > { %5545 = dma.hbm_to_vmem [thread:$0]  (!%p6041_p5), %s307_s21, 1024, %s309_s22, [#allocation10], %s5938_s23, %s5938_s23, %s5939_s24  }
  0x22   : > { %s323_s13 = sshll.u32 %s5943_s1, 4  ;;  %s5486_s14 = sadd.s32 4294967294, %s5935_s10   ;;  %s324_s13 = int_to_ptr.vmem [resolvable:$true] %s323_s13 }
  0x23   : > { %5548 = dma.hbm_to_vmem [thread:$0]  (!%p6041_p5), %s322_s26, 16, %s324_s13, [#allocation13]  }
  0x24   : > { %s43_s17 = sadd.s32 1, %s5931_s9  ;;  %s52_s20 = sadd.s32 1, %s5923_s29 }
  0x25   : > { %p45_p7 = scmp.ge.s32.totalorder %s43_s17, 2  ;;  %p59_p8 = scmp.ne.s32.totalorder %s5923_s29, %s5919_s28 }
  0x26   : > { %p60_p9 = scmp.eq.s32.totalorder %s5935_s10, 0  ;;  %p65_p10 = scmp.ne.s32.totalorder %s5919_s28, %s5915_s27 }
  0x27   : > { %s7431_s17 = smov (%p45_p7, %s43_s17), 0  ;;  %s7422_s21 = sadd.s32 4294967295, %s5935_s10  }
  0x28   : > { %p6078_p11 = por %p60_p9, %p59_p8  ;;  %p6084_p12 = por %p6025_p1, %p65_p10 }
  0x29   : > { %s47_s24 = ssub.s32 %s5931_s9, %s7431_s17  ;;  %p215_p13 = scmp.eq.s32.totalorder %s7422_s21, 1 }
  0x2a   : > { %p50_p0 = scmp.eq.s32.totalorder %s47_s24, 0  ;;  %p221_p2 = scmp.eq.s32.totalorder %s5486_s14, 1 }
  0x2b   : > { %p6092_p4 = por %p215_p13, %p59_p8  ;;  %p5565_p5 = scmp.lt.s32.totalorder %s5935_s10, 2 }
  0x2c   : > { %s6098_s18 = scalar_select %p50_p0, %s5923_s29, %s52_s20  }
  0x2d   : > { %p6100_p7 = por %p221_p2, %p65_p10  ;;  %s334_s25 = sand.u32 1, %s5923_s29  }
  0x2e   : > { %s5504_s11 = smul.u32 3584, %s334_s25  ;;  %p5550_p9 = pnand %p5565_p5, %p6078_p11 }
  0x2f   : > { %s5505_s26 = smul.u32 3584, %s5931_s9  ;;  %s335_s20 = scalar_lea.sflag [#allocation4], %s334_s25 }
  0x30   : > { %s338_s24 = scalar_lea.vmem [#allocation3], %s5504_s11  ;;  %s5944_s4 = smov 256  }
  0x31   : > { %s345_s14 = scalar_lea.hbm %s7399_s0, %s5505_s26  ;;  %s348_s21 = sshll.u32 %s338_s24, 4  ;;  %s349_s21 = int_to_ptr.vmem [resolvable:$true] %s348_s21 }
  0x32   : > { %s346_s2 = sshll.u32 %s345_s14, 4  ;;  %s5945_s5 = smov 16   ;;  %s347_s2 = int_to_ptr.hbm [resolvable:$true] %s346_s2 }
  0x33   : > { %5552 = dma.hbm_to_vmem [thread:$0]  (!%p5550_p9), %s347_s2, 57344, %s349_s21, %s335_s20, %s5944_s4, %s5944_s4, %s5945_s5  }
  0x34   : > { %360 = sbr.rel (%p6033_p3) target bundleno = 1184 (0x4a0), region = 48  ;;  %s6114_s23 = sand.u32 (!%p6033_p3), 1, %s5919_s28  }
  0x35   : > { %s5506_s1 = smul.u32 (!%p6033_p3), 3584, %s6114_s23  ;;  %s363_s26 = scalar_lea.sflag (!%p6033_p3), [#allocation4], %s6114_s23 }
  0x37   : > { %s6118_s11 = scalar_lea.vmem (!%p6033_p3), [#allocation3], %s5506_s1 }
  0x39   : > { %5890 = dma.done.wait (%p6084_p12), %s363_s26, 57344  }
  0x3a   : > { %5892 = vsyncadd (%p6084_p12), %s363_s26, 4294909952 }
  0x3b   : > { %5894 = dma.done.wait (%p6025_p1), [#allocation7], 28688  }
  0x3c   : > { %5896 = vsyncadd (%p6025_p1), [#allocation7], 4294938608 }
  0x3d   : > { %5898 = dma.done.wait (%p6025_p1), [#allocation10], 1040  }
  0x3e   : > { %5900 = vsyncadd (%p6025_p1), [#allocation10], 4294966256 }
  0x3f   : > { %5902 = dma.done.wait (%p6025_p1), [#allocation13], 16  }
  0x40   : > { %5904 = vsyncadd (%p6025_p1), [#allocation13], 4294967280  ;;  %v1337_v0 = vld [vmem:[%s6118_s11 + $0x40] sm:$0xff]  ;;  %v1338_v1 = vld [vmem:[%s6118_s11 + $0x48] sm:$0xff]  ;;  %vm4474_vm0 = vcmask 130112   ;;  %vm4478_vm1 = vcmask 195712   ;;  %s5315_s19 = scalar_lea.hbm %s7406_s7, %s5927_s30 }
  0x41   : > { %v1333_v2 = vld [vmem:[%s6118_s11 + $0x20] sm:$0xff]  ;;  %v3136_v3 = vadd.f32 %v1338_v1, %v1337_v0  ;;  %v1334_v4 = vld [vmem:[%s6118_s11 + $0x28] sm:$0xff]  ;;  %v1339_v9 = vld [vmem:[%s6118_s11 + $0x50] sm:$0xff]  ;;  %vm4482_vm2 = vcmask 261312   ;;  %vm4486_vm3 = vcmask 326912   ;;  %vm4490_vm4 = vcmask 392512  }
  0x42   : > { %v1329_v5 = vld [vmem:[%s6118_s11] sm:$0xff]  ;;  %v1330_v6 = vld [vmem:[%s6118_s11 + $0x8] sm:$0xff]  ;;  %v3130_v7 = vadd.f32 %v1334_v4, %v1333_v2  ;;  %v1340_v10 = vld [vmem:[%s6118_s11 + $0x58] sm:$0xff]  ;;  %vm4494_vm5 = vcmask 458112   ;;  %vm4498_vm6 = vcmask 523712   ;;  %vm4502_vm7 = vcmask 589312  }
  0x43   : > { %v3124_v8 = vadd.f32 %v1330_v6, %v1329_v5  ;;  %3137 = vadd.xlane.f32.xlu2 %v3136_v3  ;;  %v1335_v11 = vld [vmem:[%s6118_s11 + $0x30] sm:$0xff]  ;;  %v1336_v12 = vld [vmem:[%s6118_s11 + $0x38] sm:$0xff]  ;;  %v3139_v15 = vadd.f32 %v1340_v10, %v1339_v9  ;;  %v1345_v18 = vld [vmem:[%s6118_s11 + $0x80] sm:$0xff]  ;;  %vm4506_vm8 = vcmask 654912   ;;  %vm4510_vm9 = vcmask 720512   ;;  %s421_s5 = scalar_lea.vmem [#allocation14], %s6114_s23 }
  0x44   : > { %3131 = vadd.xlane.f32.xlu1 %v3130_v7  ;;  %v1331_v13 = vld [vmem:[%s6118_s11 + $0x10] sm:$0xff]  ;;  %v1332_v14 = vld [vmem:[%s6118_s11 + $0x18] sm:$0xff]  ;;  %v3133_v16 = vadd.f32 %v1336_v12, %v1335_v11  ;;  %v1346_v19 = vld [vmem:[%s6118_s11 + $0x88] sm:$0xff]  ;;  %vm4514_vm10 = vcmask 786112   ;;  %vm4518_vm11 = vcmask 851712   ;;  %vm4522_vm12 = vcmask 917312  }
  0x45   : > { %3125 = vadd.xlane.f32.xlu0 %v3124_v8  ;;  %v3127_v17 = vadd.f32 %v1332_v14, %v1331_v13  ;;  %v1343_v20 = vld [vmem:[%s6118_s11 + $0x70] sm:$0xff]  ;;  %v1344_v21 = vld [vmem:[%s6118_s11 + $0x78] sm:$0xff]  ;;  %v1341_v22 = vld [vmem:[%s6118_s11 + $0x60] sm:$0xff]  ;;  %v3148_v24 = vadd.f32 %v1346_v19, %v1345_v18  ;;  %vm4526_vm13 = vcmask 982912   ;;  %vm4530_vm14 = vcmask 1048512   ;;  %s5317_s25 = sshll.u32 %s421_s5, 4  ;;  %s5318_s25 = int_to_ptr.vmem [resolvable:$true] %s5317_s25 }
  0x46   : > { %v1342_v23 = vld [vmem:[%s6118_s11 + $0x68] sm:$0xff]  ;;  %v3145_v25 = vadd.f32 %v1344_v21, %v1343_v20  ;;  %v1351_v27 = vld [vmem:[%s6118_s11 + $0xb0] sm:$0xff]  ;;  %v1352_v28 = vld [vmem:[%s6118_s11 + $0xb8] sm:$0xff]  ;;  %vm5277_vm15 = vcmask 523264   ;;  %s5319_s13 = sshll.u32 %s5315_s19, 4  ;;  %s5303_s14 = scalar_lea.sflag [#allocation5], %s6114_s23  ;;  %s5320_s13 = int_to_ptr.hbm [resolvable:$true] %s5319_s13 }
  0x47   : > { %v3142_v26 = vadd.f32 %v1342_v23, %v1341_v22  ;;  %v1349_v29 = vld [vmem:[%s6118_s11 + $0xa0] sm:$0xff]  ;;  %v1350_v30 = vld [vmem:[%s6118_s11 + $0xa8] sm:$0xff]  ;;  %v1347_v31 = vld [vmem:[%s6118_s11 + $0x90] sm:$0xff]  ;;  %v3157_v33 = vadd.f32 %v1352_v28, %v1351_v27  ;;  %s5823_s24 = sshra.s32 %s5320_s13, 4  ;;  %s5829_s26 = scalar_lea.hbm %s7406_s7, 2  ;;  %s5824_s24 = int_to_ptr.hbm [resolvable:$true] %s5823_s24 }
  0x48   : > { %v1348_v32 = vld [vmem:[%s6118_s11 + $0x98] sm:$0xff]  ;;  %v3154_v34 = vadd.f32 %v1350_v30, %v1349_v29  ;;  %v1357_v36 = vld [vmem:[%s6118_s11 + $0xe0] sm:$0xff]  ;;  %v1358_v37 = vld [vmem:[%s6118_s11 + $0xe8] sm:$0xff]  ;;  %s5825_s21 = scalar_lea.hbm %s5824_s24, 1  ;;  %p5830_p10 = scmp.lt.s32.totalorder %s5824_s24, %s7406_s7 }
  0x49   : > { %v3151_v35 = vadd.f32 %v1348_v32, %v1347_v31  ;;  %v1355_v38 = vld [vmem:[%s6118_s11 + $0xd0] sm:$0xff]  ;;  %v1356_v39 = vld [vmem:[%s6118_s11 + $0xd8] sm:$0xff]  ;;  %v1353_v40 = vld [vmem:[%s6118_s11 + $0xc0] sm:$0xff]  ;;  %v3166_v42 = vadd.f32 %v1358_v37, %v1357_v36  ;;  %p5826_p1 = scmp.ne.s32.totalorder %s5824_s24, %s5825_s21  ;;  %p5831_p11 = scmp.lt.s32.totalorder %s5829_s26, %s5825_s21 }
  0x4a   : > { %v1354_v41 = vld [vmem:[%s6118_s11 + $0xc8] sm:$0xff]  ;;  %v3163_v43 = vadd.f32 %v1356_v39, %v1355_v38  ;;  %v1363_v45 = vld [vmem:[%s6118_s11 + $0x110] sm:$0xff]  ;;  %v1364_v46 = vld [vmem:[%s6118_s11 + $0x118] sm:$0xff] }
  0x4b   : > { %3140 = vadd.xlane.f32.xlu2 %v3139_v15  ;;  %v3160_v44 = vadd.f32 %v1354_v41, %v1353_v40  ;;  %v1361_v47 = vld [vmem:[%s6118_s11 + $0x100] sm:$0xff]  ;;  %v1362_v48 = vld [vmem:[%s6118_s11 + $0x108] sm:$0xff]  ;;  %v1359_v49 = vld [vmem:[%s6118_s11 + $0xf0] sm:$0xff]  ;;  %v3175_v51 = vadd.f32 %v1364_v46, %v1363_v45  ;;  %p5827_p3 = pnand %p5826_p1, %p6092_p4  ;;  %p5832_p12 = por %p5831_p11, %p5830_p10 }
  0x4c   : > { %3134 = vadd.xlane.f32.xlu1 %v3133_v16  ;;  %v1360_v50 = vld [vmem:[%s6118_s11 + $0xf8] sm:$0xff]  ;;  %v3172_v52 = vadd.f32 %v1362_v48, %v1361_v47  ;;  %v1369_v54 = vld [vmem:[%s6118_s11 + $0x140] sm:$0xff]  ;;  %v1370_v55 = vld [vmem:[%s6118_s11 + $0x148] sm:$0xff] }
  0x4d   : > { %3128 = vadd.xlane.f32.xlu0 %v3127_v17  ;;  %v3169_v53 = vadd.f32 %v1360_v50, %v1359_v49  ;;  %v1367_v56 = vld [vmem:[%s6118_s11 + $0x130] sm:$0xff]  ;;  %v1368_v57 = vld [vmem:[%s6118_s11 + $0x138] sm:$0xff]  ;;  %v1365_v58 = vld [vmem:[%s6118_s11 + $0x120] sm:$0xff]  ;;  %v3184_v60 = vadd.f32 %v1370_v55, %v1369_v54  ;;  %p5828_p8 = pneg %p5827_p3 }
  0x4e   : > { %v1366_v59 = vld [vmem:[%s6118_s11 + $0x128] sm:$0xff]  ;;  %v3181_v61 = vadd.f32 %v1368_v57, %v1367_v56  ;;  %v1375_v63 = vld [vmem:[%s6118_s11 + $0x170] sm:$0xff]  ;;  %v1376_v0 = vld [vmem:[%s6118_s11 + $0x178] sm:$0xff] }
  0x4f   : > { %v3178_v62 = vadd.f32 %v1366_v59, %v1365_v58  ;;  %v1373_v1 = vld [vmem:[%s6118_s11 + $0x160] sm:$0xff]  ;;  %v1374_v2 = vld [vmem:[%s6118_s11 + $0x168] sm:$0xff]  ;;  %v1371_v3 = vld [vmem:[%s6118_s11 + $0x150] sm:$0xff]  ;;  %v3193_v5 = vadd.f32 %v1376_v0, %v1375_v63  ;;  %p5833_p13 = pnand %p5832_p12, %p5828_p8 }
  0x50   : > { %v1372_v4 = vld [vmem:[%s6118_s11 + $0x158] sm:$0xff]  ;;  %v3190_v6 = vadd.f32 %v1374_v2, %v1373_v1  ;;  %v1381_v8 = vld [vmem:[%s6118_s11 + $0x1a0] sm:$0xff]  ;;  %v1382_v9 = vld [vmem:[%s6118_s11 + $0x1a8] sm:$0xff] }
  0x51   : > { %v3187_v7 = vadd.f32 %v1372_v4, %v1371_v3  ;;  %v1379_v10 = vld [vmem:[%s6118_s11 + $0x190] sm:$0xff]  ;;  %v1380_v11 = vld [vmem:[%s6118_s11 + $0x198] sm:$0xff]  ;;  %v1377_v12 = vld [vmem:[%s6118_s11 + $0x180] sm:$0xff]  ;;  %v3202_v14 = vadd.f32 %v1382_v9, %v1381_v8 }
  0x52   : > { %v1378_v13 = vld [vmem:[%s6118_s11 + $0x188] sm:$0xff]  ;;  %v3199_v15 = vadd.f32 %v1380_v11, %v1379_v10  ;;  %v1387_v17 = vld [vmem:[%s6118_s11 + $0x1d0] sm:$0xff]  ;;  %v1388_v18 = vld [vmem:[%s6118_s11 + $0x1d8] sm:$0xff] }
  0x53   : > { %3149 = vadd.xlane.f32.xlu2 %v3148_v24  ;;  %v3196_v16 = vadd.f32 %v1378_v13, %v1377_v12  ;;  %v1385_v19 = vld [vmem:[%s6118_s11 + $0x1c0] sm:$0xff]  ;;  %v1386_v20 = vld [vmem:[%s6118_s11 + $0x1c8] sm:$0xff]  ;;  %v1383_v21 = vld [vmem:[%s6118_s11 + $0x1b0] sm:$0xff]  ;;  %v3211_v23 = vadd.f32 %v1388_v18, %v1387_v17 }
  0x54   : > { %3146 = vadd.xlane.f32.xlu1 %v3145_v25  ;;  %v1384_v22 = vld [vmem:[%s6118_s11 + $0x1b8] sm:$0xff]  ;;  %v3208_v24 = vadd.f32 %v1386_v20, %v1385_v19  ;;  %v1394_v27 = vld [vmem:[%s6118_s11 + $0x208] sm:$0xff]  ;;  %v1391_v28 = vld [vmem:[%s6118_s11 + $0x1f0] sm:$0xff] }
  0x55   : > { %3143 = vadd.xlane.f32.xlu0 %v3142_v26  ;;  %v3205_v25 = vadd.f32 %v1384_v22, %v1383_v21  ;;  %v1393_v26 = vld [vmem:[%s6118_s11 + $0x200] sm:$0xff]  ;;  %v1392_v29 = vld [vmem:[%s6118_s11 + $0x1f8] sm:$0xff]  ;;  %v1390_v31 = vld [vmem:[%s6118_s11 + $0x1e8] sm:$0xff] }
  0x56   : > { %v1389_v30 = vld [vmem:[%s6118_s11 + $0x1e0] sm:$0xff]  ;;  %v3220_v32 = vadd.f32 %v1394_v27, %v1393_v26  ;;  %v1400_v36 = vld [vmem:[%s6118_s11 + $0x238] sm:$0xff]  ;;  %v1398_v38 = vld [vmem:[%s6118_s11 + $0x228] sm:$0xff] }
  0x57   : > { %v1397_v37 = vld [vmem:[%s6118_s11 + $0x220] sm:$0xff]  ;;  %v1395_v39 = vld [vmem:[%s6118_s11 + $0x210] sm:$0xff]  ;;  %v1396_v40 = vld [vmem:[%s6118_s11 + $0x218] sm:$0xff] }
  0x58   : > { %v1406_v45 = vld [vmem:[%s6118_s11 + $0x268] sm:$0xff]  ;;  %v1403_v46 = vld [vmem:[%s6118_s11 + $0x250] sm:$0xff]  ;;  %v1404_v47 = vld [vmem:[%s6118_s11 + $0x258] sm:$0xff] }
  0x59   : > { %v1401_v48 = vld [vmem:[%s6118_s11 + $0x240] sm:$0xff]  ;;  %v1402_v49 = vld [vmem:[%s6118_s11 + $0x248] sm:$0xff]  ;;  %v1412_v54 = vld [vmem:[%s6118_s11 + $0x298] sm:$0xff] }
  0x5a   : > { %v1409_v55 = vld [vmem:[%s6118_s11 + $0x280] sm:$0xff]  ;;  %v1410_v56 = vld [vmem:[%s6118_s11 + $0x288] sm:$0xff]  ;;  %v1407_v57 = vld [vmem:[%s6118_s11 + $0x270] sm:$0xff] }
  0x5b   : > { %3158 = vadd.xlane.f32.xlu2 %v3157_v33  ;;  %v3217_v33 = vadd.f32 %v1392_v29, %v1391_v28  ;;  %v1408_v58 = vld [vmem:[%s6118_s11 + $0x278] sm:$0xff]  ;;  %v4033_v0 = vld [vmem:[#allocation6 + $0x68] sm:$0xff]  ;;  %v1417_v1 = vld [vmem:[%s6118_s11 + $0x2c0] sm:$0xff] }
  0x5c   : > { %3155 = vadd.xlane.f32.xlu1 %v3154_v34  ;;  %v3214_v34 = vadd.f32 %v1390_v31, %v1389_v30  ;;  %v4035_v59 = vld [vmem:[#allocation6 + $0x78] sm:$0xff]  ;;  %v3241_v63 = vadd.f32 %v1408_v58, %v1407_v57  ;;  %v4032_v2 = vld [vmem:[#allocation6 + $0x60] sm:$0xff]  ;;  %v1418_v3 = vld [vmem:[%s6118_s11 + $0x2c8] sm:$0xff] }
  0x5d   : > { %3152 = vadd.xlane.f32.xlu0 %v3151_v35  ;;  %v1399_v35 = vld [vmem:[%s6118_s11 + $0x230] sm:$0xff]  ;;  %4949 = vmatpush.msra.mxu0 %v4035_v59  ;;  %v4031_v8 = vld [vmem:[#allocation6 + $0x58] sm:$0xff]  ;;  %v3256_v9 = vadd.f32 %v1418_v3, %v1417_v1  ;;  %v4029_v13 = vld [vmem:[#allocation6 + $0x48] sm:$0xff] }
  0x5e   : > { %v3229_v41 = vadd.f32 %v1400_v36, %v1399_v35  ;;  %v1415_v4 = vld [vmem:[%s6118_s11 + $0x2b0] sm:$0xff]  ;;  %v1421_v17 = vld [vmem:[%s6118_s11 + $0x2e0] sm:$0xff]  ;;  %v1422_v18 = vld [vmem:[%s6118_s11 + $0x2e8] sm:$0xff] }
  0x5f   : > { %v4030_v10 = vld [vmem:[#allocation6 + $0x50] sm:$0xff]  ;;  %v1420_v20 = vld [vmem:[%s6118_s11 + $0x2d8] sm:$0xff]  ;;  %v3262_v28 = vadd.f32 %v1422_v18, %v1421_v17  ;;  %v4025_v30 = vld [vmem:[#allocation6 + $0x28] sm:$0xff] }
  0x60   : > { %v1419_v19 = vld [vmem:[%s6118_s11 + $0x2d0] sm:$0xff]  ;;  %v4027_v21 = vld [vmem:[#allocation6 + $0x38] sm:$0xff]  ;;  %v4024_v31 = vld [vmem:[#allocation6 + $0x20] sm:$0xff] }
  0x61   : > { %v4026_v27 = vld [vmem:[#allocation6 + $0x30] sm:$0xff]  ;;  %v3259_v29 = vadd.f32 %v1420_v20, %v1419_v19  ;;  %v4023_v36 = vld [vmem:[#allocation6 + $0x18] sm:$0xff]  ;;  %v4020_v58 = vld [vmem:[#allocation6] sm:$0xff] }
  0x62   : > { %v1427_v35 = vld [vmem:[%s6118_s11 + $0x310] sm:$0xff]  ;;  %v1434_v3 = vld [vmem:[%s6118_s11 + $0x348] sm:$0xff] }
  0x63   : > { %3167 = vadd.xlane.f32.xlu2 %v3166_v42  ;;  %v3226_v42 = vadd.f32 %v1398_v38, %v1397_v37  ;;  %v1428_v37 = vld [vmem:[%s6118_s11 + $0x318] sm:$0xff]  ;;  %v1425_v38 = vld [vmem:[%s6118_s11 + $0x300] sm:$0xff] }
  0x64   : > { %3164 = vadd.xlane.f32.xlu1 %v3163_v43  ;;  %v3223_v43 = vadd.f32 %v1396_v40, %v1395_v39  ;;  %v1426_v39 = vld [vmem:[%s6118_s11 + $0x308] sm:$0xff] }
  0x65   : > { %3161 = vadd.xlane.f32.xlu0 %v3160_v44  ;;  %v1405_v44 = vld [vmem:[%s6118_s11 + $0x260] sm:$0xff] }
  0x66   : > { %v3238_v50 = vadd.f32 %v1406_v45, %v1405_v44 }
  0x6b   : > { %3176 = vadd.xlane.f32.xlu2 %v3175_v51  ;;  %v3235_v51 = vadd.f32 %v1404_v47, %v1403_v46 }
  0x6c   : > { %3173 = vadd.xlane.f32.xlu1 %v3172_v52  ;;  %v3232_v52 = vadd.f32 %v1402_v49, %v1401_v48  ;;  %v4022_v49 = vld [vmem:[#allocation6 + $0x10] sm:$0xff] }
  0x6d   : > { %3170 = vadd.xlane.f32.xlu0 %v3169_v53  ;;  %v1411_v53 = vld [vmem:[%s6118_s11 + $0x290] sm:$0xff] }
  0x73   : > { %3185 = vadd.xlane.f32.xlu2 %v3184_v60  ;;  %v3247_v60 = vadd.f32 %v1412_v54, %v1411_v53  ;;  %v3268_v53 = vadd.f32 %v1426_v39, %v1425_v38  ;;  %v4021_v54 = vld [vmem:[#allocation6 + $0x8] sm:$0xff] }
  0x74   : > { %3182 = vadd.xlane.f32.xlu1 %v3181_v61  ;;  %v4034_v61 = vld [vmem:[#allocation6 + $0x70] sm:$0xff] }
  0x75   : > { %3179 = vadd.xlane.f32.xlu0 %v3178_v62  ;;  %v3244_v62 = vadd.f32 %v1410_v56, %v1409_v55  ;;  %4950 = vmatpush.msra.mxu0 %v4034_v61  ;;  %v1435_v61 = vld [vmem:[%s6118_s11 + $0x350] sm:$0xff] }
  0x77   : > { %4951 = vmatpush.msra.mxu0 %v4033_v0 }
  0x79   : > { %4952 = vmatpush.msra.mxu0 %v4032_v2 }
  0x7b   : > { %3194 = vadd.xlane.f32.xlu2 %v3193_v5  ;;  %v1416_v5 = vld [vmem:[%s6118_s11 + $0x2b8] sm:$0xff]  ;;  %4953 = vmatpush.msra.mxu0 %v4031_v8 }
  0x7c   : > { %3191 = vadd.xlane.f32.xlu1 %v3190_v6  ;;  %v1413_v6 = vld [vmem:[%s6118_s11 + $0x2a0] sm:$0xff]  ;;  %v3253_v11 = vadd.f32 %v1416_v5, %v1415_v4  ;;  %v1431_v4 = vld [vmem:[%s6118_s11 + $0x330] sm:$0xff]  ;;  %v1432_v5 = vld [vmem:[%s6118_s11 + $0x338] sm:$0xff] }
  0x7d   : > { %3188 = vadd.xlane.f32.xlu0 %v3187_v7  ;;  %v1414_v7 = vld [vmem:[%s6118_s11 + $0x2a8] sm:$0xff]  ;;  %4954 = vmatpush.msra.mxu0 %v4030_v10 }
  0x7e   : > { %v3250_v12 = vadd.f32 %v1414_v7, %v1413_v6 }
  0x7f   : > { %4955 = vmatpush.msra.mxu0 %v4029_v13 }
  0x83   : > { %3203 = vadd.xlane.f32.xlu2 %v3202_v14  ;;  %v1423_v14 = vld [vmem:[%s6118_s11 + $0x2f0] sm:$0xff] }
  0x84   : > { %3200 = vadd.xlane.f32.xlu1 %v3199_v15  ;;  %v4028_v15 = vld [vmem:[#allocation6 + $0x40] sm:$0xff] }
  0x85   : > { %3197 = vadd.xlane.f32.xlu0 %v3196_v16  ;;  %v1424_v16 = vld [vmem:[%s6118_s11 + $0x2f8] sm:$0xff]  ;;  %4956 = vmatpush.msra.mxu0 %v4028_v15 }
  0x86   : > { %v3265_v26 = vadd.f32 %v1424_v16, %v1423_v14  ;;  %v3277_v16 = vadd.f32 %v1432_v5, %v1431_v4 }
  0x87   : > { %4957 = vmatpush.msra.mxu0 %v4027_v21 }
  0x89   : > { %4958 = vmatpush.msra.mxu0 %v4026_v27 }
  0x8b   : > { %3212 = vadd.xlane.f32.xlu2 %v3211_v23  ;;  %v4469_v23 = vlaneseq  ;;  %4959 = vmatpush.msra.mxu0 %v4025_v30  ;;  %v1438_v30 = vld [vmem:[%s6118_s11 + $0x368] sm:$0xff] }
  0x8c   : > { %3209 = vadd.xlane.f32.xlu1 %v3208_v24 }
  0x8d   : > { %3206 = vadd.xlane.f32.xlu0 %v3205_v25  ;;  %4960 = vmatpush.msra.mxu0 %v4024_v31  ;;  %v4051_v31 = vld [vmem:[#allocation6 + $0xf8] sm:$0xff] }
  0x8e   : > { %4969 = vmatpush.msra.mxu1 %v4051_v31  ;;  %v4044_v31 = vld [vmem:[#allocation6 + $0xc0] sm:$0xff] }
  0x8f   : > { %4961 = vmatpush.msra.mxu0 %v4023_v36 }
  0x91   : > { %4962 = vmatpush.msra.mxu0 %v4022_v49 }
  0x93   : > { %3221 = vadd.xlane.f32.xlu2 %v3220_v32  ;;  %v6232_v32 = vand.u32 127, %v4469_v23  ;;  %4963 = vmatpush.msra.mxu0 %v4021_v54  ;;  %v1441_v23 = vld [vmem:[%s6118_s11 + $0x380] sm:$0xff]  ;;  %v1447_v54 = vld [vmem:[%s6118_s11 + $0x3b0] sm:$0xff] }
  0x94   : > { %3218 = vadd.xlane.f32.xlu1 %v3217_v33  ;;  %v1429_v33 = vld [vmem:[%s6118_s11 + $0x320] sm:$0xff] }
  0x95   : > { %3215 = vadd.xlane.f32.xlu0 %v3214_v34  ;;  %v1430_v34 = vld [vmem:[%s6118_s11 + $0x328] sm:$0xff]  ;;  %v6247_v45 = vadd.s32 4294967272, %v6232_v32  ;;  %v6258_v0 = vadd.s32 4294967264, %v6232_v32  ;;  %4964 = vmatpush.msra.mxu0 %v4020_v58  ;;  %v6265_v6 = vadd.s32 4294967256, %v6232_v32  ;;  %v6268_v10 = vadd.s32 4294967248, %v6232_v32  ;;  %v1445_v58 = vld [vmem:[%s6118_s11 + $0x3a0] sm:$0xff] }
  0x96   : > { %v3274_v48 = vadd.f32 %v1430_v34, %v1429_v33  ;;  %v6274_v19 = vadd.s32 4294967240, %v6232_v32  ;;  %v6283_v27 = vadd.s32 4294967232, %v6232_v32  ;;  %v6290_v36 = vadd.s32 4294967224, %v6232_v32 }
  0x97   : > { %v6295_v49 = vadd.s32 4294967216, %v6232_v32  ;;  %v6312_v5 = vadd.s32 4294967200, %v6232_v32 }
  0x9b   : > { %3230 = vadd.xlane.f32.xlu2 %v3229_v41 }
  0x9c   : > { %3227 = vadd.xlane.f32.xlu1 %v3226_v42  ;;  %v6241_v42 = vadd.s32 4294967288, %v6232_v32 }
  0x9d   : > { %3224 = vadd.xlane.f32.xlu0 %v3223_v43  ;;  %v6244_v43 = vadd.s32 4294967280, %v6232_v32 }
  0xa3   : > { %3239 = vadd.xlane.f32.xlu2 %v3238_v50 }
  0xa4   : > { %3236 = vadd.xlane.f32.xlu1 %v3235_v51 }
  0xa5   : > { %3233 = vadd.xlane.f32.xlu0 %v3232_v52  ;;  %v3271_v52 = vadd.f32 %v1428_v37, %v1427_v35 }
  0xab   : > { %3248 = vadd.xlane.f32.xlu2 %v3247_v60 }
  0xac   : > { %3245 = vadd.xlane.f32.xlu1 %v3244_v62  ;;  %v1436_v62 = vld [vmem:[%s6118_s11 + $0x358] sm:$0xff] }
  0xad   : > { %3242 = vadd.xlane.f32.xlu0 %v3241_v63  ;;  %v1433_v63 = vld [vmem:[%s6118_s11 + $0x340] sm:$0xff] }
  0xae   : > { %v3280_v15 = vadd.f32 %v1434_v3, %v1433_v63  ;;  %v1443_v63 = vld [vmem:[%s6118_s11 + $0x390] sm:$0xff] }
  0xb3   : > { %3257 = vadd.xlane.f32.xlu2 %v3256_v9 }
  0xb4   : > { %3254 = vadd.xlane.f32.xlu1 %v3253_v11 }
  0xb5   : > { %3251 = vadd.xlane.f32.xlu0 %v3250_v12  ;;  %v3283_v12 = vadd.f32 %v1436_v62, %v1435_v61 }
  0xb6   : > { %v3138_v22 = vpop.xlane.xlu2 %3137 }
  0xb7   : > { %v3132_v24 = vpop.xlane.xlu1 %3131  ;;  %v3800_v1 = vmul.f32 0.00390625, %v3138_v22 }
  0xb8   : > { %v3126_v25 = vpop.xlane.xlu0 %3125  ;;  %v3798_v44 = vmul.f32 0.00390625, %v3132_v24  ;;  %v1442_v24 = vld [vmem:[%s6118_s11 + $0x388] sm:$0xff] }
  0xb9   : > { %v3796_v40 = vmul.f32 0.00390625, %v3126_v25  ;;  %v4485_v17 = vperm.slane %v3800_v1, %v6258_v0  ;;  %v1439_v25 = vld [vmem:[%s6118_s11 + $0x370] sm:$0xff]  ;;  %v1444_v1 = vld [vmem:[%s6118_s11 + $0x398] sm:$0xff] }
  0xba   : > { %v4477_v57 = vperm.slane %v3798_v44, %v6244_v43 }
  0xbb   : > { %3266 = vadd.xlane.f32.xlu2 %v3265_v26  ;;  %v4471_v55 = vperm.slane %v3796_v40, %v6232_v32  ;;  %v1440_v26 = vld [vmem:[%s6118_s11 + $0x378] sm:$0xff]  ;;  %v3292_v40 = vadd.f32 %v1442_v24, %v1441_v23  ;;  %v1459_v24 = vld [vmem:[%s6118_s11 + $0x410] sm:$0xff] }
  0xbc   : > { %3263 = vadd.xlane.f32.xlu1 %v3262_v28  ;;  %v3289_v44 = vadd.f32 %v1440_v26, %v1439_v25  ;;  %v1460_v25 = vld [vmem:[%s6118_s11 + $0x418] sm:$0xff] }
  0xbd   : > { %3260 = vadd.xlane.f32.xlu0 %v3259_v29  ;;  %v1437_v29 = vld [vmem:[%s6118_s11 + $0x360] sm:$0xff] }
  0xbe   : > { %v3141_v41 = vpop.xlane.xlu2 %3140 }
  0xbf   : > { %v3135_v46 = vpop.xlane.xlu1 %3134  ;;  %v3801_v7 = vmul.f32 0.00390625, %v3141_v41 }
  0xc0   : > { %v3129_v47 = vpop.xlane.xlu0 %3128  ;;  %v3799_v50 = vmul.f32 0.00390625, %v3135_v46  ;;  %v3286_v46 = vadd.f32 %v1438_v30, %v1437_v29  ;;  %v1458_v29 = vld [vmem:[%s6118_s11 + $0x408] sm:$0xff] }
  0xc1   : > { %v3797_v51 = vmul.f32 0.00390625, %v3129_v47  ;;  %v4489_v18 = vperm.slane %v3801_v7, %v6265_v6  ;;  %v4050_v47 = vld [vmem:[#allocation6 + $0xf0] sm:$0xff]  ;;  %v6315_v7 = vadd.s32 4294967192, %v6232_v32 }
  0xc2   : > { %v4481_v59 = vperm.slane %v3799_v50, %v6247_v45  ;;  %4970 = vmatpush.msra.mxu1 %v4050_v47 }
  0xc3   : > { %v4473_v56 = vperm.slane %v3797_v51, %v6241_v42  ;;  %3275 = vadd.xlane.f32.xlu2 %v3274_v48 }
  0xc4   : > { %3272 = vadd.xlane.f32.xlu1 %v3271_v52 }
  0xc5   : > { %v4475_v60 = vsel %vm4474_vm0, %v4473_v56, %v4471_v55  ;;  %3269 = vadd.xlane.f32.xlu0 %v3268_v53  ;;  %v4049_v53 = vld [vmem:[#allocation6 + $0xe8] sm:$0xff]  ;;  %v1448_v55 = vld [vmem:[%s6118_s11 + $0x3b8] sm:$0xff]  ;;  %v6302_v56 = vadd.s32 4294967208, %v6232_v32 }
  0xc6   : > { %v4479_v2 = vsel %vm4478_vm1, %v4477_v57, %v4475_v60  ;;  %v3150_v8 = vpop.xlane.xlu2 %3149  ;;  %4971 = vmatpush.msra.mxu1 %v4049_v53  ;;  %v4048_v60 = vld [vmem:[#allocation6 + $0xe0] sm:$0xff] }
  0xc7   : > { %v3147_v9 = vpop.xlane.xlu1 %3146  ;;  %v4483_v13 = vsel %vm4482_vm2, %v4481_v59, %v4479_v2  ;;  %v3804_v28 = vmul.f32 0.00390625, %v3150_v8  ;;  %v1446_v59 = vld [vmem:[%s6118_s11 + $0x3a8] sm:$0xff]  ;;  %v4047_v2 = vld [vmem:[#allocation6 + $0xd8] sm:$0xff] }
  0xc8   : > { %v3144_v11 = vpop.xlane.xlu0 %3143  ;;  %v3803_v20 = vmul.f32 0.00390625, %v3147_v9  ;;  %v4487_v21 = vsel %vm4486_vm3, %v4485_v17, %v4483_v13  ;;  %4972 = vmatpush.msra.mxu1 %v4048_v60  ;;  %v4046_v17 = vld [vmem:[#allocation6 + $0xd0] sm:$0xff] }
  0xc9   : > { %v3802_v14 = vmul.f32 0.00390625, %v3144_v11  ;;  %v4491_v34 = vsel %vm4490_vm4, %v4489_v18, %v4487_v21  ;;  %v4501_v48 = vperm.slane %v3804_v28, %v6283_v27  ;;  %v3301_v11 = vadd.f32 %v1448_v55, %v1447_v54  ;;  %v4045_v21 = vld [vmem:[#allocation6 + $0xc8] sm:$0xff]  ;;  %v1457_v28 = vld [vmem:[%s6118_s11 + $0x400] sm:$0xff]  ;;  %v1463_v60 = vld [vmem:[%s6118_s11 + $0x430] sm:$0xff] }
  0xca   : > { %v4497_v33 = vperm.slane %v3803_v20, %v6274_v19  ;;  %4973 = vmatpush.msra.mxu1 %v4047_v2  ;;  %v4041_v54 = vld [vmem:[#allocation6 + $0xa8] sm:$0xff] }
  0xcb   : > { %v4493_v22 = vperm.slane %v3802_v14, %v6268_v10  ;;  %3284 = vadd.xlane.f32.xlu2 %v3283_v12  ;;  %v3298_v12 = vadd.f32 %v1446_v59, %v1445_v58  ;;  %v1490_v58 = vld [vmem:[%s6118_s11 + $0x508] sm:$0xff] }
  0xcc   : > { %3281 = vadd.xlane.f32.xlu1 %v3280_v15  ;;  %4974 = vmatpush.msra.mxu1 %v4046_v17  ;;  %v1462_v2 = vld [vmem:[%s6118_s11 + $0x428] sm:$0xff] }
  0xcd   : > { %3278 = vadd.xlane.f32.xlu0 %v3277_v16  ;;  %v4495_v37 = vsel %vm4494_vm5, %v4493_v22, %v4491_v34  ;;  %v3295_v16 = vadd.f32 %v1444_v1, %v1443_v63  ;;  %v6321_v22 = vadd.s32 4294967184, %v6232_v32  ;;  %v1450_v34 = vld [vmem:[%s6118_s11 + $0x3c8] sm:$0xff]  ;;  %v1464_v63 = vld [vmem:[%s6118_s11 + $0x438] sm:$0xff]  ;;  %v1461_v1 = vld [vmem:[%s6118_s11 + $0x420] sm:$0xff] }
  0xce   : > { %v3159_v35 = vpop.xlane.xlu2 %3158  ;;  %v4499_v51 = vsel %vm4498_vm6, %v4497_v33, %v4495_v37  ;;  %4975 = vmatpush.msra.mxu1 %v4045_v21  ;;  %v1449_v33 = vld [vmem:[%s6118_s11 + $0x3c0] sm:$0xff]  ;;  %v4043_v37 = vld [vmem:[#allocation6 + $0xb8] sm:$0xff]  ;;  %v4037_v17 = vld [vmem:[#allocation6 + $0x88] sm:$0xff] }
  0xcf   : > { %v3156_v38 = vpop.xlane.xlu1 %3155  ;;  %v3807_v57 = vmul.f32 0.00390625, %v3159_v35  ;;  %v4503_v62 = vsel %vm4502_vm7, %v4501_v48, %v4499_v51  ;;  %v3316_v48 = vadd.f32 %v1458_v29, %v1457_v28  ;;  %v4036_v28 = vld [vmem:[#allocation6 + $0x80] sm:$0xff]  ;;  %v1466_v29 = vld [vmem:[%s6118_s11 + $0x448] sm:$0xff] }
  0xd0   : > { %v3153_v39 = vpop.xlane.xlu0 %3152  ;;  %v3806_v50 = vmul.f32 0.00390625, %v3156_v38  ;;  %4976 = vmatpush.msra.mxu1 %v4044_v31  ;;  %v1492_v31 = vld [vmem:[%s6118_s11 + $0x518] sm:$0xff] }
  0xd1   : > { %v3805_v41 = vmul.f32 0.00390625, %v3153_v39  ;;  %v4513_v13 = vperm.slane %v3807_v57, %v6302_v56  ;;  %v6333_v39 = vadd.s32 4294967176, %v6232_v32  ;;  %v1489_v57 = vld [vmem:[%s6118_s11 + $0x500] sm:$0xff] }
  0xd2   : > { %v4509_v61 = vperm.slane %v3806_v50, %v6295_v49  ;;  %4977 = vmatpush.msra.mxu1 %v4043_v37  ;;  %v3304_v50 = vadd.f32 %v1450_v34, %v1449_v33 }
  0xd3   : > { %v4505_v52 = vperm.slane %v3805_v41, %v6290_v36  ;;  %3293 = vadd.xlane.f32.xlu2 %v3292_v40 }
  0xd4   : > { %3290 = vadd.xlane.f32.xlu1 %v3289_v44 }
  0xd5   : > { %3287 = vadd.xlane.f32.xlu0 %v3286_v46  ;;  %v4507_v3 = vsel %vm4506_vm8, %v4505_v52, %v4503_v62  ;;  %v3319_v46 = vadd.f32 %v1460_v25, %v1459_v24  ;;  %v4042_v52 = vld [vmem:[#allocation6 + $0xb0] sm:$0xff]  ;;  %v4039_v62 = vld [vmem:[#allocation6 + $0x98] sm:$0xff]  ;;  %v1494_v25 = vld [vmem:[%s6118_s11 + $0x528] sm:$0xff] }
  0xd6   : > { %v3168_v4 = vpop.xlane.xlu2 %3167  ;;  %v4511_v18 = vsel %vm4510_vm9, %v4509_v61, %v4507_v3  ;;  %4978 = vmatpush.msra.mxu1 %v4042_v52  ;;  %v4040_v61 = vld [vmem:[#allocation6 + $0xa0] sm:$0xff] }
  0xd7   : > { %v3165_v8 = vpop.xlane.xlu1 %3164  ;;  %v3810_v23 = vmul.f32 0.00390625, %v3168_v4  ;;  %v4515_v30 = vsel %vm4514_vm10, %v4513_v13, %v4511_v18 }
  0xd8   : > { %v3162_v9 = vpop.xlane.xlu0 %3161  ;;  %v3809_v14 = vmul.f32 0.00390625, %v3165_v8  ;;  %4979 = vmatpush.msra.mxu1 %v4041_v54  ;;  %v1495_v54 = vld [vmem:[%s6118_s11 + $0x530] sm:$0xff] }
  0xd9   : > { %v3808_v15 = vmul.f32 0.00390625, %v3162_v9  ;;  %v4525_v40 = vperm.slane %v3810_v23, %v6321_v22  ;;  %v1493_v23 = vld [vmem:[%s6118_s11 + $0x520] sm:$0xff] }
  0xda   : > { %v4521_v26 = vperm.slane %v3809_v14, %v6315_v7  ;;  %4980 = vmatpush.msra.mxu1 %v4040_v61  ;;  %v3325_v14 = vadd.f32 %v1464_v63, %v1463_v60  ;;  %v1451_v60 = vld [vmem:[%s6118_s11 + $0x3d0] sm:$0xff]  ;;  %v1452_v61 = vld [vmem:[%s6118_s11 + $0x3d8] sm:$0xff] }
  0xdb   : > { %v4517_v20 = vperm.slane %v3808_v15, %v6312_v5  ;;  %3302 = vadd.xlane.f32.xlu2 %v3301_v11  ;;  %v3322_v15 = vadd.f32 %v1462_v2, %v1461_v1 }
  0xdc   : > { %3299 = vadd.xlane.f32.xlu1 %v3298_v12  ;;  %v3364_v12 = vadd.f32 %v1490_v58, %v1489_v57  ;;  %4981 = vmatpush.msra.mxu1 %v4039_v62  ;;  %v1467_v57 = vld [vmem:[%s6118_s11 + $0x450] sm:$0xff] }
  0xdd   : > { %3296 = vadd.xlane.f32.xlu0 %v3295_v16  ;;  %v4519_v35 = vsel %vm4518_vm11, %v4517_v20, %v4515_v30  ;;  %v4038_v16 = vld [vmem:[#allocation6 + $0x90] sm:$0xff] }
  0xde   : > { %v3177_v38 = vpop.xlane.xlu2 %3176  ;;  %v4523_v51 = vsel %vm4522_vm12, %v4521_v26, %v4519_v35  ;;  %4982 = vmatpush.msra.mxu1 %v4038_v16  ;;  %v1465_v26 = vld [vmem:[%s6118_s11 + $0x440] sm:$0xff]  ;;  %v1491_v30 = vld [vmem:[%s6118_s11 + $0x510] sm:$0xff] }
  0xdf   : > { %v3174_v41 = vpop.xlane.xlu1 %3173  ;;  %v4527_v55 = vsel %vm4526_vm13, %v4525_v40, %v4523_v51  ;;  %v3813_v4 = vmul.f32 0.00390625, %v3177_v38  ;;  %v4066_v16 = vld [vmem:[#allocation6 + $0x170] sm:$0xff] }
  0xe0   : > { %v3171_v44 = vpop.xlane.xlu0 %3170  ;;  %v3812_v8 = vmul.f32 0.00390625, %v3174_v41  ;;  %4983 = vmatpush.msra.mxu1 %v4037_v17  ;;  %v3370_v41 = vadd.f32 %v1494_v25, %v1493_v23  ;;  %v1469_v25 = vld [vmem:[%s6118_s11 + $0x460] sm:$0xff] }
  0xe1   : > { %v3811_v47 = vmul.f32 0.00390625, %v3171_v44  ;;  %v4533_v18 = vperm.slane %v3813_v4, %v6241_v42 }
  0xe2   : > { %v4532_v20 = vperm.slane %v3812_v8, %v6232_v32  ;;  %4984 = vmatpush.msra.mxu1 %v4036_v28 }
  0xe3   : > { %v4529_v53 = vperm.slane %v3811_v47, %v6333_v39  ;;  %3320 = vadd.xlane.f32.xlu2 %v3319_v46  ;;  %v3328_v47 = vadd.f32 %v1466_v29, %v1465_v26  ;;  %v1470_v26 = vld [vmem:[%s6118_s11 + $0x468] sm:$0xff] }
  0xe4   : > { %3317 = vadd.xlane.f32.xlu1 %v3316_v48  ;;  %v4534_v35 = vsel %vm4474_vm0, %v4533_v18, %v4532_v20  ;;  %v3367_v48 = vadd.f32 %v1492_v31, %v1491_v30  ;;  %v1497_v20 = vld [vmem:[%s6118_s11 + $0x540] sm:$0xff]  ;;  %v1454_v31 = vld [vmem:[%s6118_s11 + $0x3e8] sm:$0xff] }
  0xe5   : > { %3305 = vadd.xlane.f32.xlu0 %v3304_v50  ;;  %v4531_v59 = vsel %vm4530_vm14, %v4529_v53, %v4527_v55  ;;  %v1496_v55 = vld [vmem:[%s6118_s11 + $0x538] sm:$0xff]  ;;  %v1453_v30 = vld [vmem:[%s6118_s11 + $0x3e0] sm:$0xff] }
  0xe6   : > { %4965 = vmatmul.f32.vlgmr.msra.gmra.mxu0 %v4531_v59  ;;  %v3186_v3 = vpop.xlane.xlu2 %3185  ;;  %v1468_v59 = vld [vmem:[%s6118_s11 + $0x458] sm:$0xff]  ;;  %v3373_v8 = vadd.f32 %v1496_v55, %v1495_v54  ;;  %v1499_v55 = vld [vmem:[%s6118_s11 + $0x550] sm:$0xff] }
  0xe7   : > { %v3183_v9 = vpop.xlane.xlu1 %3182  ;;  %v3816_v33 = vmul.f32 0.00390625, %v3186_v3 }
  0xe8   : > { %v3180_v11 = vpop.xlane.xlu0 %3179  ;;  %v3815_v21 = vmul.f32 0.00390625, %v3183_v9  ;;  %v4067_v9 = vld [vmem:[#allocation6 + $0x178] sm:$0xff] }
  0xe9   : > { %v3814_v13 = vmul.f32 0.00390625, %v3180_v11  ;;  %v4539_v50 = vperm.slane %v3816_v33, %v6258_v0  ;;  %4989 = vmatpush.msra.mxu2 %v4067_v9  ;;  %v4064_v33 = vld [vmem:[#allocation6 + $0x160] sm:$0xff] }
  0xea   : > { %v4537_v37 = vperm.slane %v3815_v21, %v6247_v45  ;;  %v4065_v21 = vld [vmem:[#allocation6 + $0x168] sm:$0xff] }
  0xeb   : > { %3365 = vadd.xlane.f32.xlu2 %v3364_v12  ;;  %v4535_v24 = vperm.slane %v3814_v13, %v6244_v43  ;;  %v3331_v12 = vadd.f32 %v1468_v59, %v1467_v57  ;;  %v3307_v13 = vadd.f32 %v1452_v61, %v1451_v60  ;;  %4990 = vmatpush.msra.mxu2 %v4066_v16  ;;  %v4061_v57 = vld [vmem:[#allocation6 + $0x148] sm:$0xff]  ;;  %v1500_v60 = vld [vmem:[%s6118_s11 + $0x558] sm:$0xff]  ;;  %v1471_v61 = vld [vmem:[%s6118_s11 + $0x470] sm:$0xff] }
  0xec   : > { %3326 = vadd.xlane.f32.xlu1 %v3325_v14 }
  0xed   : > { %3323 = vadd.xlane.f32.xlu0 %v3322_v15  ;;  %v4536_v44 = vsel %vm4478_vm1, %v4535_v24, %v4534_v35  ;;  %v1498_v24 = vld [vmem:[%s6118_s11 + $0x548] sm:$0xff]  ;;  %4991 = vmatpush.msra.mxu2 %v4065_v21 }
  0xee   : > { %v3195_v34 = vpop.xlane.xlu2 %3194  ;;  %v4538_v52 = vsel %vm4482_vm2, %v4537_v37, %v4536_v44  ;;  %v4063_v44 = vld [vmem:[#allocation6 + $0x158] sm:$0xff] }
  0xef   : > { %v3192_v38 = vpop.xlane.xlu1 %3191  ;;  %v3819_v58 = vmul.f32 0.00390625, %v3195_v34  ;;  %v4540_v63 = vsel %vm4486_vm3, %v4539_v50, %v4538_v52  ;;  %4992 = vmatpush.msra.mxu2 %v4064_v33  ;;  %v3310_v50 = vadd.f32 %v1454_v31, %v1453_v30  ;;  %v4062_v52 = vld [vmem:[#allocation6 + $0x150] sm:$0xff]  ;;  %v1501_v30 = vld [vmem:[%s6118_s11 + $0x560] sm:$0xff] }
  0xf0   : > { %v3189_v40 = vpop.xlane.xlu0 %3188  ;;  %v3818_v51 = vmul.f32 0.00390625, %v3192_v38  ;;  %v4056_v31 = vld [vmem:[#allocation6 + $0x120] sm:$0xff] }
  0xf1   : > { %v3817_v46 = vmul.f32 0.00390625, %v3189_v40  ;;  %v4545_v14 = vperm.slane %v3819_v58, %v6274_v19  ;;  %v3376_v40 = vadd.f32 %v1498_v24, %v1497_v20  ;;  %4993 = vmatpush.msra.mxu2 %v4063_v44  ;;  %v4058_v20 = vld [vmem:[#allocation6 + $0x130] sm:$0xff] }
  0xf2   : > { %v4543_v62 = vperm.slane %v3818_v51, %v6268_v10 }
  0xf3   : > { %v4541_v53 = vperm.slane %v3817_v46, %v6265_v6  ;;  %3371 = vadd.xlane.f32.xlu2 %v3370_v41  ;;  %v3334_v41 = vadd.f32 %v1470_v26, %v1469_v25  ;;  %4994 = vmatpush.msra.mxu2 %v4062_v52  ;;  %v1475_v25 = vld [vmem:[%s6118_s11 + $0x490] sm:$0xff]  ;;  %v4057_v26 = vld [vmem:[#allocation6 + $0x128] sm:$0xff] }
  0xf4   : > { %3329 = vadd.xlane.f32.xlu1 %v3328_v47  ;;  %v4054_v52 = vld [vmem:[#allocation6 + $0x110] sm:$0xff] }
  0xf5   : > { %3368 = vadd.xlane.f32.xlu0 %v3367_v48  ;;  %v4542_v2 = vsel %vm4490_vm4, %v4541_v53, %v4540_v63  ;;  %4995 = vmatpush.msra.mxu2 %v4061_v57 }
  0xf6   : > { %v3204_v1 = vpop.xlane.xlu2 %3203  ;;  %v4544_v17 = vsel %vm4494_vm5, %v4543_v62, %v4542_v2  ;;  %v1472_v62 = vld [vmem:[%s6118_s11 + $0x478] sm:$0xff] }
  0xf7   : > { %v3201_v3 = vpop.xlane.xlu1 %3200  ;;  %v3822_v23 = vmul.f32 0.00390625, %v3204_v1  ;;  %v4546_v29 = vsel %vm4498_vm6, %v4545_v14, %v4544_v17  ;;  %v1455_v1 = vld [vmem:[%s6118_s11 + $0x3f0] sm:$0xff]  ;;  %v1456_v2 = vld [vmem:[%s6118_s11 + $0x3f8] sm:$0xff] }
  0xf8   : > { %v3198_v4 = vpop.xlane.xlu0 %3197  ;;  %v3821_v15 = vmul.f32 0.00390625, %v3201_v3  ;;  %v4060_v3 = vld [vmem:[#allocation6 + $0x140] sm:$0xff]  ;;  %v4059_v14 = vld [vmem:[#allocation6 + $0x138] sm:$0xff]  ;;  %v3313_v17 = vadd.f32 %v1456_v2, %v1455_v1 }
  0xf9   : > { %v3820_v11 = vmul.f32 0.00390625, %v3198_v4  ;;  %v4551_v46 = vperm.slane %v3822_v23, %v6295_v49  ;;  %4996 = vmatpush.msra.mxu2 %v4060_v3  ;;  %v1504_v1 = vld [vmem:[%s6118_s11 + $0x578] sm:$0xff] }
  0xfa   : > { %v4549_v28 = vperm.slane %v3821_v15, %v6290_v36 }
  0xfb   : > { %v4547_v18 = vperm.slane %v3820_v11, %v6283_v27  ;;  %3374 = vadd.xlane.f32.xlu2 %v3373_v8  ;;  %4997 = vmatpush.msra.mxu2 %v4059_v14 }
  0xfc   : > { %3332 = vadd.xlane.f32.xlu1 %v3331_v12  ;;  %v3379_v12 = vadd.f32 %v1500_v60, %v1499_v55  ;;  %v1505_v55 = vld [vmem:[%s6118_s11 + $0x580] sm:$0xff] }
  0xfd   : > { %3308 = vadd.xlane.f32.xlu0 %v3307_v13  ;;  %v4548_v34 = vsel %vm4502_vm7, %v4547_v18, %v4546_v29  ;;  %v3337_v13 = vadd.f32 %v1472_v62, %v1471_v61  ;;  %4998 = vmatpush.msra.mxu2 %v4058_v20  ;;  %v1476_v29 = vld [vmem:[%s6118_s11 + $0x498] sm:$0xff]  ;;  %v1477_v60 = vld [vmem:[%s6118_s11 + $0x4a0] sm:$0xff]  ;;  %v1478_v62 = vld [vmem:[%s6118_s11 + $0x4a8] sm:$0xff] }
  0xfe   : > { %v3213_v35 = vpop.xlane.xlu2 %3212  ;;  %v4550_v51 = vsel %vm4506_vm8, %v4549_v28, %v4548_v34  ;;  %v1502_v34 = vld [vmem:[%s6118_s11 + $0x568] sm:$0xff]  ;;  %v3343_v44 = vadd.f32 %v1476_v29, %v1475_v25  ;;  %v4052_v61 = vld [vmem:[#allocation6 + $0x100] sm:$0xff]  ;;  %v3346_v14 = vadd.f32 %v1478_v62, %v1477_v60  ;;  %v1480_v29 = vld [vmem:[%s6118_s11 + $0x4b8] sm:$0xff] }
  0xff   : > { %v3210_v37 = vpop.xlane.xlu1 %3209  ;;  %v3825_v54 = vmul.f32 0.00390625, %v3213_v35  ;;  %v4552_v59 = vsel %vm4510_vm9, %v4551_v46, %v4550_v51  ;;  %v1473_v35 = vld [vmem:[%s6118_s11 + $0x480] sm:$0xff]  ;;  %4999 = vmatpush.msra.mxu2 %v4057_v26  ;;  %v4055_v46 = vld [vmem:[#allocation6 + $0x118] sm:$0xff]  ;;  %v1510_v60 = vld [vmem:[%s6118_s11 + $0x5a8] sm:$0xff] }
 0x100   : > { %v3207_v38 = vpop.xlane.xlu0 %3206  ;;  %v3824_v47 = vmul.f32 0.00390625, %v3210_v37  ;;  %v1474_v37 = vld [vmem:[%s6118_s11 + $0x488] sm:$0xff]  ;;  %v1508_v26 = vld [vmem:[%s6118_s11 + $0x598] sm:$0xff] }
 0x101   : > { %v3823_v48 = vmul.f32 0.00390625, %v3207_v38  ;;  %v4557_v8 = vperm.slane %v3825_v54, %v6315_v7  ;;  %5000 = vmatpush.msra.mxu2 %v4056_v31  ;;  %v3340_v51 = vadd.f32 %v1474_v37, %v1473_v35 }
 0x102   : > { %v4555_v58 = vperm.slane %v3824_v47, %v6312_v5 }
 0x103   : > { %v4553_v53 = vperm.slane %v3823_v48, %v6302_v56  ;;  %3377 = vadd.xlane.f32.xlu2 %v3376_v40  ;;  %5001 = vmatpush.msra.mxu2 %v4055_v46 }
 0x104   : > { %3335 = vadd.xlane.f32.xlu1 %v3334_v41 }
 0x105   : > { %3311 = vadd.xlane.f32.xlu0 %v3310_v50  ;;  %v4554_v63 = vsel %vm4514_vm10, %v4553_v53, %v4552_v59  ;;  %v3382_v50 = vadd.f32 %v1502_v34, %v1501_v30  ;;  %v4053_v53 = vld [vmem:[#allocation6 + $0x108] sm:$0xff]  ;;  %5002 = vmatpush.msra.mxu2 %v4054_v52 }
 0x106   : > { %v3222_v4 = vpop.xlane.xlu2 %3221  ;;  %v4556_v18 = vsel %vm4518_vm11, %v4555_v58, %v4554_v63  ;;  %v1506_v59 = vld [vmem:[%s6118_s11 + $0x588] sm:$0xff]  ;;  %v1503_v63 = vld [vmem:[%s6118_s11 + $0x570] sm:$0xff] }
 0x107   : > { %v3219_v9 = vpop.xlane.xlu1 %3218  ;;  %v4558_v24 = vsel %vm4522_vm12, %v4557_v8, %v4556_v18  ;;  %v3828_v47 = vmul.f32 0.00390625, %v3222_v4  ;;  %5003 = vmatpush.msra.mxu2 %v4053_v53  ;;  %v1512_v53 = vld [vmem:[%s6118_s11 + $0x5b8] sm:$0xff] }
 0x108   : > { %v3216_v11 = vpop.xlane.xlu0 %3215  ;;  %v3827_v15 = vmul.f32 0.00390625, %v3219_v9 }
 0x109   : > { %v3826_v16 = vmul.f32 0.00390625, %v3216_v11  ;;  %v4563_v57 = vperm.slane %v3828_v47, %v6232_v32  ;;  %v3388_v11 = vadd.f32 %v1506_v59, %v1505_v55  ;;  %5004 = vmatpush.msra.mxu2 %v4052_v61  ;;  %v1484_v55 = vld [vmem:[%s6118_s11 + $0x4d8] sm:$0xff]  ;;  %v1509_v59 = vld [vmem:[%s6118_s11 + $0x5a0] sm:$0xff] }
 0x10a   : > { %v4561_v21 = vperm.slane %v3827_v15, %v6333_v39  ;;  %v3385_v15 = vadd.f32 %v1504_v1, %v1503_v63 }
 0x10b   : > { %v4559_v23 = vperm.slane %v3826_v16, %v6321_v22  ;;  %3380 = vadd.xlane.f32.xlu2 %v3379_v12 }
 0x10c   : > { %3338 = vadd.xlane.f32.xlu1 %v3337_v13 }
 0x10d   : > { %3314 = vadd.xlane.f32.xlu0 %v3313_v17  ;;  %v4560_v28 = vsel %vm4526_vm13, %v4559_v23, %v4558_v24  ;;  %v1482_v23 = vld [vmem:[%s6118_s11 + $0x4c8] sm:$0xff]  ;;  %v1507_v24 = vld [vmem:[%s6118_s11 + $0x590] sm:$0xff] }
 0x10e   : > { %v4562_v33 = vsel %vm4530_vm14, %v4561_v21, %v4560_v28  ;;  %v3231_v38 = vpop.xlane.xlu2 %3230  ;;  %v1481_v21 = vld [vmem:[%s6118_s11 + $0x4c0] sm:$0xff]  ;;  %v1479_v28 = vld [vmem:[%s6118_s11 + $0x4b0] sm:$0xff] }
 0x10f   : > { %4985 = vmatmul.f32.vlgmr.msra.gmra.mxu1 %v4562_v33  ;;  %v3228_v40 = vpop.xlane.xlu1 %3227  ;;  %v3831_v2 = vmul.f32 0.00390625, %v3231_v38  ;;  %v3352_v38 = vadd.f32 %v1482_v23, %v1481_v21  ;;  %v1514_v21 = vld [vmem:[%s6118_s11 + $0x5c8] sm:$0xff] }
 0x110   : > { %v3225_v41 = vpop.xlane.xlu0 %3224  ;;  %v3830_v54 = vmul.f32 0.00390625, %v3228_v40 }
 0x111   : > { %v3829_v48 = vmul.f32 0.00390625, %v3225_v41  ;;  %v4568_v16 = vperm.slane %v3831_v2, %v6247_v45  ;;  %v3391_v41 = vadd.f32 %v1508_v26, %v1507_v24  ;;  %v1485_v24 = vld [vmem:[%s6118_s11 + $0x4e0] sm:$0xff] }
 0x112   : > { %v4566_v4 = vperm.slane %v3830_v54, %v6244_v43  ;;  %v1483_v54 = vld [vmem:[%s6118_s11 + $0x4d0] sm:$0xff] }
 0x113   : > { %3344 = vadd.xlane.f32.xlu2 %v3343_v44  ;;  %v4564_v58 = vperm.slane %v3829_v48, %v6241_v42  ;;  %v3349_v44 = vadd.f32 %v1480_v29, %v1479_v28 }
 0x114   : > { %3383 = vadd.xlane.f32.xlu1 %v3382_v50 }
 0x115   : > { %3341 = vadd.xlane.f32.xlu0 %v3340_v51  ;;  %v4565_v12 = vsel %vm4474_vm0, %v4564_v58, %v4563_v57  ;;  %v1511_v51 = vld [vmem:[%s6118_s11 + $0x5b0] sm:$0xff] }
 0x116   : > { %v3240_v3 = vpop.xlane.xlu2 %3239  ;;  %v4567_v18 = vsel %vm4478_vm1, %v4566_v4, %v4565_v12  ;;  %v3397_v2 = vadd.f32 %v1512_v53, %v1511_v51  ;;  %v1516_v51 = vld [vmem:[%s6118_s11 + $0x5d8] sm:$0xff] }
 0x117   : > { %v3237_v8 = vpop.xlane.xlu1 %3236  ;;  %v3834_v25 = vmul.f32 0.00390625, %v3240_v3  ;;  %v4569_v31 = vsel %vm4482_vm2, %v4568_v16, %v4567_v18  ;;  %v3355_v3 = vadd.f32 %v1484_v55, %v1483_v54  ;;  %v1522_v18 = vld [vmem:[%s6118_s11 + $0x608] sm:$0xff]  ;;  %v1488_v54 = vld [vmem:[%s6118_s11 + $0x4f8] sm:$0xff]  ;;  %v1523_v55 = vld [vmem:[%s6118_s11 + $0x610] sm:$0xff] }
 0x118   : > { %v3234_v9 = vpop.xlane.xlu0 %3233  ;;  %v3833_v17 = vmul.f32 0.00390625, %v3237_v8 }
 0x119   : > { %v3832_v13 = vmul.f32 0.00390625, %v3234_v9  ;;  %v4574_v46 = vperm.slane %v3834_v25, %v6268_v10  ;;  %v1486_v25 = vld [vmem:[%s6118_s11 + $0x4e8] sm:$0xff] }
 0x11a   : > { %v4572_v30 = vperm.slane %v3833_v17, %v6265_v6 }
 0x11b   : > { %v4570_v20 = vperm.slane %v3832_v13, %v6258_v0  ;;  %3389 = vadd.xlane.f32.xlu2 %v3388_v11  ;;  %v3394_v11 = vadd.f32 %v1510_v60, %v1509_v59 }
 0x11c   : > { %3347 = vadd.xlane.f32.xlu1 %v3346_v14 }
 0x11d   : > { %3386 = vadd.xlane.f32.xlu0 %v3385_v15  ;;  %v4571_v34 = vsel %vm4486_vm3, %v4570_v20, %v4569_v31  ;;  %v1521_v15 = vld [vmem:[%s6118_s11 + $0x600] sm:$0xff] }
 0x11e   : > { %v3249_v33 = vpop.xlane.xlu2 %3248  ;;  %v4573_v48 = vsel %vm4490_vm4, %v4572_v30, %v4571_v34  ;;  %v1513_v20 = vld [vmem:[%s6118_s11 + $0x5c0] sm:$0xff] }
 0x11f   : > { %v3246_v35 = vpop.xlane.xlu1 %3245  ;;  %v3837_v52 = vmul.f32 0.00390625, %v3249_v33  ;;  %v4575_v58 = vsel %vm4494_vm5, %v4574_v46, %v4573_v48  ;;  %v3412_v33 = vadd.f32 %v1522_v18, %v1521_v15  ;;  %v3400_v34 = vadd.f32 %v1514_v21, %v1513_v20  ;;  %v1519_v18 = vld [vmem:[%s6118_s11 + $0x5f0] sm:$0xff]  ;;  %v1520_v20 = vld [vmem:[%s6118_s11 + $0x5f8] sm:$0xff] }
 0x120   : > { %v3243_v37 = vpop.xlane.xlu0 %3242  ;;  %v3836_v47 = vmul.f32 0.00390625, %v3246_v35  ;;  %v1555_v21 = vld [vmem:[%s6118_s11 + $0x710] sm:$0xff] }
 0x121   : > { %v3835_v40 = vmul.f32 0.00390625, %v3243_v37  ;;  %v4580_v4 = vperm.slane %v3837_v52, %v6290_v36  ;;  %v1487_v52 = vld [vmem:[%s6118_s11 + $0x4f0] sm:$0xff] }
 0x122   : > { %v4578_v57 = vperm.slane %v3836_v47, %v6283_v27 }
 0x123   : > { %v4576_v50 = vperm.slane %v3835_v40, %v6274_v19  ;;  %3353 = vadd.xlane.f32.xlu2 %v3352_v38  ;;  %v3358_v38 = vadd.f32 %v1486_v25, %v1485_v24  ;;  %v1556_v24 = vld [vmem:[%s6118_s11 + $0x718] sm:$0xff]  ;;  %v1553_v25 = vld [vmem:[%s6118_s11 + $0x700] sm:$0xff] }
 0x124   : > { %3392 = vadd.xlane.f32.xlu1 %v3391_v41 }
 0x125   : > { %3350 = vadd.xlane.f32.xlu0 %v3349_v44  ;;  %v4577_v61 = vsel %vm4498_vm6, %v4576_v50, %v4575_v58  ;;  %v1515_v50 = vld [vmem:[%s6118_s11 + $0x5d0] sm:$0xff] }
 0x126   : > { %v3258_v62 = vpop.xlane.xlu2 %3257  ;;  %v4579_v12 = vsel %vm4502_vm7, %v4578_v57, %v4577_v61  ;;  %v1524_v57 = vld [vmem:[%s6118_s11 + $0x618] sm:$0xff] }
 0x127   : > { %v3255_v63 = vpop.xlane.xlu1 %3254  ;;  %v3840_v14 = vmul.f32 0.00390625, %v3258_v62  ;;  %v4581_v17 = vsel %vm4506_vm8, %v4580_v4, %v4579_v12  ;;  %v3403_v62 = vadd.f32 %v1516_v51, %v1515_v50  ;;  %v1517_v4 = vld [vmem:[%s6118_s11 + $0x5e0] sm:$0xff]  ;;  %v1530_v50 = vld [vmem:[%s6118_s11 + $0x648] sm:$0xff] }
 0x128   : > { %v3252_v1 = vpop.xlane.xlu0 %3251  ;;  %v3839_v8 = vmul.f32 0.00390625, %v3255_v63  ;;  %v3361_v63 = vadd.f32 %v1488_v54, %v1487_v52 }
 0x129   : > { %v3838_v9 = vmul.f32 0.00390625, %v3252_v1  ;;  %v4586_v28 = vperm.slane %v3840_v14, %v6312_v5  ;;  %v3415_v1 = vadd.f32 %v1524_v57, %v1523_v55  ;;  %v4078_v55 = vld [vmem:[#allocation6 + $0x1d0] sm:$0xff] }
 0x12a   : > { %v4584_v16 = vperm.slane %v3839_v8, %v6302_v56  ;;  %v1518_v8 = vld [vmem:[%s6118_s11 + $0x5e8] sm:$0xff] }
 0x12b   : > { %v4582_v13 = vperm.slane %v3838_v9, %v6295_v49  ;;  %3398 = vadd.xlane.f32.xlu2 %v3397_v2  ;;  %v1527_v2 = vld [vmem:[%s6118_s11 + $0x630] sm:$0xff]  ;;  %v1525_v9 = vld [vmem:[%s6118_s11 + $0x620] sm:$0xff] }
 0x12c   : > { %3356 = vadd.xlane.f32.xlu1 %v3355_v3  ;;  %v1528_v3 = vld [vmem:[%s6118_s11 + $0x638] sm:$0xff] }
 0x12d   : > { %3395 = vadd.xlane.f32.xlu0 %v3394_v11  ;;  %v4583_v23 = vsel %vm4510_vm9, %v4582_v13, %v4581_v17  ;;  %v1526_v11 = vld [vmem:[%s6118_s11 + $0x628] sm:$0xff]  ;;  %v3421_v15 = vadd.f32 %v1528_v3, %v1527_v2  ;;  %v1533_v3 = vld [vmem:[%s6118_s11 + $0x660] sm:$0xff] }
 0x12e   : > { %v3267_v26 = vpop.xlane.xlu2 %3266  ;;  %v4585_v40 = vsel %vm4514_vm10, %v4584_v16, %v4583_v23  ;;  %v3406_v16 = vadd.f32 %v1518_v8, %v1517_v4  ;;  %v3418_v17 = vadd.f32 %v1526_v11, %v1525_v9  ;;  %v4083_v23 = vld [vmem:[#allocation6 + $0x1f8] sm:$0xff]  ;;  %v1562_v2 = vld [vmem:[%s6118_s11 + $0x748] sm:$0xff]  ;;  %v1559_v9 = vld [vmem:[%s6118_s11 + $0x730] sm:$0xff] }
 0x12f   : > { %v3843_v29 = vmul.f32 0.00390625, %v3267_v26  ;;  %v3264_v30 = vpop.xlane.xlu1 %3263  ;;  %v4587_v47 = vsel %vm4518_vm11, %v4586_v28, %v4585_v40  ;;  %v1554_v26 = vld [vmem:[%s6118_s11 + $0x708] sm:$0xff]  ;;  %5009 = vmatpush.msra.mxu3 %v4083_v23  ;;  %v4080_v40 = vld [vmem:[#allocation6 + $0x1e0] sm:$0xff]  ;;  %v4075_v4 = vld [vmem:[#allocation6 + $0x1b8] sm:$0xff] }
 0x130   : > { %v3261_v31 = vpop.xlane.xlu0 %3260  ;;  %v3842_v35 = vmul.f32 0.00390625, %v3264_v30  ;;  %v1534_v8 = vld [vmem:[%s6118_s11 + $0x668] sm:$0xff]  ;;  %v1560_v11 = vld [vmem:[%s6118_s11 + $0x738] sm:$0xff] }
 0x131   : > { %v3841_v37 = vmul.f32 0.00390625, %v3261_v31  ;;  %v4592_v41 = vperm.slane %v3843_v29, %v6333_v39  ;;  %v3409_v31 = vadd.f32 %v1520_v20, %v1519_v18  ;;  %v4074_v20 = vld [vmem:[#allocation6 + $0x1b0] sm:$0xff]  ;;  %v3469_v23 = vadd.f32 %v1560_v11, %v1559_v9  ;;  %v1566_v9 = vld [vmem:[%s6118_s11 + $0x768] sm:$0xff] }
 0x132   : > { %v4590_v44 = vperm.slane %v3842_v35, %v6321_v22  ;;  %v3460_v35 = vadd.f32 %v1554_v26, %v1553_v25  ;;  %v1537_v25 = vld [vmem:[%s6118_s11 + $0x680] sm:$0xff] }
 0x133   : > { %v4588_v46 = vperm.slane %v3841_v37, %v6315_v7  ;;  %3413 = vadd.xlane.f32.xlu2 %v3412_v33  ;;  %v4082_v33 = vld [vmem:[#allocation6 + $0x1f0] sm:$0xff]  ;;  %v4081_v37 = vld [vmem:[#allocation6 + $0x1e8] sm:$0xff]  ;;  %v4072_v26 = vld [vmem:[#allocation6 + $0x1a0] sm:$0xff] }
 0x134   : > { %3401 = vadd.xlane.f32.xlu1 %v3400_v34  ;;  %v3463_v34 = vadd.f32 %v1556_v24, %v1555_v21  ;;  %5010 = vmatpush.msra.mxu3 %v4082_v33  ;;  %v3430_v21 = vadd.f32 %v1534_v8, %v1533_v3  ;;  %v4073_v24 = vld [vmem:[#allocation6 + $0x1a8] sm:$0xff]  ;;  %v1563_v33 = vld [vmem:[%s6118_s11 + $0x750] sm:$0xff]  ;;  %v1565_v8 = vld [vmem:[%s6118_s11 + $0x760] sm:$0xff] }
 0x135   : > { %3359 = vadd.xlane.f32.xlu0 %v3358_v38  ;;  %v4589_v48 = vsel %vm4522_vm12, %v4588_v46, %v4587_v47  ;;  %v1531_v38 = vld [vmem:[%s6118_s11 + $0x650] sm:$0xff]  ;;  %v4079_v46 = vld [vmem:[#allocation6 + $0x1d8] sm:$0xff]  ;;  %v1558_v47 = vld [vmem:[%s6118_s11 + $0x728] sm:$0xff] }
 0x136   : > { %v4591_v53 = vsel %vm4526_vm13, %v4590_v44, %v4589_v48  ;;  %v6467_v58 = vpop.xlane.xlu2 %3275  ;;  %5011 = vmatpush.msra.mxu3 %v4081_v37  ;;  %v1557_v44 = vld [vmem:[%s6118_s11 + $0x720] sm:$0xff]  ;;  %v1535_v37 = vld [vmem:[%s6118_s11 + $0x670] sm:$0xff] }
 0x137   : > { %v4593_v59 = vsel %vm4530_vm14, %v4592_v41, %v4591_v53  ;;  %v6470_v60 = vpop.xlane.xlu1 %3272  ;;  %v1532_v41 = vld [vmem:[%s6118_s11 + $0x658] sm:$0xff]  ;;  %v1529_v48 = vld [vmem:[%s6118_s11 + $0x640] sm:$0xff]  ;;  %v3466_v57 = vadd.f32 %v1558_v47, %v1557_v44  ;;  %v4070_v47 = vld [vmem:[#allocation6 + $0x190] sm:$0xff] }
 0x138   : > { %5005 = vmatmul.f32.vlgmr.msra.gmra.mxu2 %v4593_v59  ;;  %v6472_v61 = vpop.xlane.xlu0 %3269  ;;  %5012 = vmatpush.msra.mxu3 %v4080_v40  ;;  %v3427_v54 = vadd.f32 %v1532_v41, %v1531_v38  ;;  %v3424_v59 = vadd.f32 %v1530_v50, %v1529_v48  ;;  %v1536_v38 = vld [vmem:[%s6118_s11 + $0x678] sm:$0xff]  ;;  %v3845_v48 = vmul.f32 0.00390625, %v6470_v60  ;;  %v1539_v3 = vld [vmem:[%s6118_s11 + $0x690] sm:$0xff] }
 0x139   : > { %v3844_v50 = vmul.f32 0.00390625, %v6472_v61  ;;  %v1567_v61 = vld [vmem:[%s6118_s11 + $0x770] sm:$0xff] }
 0x13a   : > { %5013 = vmatpush.msra.mxu3 %v4079_v46 }
 0x13b   : > { %3404 = vadd.xlane.f32.xlu2 %v3403_v62  ;;  %v4077_v62 = vld [vmem:[#allocation6 + $0x1c8] sm:$0xff]  ;;  %v4594_v60 = vperm.slane %v3844_v50, %v6232_v32 }
 0x13c   : > { %3362 = vadd.xlane.f32.xlu1 %v3361_v63  ;;  %5014 = vmatpush.msra.mxu3 %v4078_v55  ;;  %v1561_v63 = vld [vmem:[%s6118_s11 + $0x740] sm:$0xff]  ;;  %v3433_v55 = vadd.f32 %v1536_v38, %v1535_v37  ;;  %v1542_v38 = vld [vmem:[%s6118_s11 + $0x6a8] sm:$0xff] }
 0x13d   : > { %3416 = vadd.xlane.f32.xlu0 %v3415_v1  ;;  %v4076_v1 = vld [vmem:[#allocation6 + $0x1c0] sm:$0xff]  ;;  %v3472_v18 = vadd.f32 %v1562_v2, %v1561_v63  ;;  %v4595_v63 = vperm.slane %v3845_v48, %v6241_v42  ;;  %v1568_v2 = vld [vmem:[%s6118_s11 + $0x778] sm:$0xff]  ;;  %v1650_v50 = vld [vmem:[%s6118_s11 + $0xa08] sm:$0xff] }
 0x13e   : > { %v6480_v12 = vpop.xlane.xlu2 %3284  ;;  %5015 = vmatpush.msra.mxu3 %v4077_v62  ;;  %v4068_v62 = vld [vmem:[#allocation6 + $0x180] sm:$0xff] }
 0x13f   : > { %v6482_v13 = vpop.xlane.xlu1 %3281  ;;  %v1541_v37 = vld [vmem:[%s6118_s11 + $0x6a0] sm:$0xff] }
 0x140   : > { %v6484_v14 = vpop.xlane.xlu0 %3278  ;;  %5016 = vmatpush.msra.mxu3 %v4076_v1  ;;  %v1649_v48 = vld [vmem:[%s6118_s11 + $0xa00] sm:$0xff] }
 0x141   : > { %v3847_v1 = vmul.f32 0.00390625, %v6484_v14 }
 0x142   : > { %5017 = vmatpush.msra.mxu3 %v4075_v4  ;;  %v1540_v4 = vld [vmem:[%s6118_s11 + $0x698] sm:$0xff] }
 0x143   : > { %3422 = vadd.xlane.f32.xlu2 %v3421_v15 }
 0x144   : > { %3407 = vadd.xlane.f32.xlu1 %v3406_v16  ;;  %5018 = vmatpush.msra.mxu3 %v4074_v20 }
 0x145   : > { %3419 = vadd.xlane.f32.xlu0 %v3418_v17 }
 0x146   : > { %v6492_v28 = vpop.xlane.xlu2 %3293  ;;  %5019 = vmatpush.msra.mxu3 %v4073_v24  ;;  %v4599_v24 = vperm.slane %v3847_v1, %v6247_v45  ;;  %v3604_v1 = vadd.f32 %v1650_v50, %v1649_v48  ;;  %v4097_v50 = vld [vmem:[#allocation6 + $0x268] sm:$0xff] }
 0x147   : > { %v6494_v29 = vpop.xlane.xlu1 %3290 }
 0x148   : > { %v6496_v30 = vpop.xlane.xlu0 %3287  ;;  %5020 = vmatpush.msra.mxu3 %v4072_v26  ;;  %v3478_v26 = vadd.f32 %v1566_v9, %v1565_v8  ;;  %v1543_v8 = vld [vmem:[%s6118_s11 + $0x6b0] sm:$0xff]  ;;  %v1544_v9 = vld [vmem:[%s6118_s11 + $0x6b8] sm:$0xff] }
 0x14b   : > { %3410 = vadd.xlane.f32.xlu2 %v3409_v31  ;;  %v1538_v31 = vld [vmem:[%s6118_s11 + $0x688] sm:$0xff] }
 0x14c   : > { %3464 = vadd.xlane.f32.xlu1 %v3463_v34  ;;  %v4071_v34 = vld [vmem:[#allocation6 + $0x198] sm:$0xff]  ;;  %v3436_v46 = vadd.f32 %v1538_v31, %v1537_v25  ;;  %v3439_v25 = vadd.f32 %v1540_v4, %v1539_v3  ;;  %v3849_v31 = vmul.f32 0.00390625, %v6480_v12  ;;  %v3851_v12 = vmul.f32 0.00390625, %v6494_v29 }
 0x14d   : > { %3461 = vadd.xlane.f32.xlu0 %v3460_v35  ;;  %v1564_v35 = vld [vmem:[%s6118_s11 + $0x758] sm:$0xff]  ;;  %5021 = vmatpush.msra.mxu3 %v4071_v34  ;;  %v3850_v34 = vmul.f32 0.00390625, %v6496_v30 }
 0x14e   : > { %v6504_v51 = vpop.xlane.xlu2 %3302  ;;  %v4607_v29 = vperm.slane %v3851_v12, %v6274_v19 }
 0x14f   : > { %v6506_v52 = vpop.xlane.xlu1 %3299  ;;  %5022 = vmatpush.msra.mxu3 %v4070_v47  ;;  %v1652_v47 = vld [vmem:[%s6118_s11 + $0xa18] sm:$0xff] }
 0x150   : > { %v6508_v53 = vpop.xlane.xlu0 %3296 }
 0x151   : > { %v3853_v3 = vmul.f32 0.00390625, %v6508_v53 }
 0x153   : > { %3428 = vadd.xlane.f32.xlu2 %v3427_v54  ;;  %v3475_v54 = vadd.f32 %v1564_v35, %v1563_v33  ;;  %v4611_v53 = vperm.slane %v3853_v3, %v6290_v36  ;;  %v1571_v3 = vld [vmem:[%s6118_s11 + $0x790] sm:$0xff] }
 0x154   : > { %3467 = vadd.xlane.f32.xlu1 %v3466_v57  ;;  %v4069_v57 = vld [vmem:[#allocation6 + $0x188] sm:$0xff] }
 0x155   : > { %3425 = vadd.xlane.f32.xlu0 %v3424_v59  ;;  %v3846_v59 = vmul.f32 0.00390625, %v6467_v58  ;;  %5023 = vmatpush.msra.mxu3 %v4069_v57  ;;  %v4605_v57 = vperm.slane %v3850_v34, %v6268_v10  ;;  %v3445_v34 = vadd.f32 %v1544_v9, %v1543_v8 }
 0x156   : > { %v6516_v15 = vpop.xlane.xlu2 %3320 }
 0x157   : > { %v6518_v16 = vpop.xlane.xlu1 %3317  ;;  %5024 = vmatpush.msra.mxu3 %v4068_v62  ;;  %v4597_v58 = vperm.slane %v3846_v59, %v6244_v43 }
 0x158   : > { %v6520_v17 = vpop.xlane.xlu0 %3305 }
 0x159   : > { %v3856_v48 = vmul.f32 0.00390625, %v6520_v17 }
 0x15b   : > { %3473 = vadd.xlane.f32.xlu2 %v3472_v18  ;;  %v3848_v18 = vmul.f32 0.00390625, %v6482_v13 }
 0x15c   : > { %3431 = vadd.xlane.f32.xlu1 %v3430_v21  ;;  %v3481_v21 = vadd.f32 %v1568_v2, %v1567_v61  ;;  %v3852_v61 = vmul.f32 0.00390625, %v6492_v28  ;;  %v3854_v28 = vmul.f32 0.00390625, %v6506_v52 }
 0x15d   : > { %3470 = vadd.xlane.f32.xlu0 %v3469_v23  ;;  %v4596_v23 = vsel %vm4474_vm0, %v4595_v63, %v4594_v60  ;;  %v4601_v13 = vperm.slane %v3848_v18, %v6258_v0  ;;  %v3442_v63 = vadd.f32 %v1542_v38, %v1541_v37  ;;  %v4099_v18 = vld [vmem:[#allocation6 + $0x278] sm:$0xff]  ;;  %v3855_v37 = vmul.f32 0.00390625, %v6504_v51 }
 0x15e   : > { %v6528_v40 = vpop.xlane.xlu2 %3365  ;;  %v4598_v33 = vsel %vm4478_vm1, %v4597_v58, %v4596_v23  ;;  %v1653_v58 = vld [vmem:[%s6118_s11 + $0xa20] sm:$0xff]  ;;  %v1654_v23 = vld [vmem:[%s6118_s11 + $0xa28] sm:$0xff]  ;;  %5029 = vmatpush.msrb.mxu0 %v4099_v18 }
 0x15f   : > { %v6530_v41 = vpop.xlane.xlu1 %3326  ;;  %v4600_v35 = vsel %vm4482_vm2, %v4599_v24, %v4598_v33  ;;  %v1569_v24 = vld [vmem:[%s6118_s11 + $0x780] sm:$0xff]  ;;  %v3610_v38 = vadd.f32 %v1654_v23, %v1653_v58 }
 0x160   : > { %v6532_v44 = vpop.xlane.xlu0 %3323  ;;  %v4602_v30 = vsel %vm4486_vm3, %v4601_v13, %v4600_v35  ;;  %v4098_v35 = vld [vmem:[#allocation6 + $0x270] sm:$0xff] }
 0x161   : > { %5030 = vmatpush.msrb.mxu0 %v4098_v35 }
 0x163   : > { %3437 = vadd.xlane.f32.xlu2 %v3436_v46  ;;  %v1651_v46 = vld [vmem:[%s6118_s11 + $0xa10] sm:$0xff]  ;;  %5031 = vmatpush.msrb.mxu0 %v4097_v50  ;;  %v4091_v50 = vld [vmem:[#allocation6 + $0x238] sm:$0xff] }
 0x164   : > { %3476 = vadd.xlane.f32.xlu1 %v3475_v54  ;;  %v4603_v54 = vperm.slane %v3849_v31, %v6265_v6  ;;  %v3607_v60 = vadd.f32 %v1652_v47, %v1651_v46  ;;  %v4613_v46 = vperm.slane %v3854_v28, %v6295_v49  ;;  %v4094_v28 = vld [vmem:[#allocation6 + $0x250] sm:$0xff] }
 0x165   : > { %3434 = vadd.xlane.f32.xlu0 %v3433_v55 }
 0x166   : > { %v6546_v11 = vpop.xlane.xlu2 %3371  ;;  %v4604_v2 = vsel %vm4490_vm4, %v4603_v54, %v4602_v30  ;;  %v1587_v30 = vld [vmem:[%s6118_s11 + $0x810] sm:$0xff] }
 0x167   : > { %v6550_v20 = vpop.xlane.xlu1 %3329  ;;  %v4606_v4 = vsel %vm4494_vm5, %v4605_v57, %v4604_v2  ;;  %v4096_v57 = vld [vmem:[#allocation6 + $0x260] sm:$0xff]  ;;  %v1586_v2 = vld [vmem:[%s6118_s11 + $0x808] sm:$0xff] }
 0x168   : > { %v6552_v14 = vpop.xlane.xlu0 %3368  ;;  %5032 = vmatpush.msrb.mxu0 %v4096_v57 }
 0x16b   : > { %3482 = vadd.xlane.f32.xlu2 %v3481_v21  ;;  %v4609_v21 = vperm.slane %v3852_v61, %v6283_v27  ;;  %v4095_v61 = vld [vmem:[#allocation6 + $0x258] sm:$0xff] }
 0x16c   : > { %3440 = vadd.xlane.f32.xlu1 %v3439_v25  ;;  %v1570_v25 = vld [vmem:[%s6118_s11 + $0x788] sm:$0xff]  ;;  %5033 = vmatpush.msrb.mxu0 %v4095_v61  ;;  %v4090_v61 = vld [vmem:[#allocation6 + $0x230] sm:$0xff] }
 0x16d   : > { %3479 = vadd.xlane.f32.xlu0 %v3478_v26  ;;  %v4608_v26 = vsel %vm4498_vm6, %v4607_v29, %v4606_v4  ;;  %v3484_v52 = vadd.f32 %v1570_v25, %v1569_v24  ;;  %v4617_v29 = vperm.slane %v3856_v48, %v6312_v5  ;;  %v1681_v48 = vld [vmem:[%s6118_s11 + $0xb00] sm:$0xff] }
 0x16e   : > { %v6569_v55 = vpop.xlane.xlu2 %3374  ;;  %v4610_v47 = vsel %vm4502_vm7, %v4609_v21, %v4608_v26  ;;  %5034 = vmatpush.msrb.mxu0 %v4094_v28  ;;  %v1573_v28 = vld [vmem:[%s6118_s11 + $0x7a0] sm:$0xff] }
 0x16f   : > { %v6573_v59 = vpop.xlane.xlu1 %3332  ;;  %v4612_v54 = vsel %vm4506_vm8, %v4611_v53, %v4610_v47 }
 0x170   : > { %v3309_v62 = vpop.xlane.xlu0 %3308  ;;  %v4614_v17 = vsel %vm4510_vm9, %v4613_v46, %v4612_v54  ;;  %v4092_v46 = vld [vmem:[#allocation6 + $0x240] sm:$0xff]  ;;  %v4115_v54 = vld [vmem:[#allocation6 + $0x2f8] sm:$0xff] }
 0x171   : > { %v3857_v12 = vmul.f32 0.00390625, %v3309_v62  ;;  %v1572_v62 = vld [vmem:[%s6118_s11 + $0x798] sm:$0xff]  ;;  %5049 = vmatpush.msrb.mxu1 %v4115_v54  ;;  %v1547_v54 = vld [vmem:[%s6118_s11 + $0x6d0] sm:$0xff] }
 0x172   : > { %v3487_v25 = vadd.f32 %v1572_v62, %v1571_v3  ;;  %v4089_v3 = vld [vmem:[#allocation6 + $0x228] sm:$0xff] }
 0x173   : > { %3443 = vadd.xlane.f32.xlu2 %v3442_v63  ;;  %v4615_v63 = vperm.slane %v3855_v37, %v6302_v56  ;;  %v4619_v4 = vperm.slane %v3857_v12, %v6315_v7  ;;  %v1682_v12 = vld [vmem:[%s6118_s11 + $0xb08] sm:$0xff] }
 0x174   : > { %3608 = vadd.xlane.f32.xlu1 %v3607_v60  ;;  %v1588_v60 = vld [vmem:[%s6118_s11 + $0x818] sm:$0xff]  ;;  %v4113_v62 = vld [vmem:[#allocation6 + $0x2e8] sm:$0xff] }
 0x175   : > { %3605 = vadd.xlane.f32.xlu0 %v3604_v1  ;;  %v1585_v1 = vld [vmem:[%s6118_s11 + $0x800] sm:$0xff]  ;;  %v3511_v21 = vadd.f32 %v1588_v60, %v1587_v30  ;;  %v4616_v26 = vsel %vm4514_vm10, %v4615_v63, %v4614_v17  ;;  %v1656_v30 = vld [vmem:[%s6118_s11 + $0xa38] sm:$0xff]  ;;  %v4114_v17 = vld [vmem:[#allocation6 + $0x2f0] sm:$0xff] }
 0x176   : > { %v6590_v31 = vpop.xlane.xlu2 %3377  ;;  %v3508_v24 = vadd.f32 %v1586_v2, %v1585_v1  ;;  %v4618_v53 = vsel %vm4518_vm11, %v4617_v29, %v4616_v26  ;;  %v3652_v29 = vadd.f32 %v1682_v12, %v1681_v48  ;;  %5050 = vmatpush.msrb.mxu1 %v4114_v17  ;;  %v1545_v26 = vld [vmem:[%s6118_s11 + $0x6c0] sm:$0xff]  ;;  %v4085_v48 = vld [vmem:[#allocation6 + $0x208] sm:$0xff] }
 0x177   : > { %v6592_v13 = vpop.xlane.xlu1 %3335  ;;  %v4620_v35 = vsel %vm4522_vm12, %v4619_v4, %v4618_v53  ;;  %v1589_v4 = vld [vmem:[%s6118_s11 + $0x820] sm:$0xff]  ;;  %v1546_v53 = vld [vmem:[%s6118_s11 + $0x6c8] sm:$0xff] }
 0x178   : > { %v3312_v33 = vpop.xlane.xlu0 %3311  ;;  %5051 = vmatpush.msrb.mxu1 %v4113_v62  ;;  %v4084_v12 = vld [vmem:[#allocation6 + $0x200] sm:$0xff]  ;;  %v3861_v62 = vmul.f32 0.00390625, %v6516_v15 }
 0x179   : > { %v3858_v51 = vmul.f32 0.00390625, %v3312_v33  ;;  %v4093_v33 = vld [vmem:[#allocation6 + $0x248] sm:$0xff]  ;;  %v1657_v17 = vld [vmem:[%s6118_s11 + $0xa40] sm:$0xff] }
 0x17a   : > { %5035 = vmatpush.msrb.mxu0 %v4093_v33  ;;  %v4626_v15 = vperm.slane %v3861_v62, %v6241_v42 }
 0x17b   : > { %3446 = vadd.xlane.f32.xlu2 %v3445_v34  ;;  %v4621_v9 = vperm.slane %v3858_v51, %v6321_v22  ;;  %v1655_v51 = vld [vmem:[%s6118_s11 + $0xa30] sm:$0xff] }
 0x17c   : > { %3611 = vadd.xlane.f32.xlu1 %v3610_v38  ;;  %v1683_v38 = vld [vmem:[%s6118_s11 + $0xb10] sm:$0xff]  ;;  %5036 = vmatpush.msrb.mxu0 %v4092_v46  ;;  %v3613_v2 = vadd.f32 %v1656_v30, %v1655_v51  ;;  %v1548_v51 = vld [vmem:[%s6118_s11 + $0x6d8] sm:$0xff]  ;;  %v1685_v30 = vld [vmem:[%s6118_s11 + $0xb20] sm:$0xff] }
 0x17d   : > { %3485 = vadd.xlane.f32.xlu0 %v3484_v52  ;;  %v4622_v37 = vsel %vm4526_vm13, %v4621_v9, %v4620_v35  ;;  %v1684_v52 = vld [vmem:[%s6118_s11 + $0xb18] sm:$0xff]  ;;  %v1590_v9 = vld [vmem:[%s6118_s11 + $0x828] sm:$0xff] }
 0x17e   : > { %v6609_v8 = vpop.xlane.xlu2 %3380  ;;  %v3655_v1 = vadd.f32 %v1684_v52, %v1683_v38  ;;  %5037 = vmatpush.msrb.mxu0 %v4091_v50  ;;  %v4086_v38 = vld [vmem:[#allocation6 + $0x210] sm:$0xff]  ;;  %v4109_v50 = vld [vmem:[#allocation6 + $0x2c8] sm:$0xff] }
 0x17f   : > { %v6612_v58 = vpop.xlane.xlu1 %3338  ;;  %v4110_v52 = vld [vmem:[#allocation6 + $0x2d0] sm:$0xff] }
 0x180   : > { %v3315_v18 = vpop.xlane.xlu0 %3314  ;;  %5038 = vmatpush.msrb.mxu0 %v4090_v61  ;;  %v1686_v61 = vld [vmem:[%s6118_s11 + $0xb28] sm:$0xff]  ;;  %v3867_v62 = vmul.f32 0.00390625, %v6612_v58 }
 0x181   : > { %v3859_v23 = vmul.f32 0.00390625, %v3315_v18  ;;  %v4088_v18 = vld [vmem:[#allocation6 + $0x220] sm:$0xff] }
 0x182   : > { %5039 = vmatpush.msrb.mxu0 %v4089_v3  ;;  %v4107_v3 = vld [vmem:[#allocation6 + $0x2b8] sm:$0xff] }
 0x183   : > { %v4623_v34 = vperm.slane %v3859_v23, %v6333_v39  ;;  %3512 = vadd.xlane.f32.xlu2 %v3511_v21  ;;  %v4112_v21 = vld [vmem:[#allocation6 + $0x2e0] sm:$0xff]  ;;  %v4087_v23 = vld [vmem:[#allocation6 + $0x218] sm:$0xff] }
 0x184   : > { %3509 = vadd.xlane.f32.xlu1 %v3508_v24  ;;  %v4111_v24 = vld [vmem:[#allocation6 + $0x2d8] sm:$0xff]  ;;  %5040 = vmatpush.msrb.mxu0 %v4088_v18 }
 0x185   : > { %3488 = vadd.xlane.f32.xlu0 %v3487_v25  ;;  %v4624_v47 = vsel %vm4530_vm14, %v4623_v34, %v4622_v37  ;;  %v1574_v25 = vld [vmem:[%s6118_s11 + $0x7a8] sm:$0xff]  ;;  %5052 = vmatpush.msrb.mxu1 %v4112_v21  ;;  %v3514_v37 = vadd.f32 %v1590_v9, %v1589_v4  ;;  %v3860_v4 = vmul.f32 0.00390625, %v6518_v16  ;;  %v3451_v21 = vadd.f32 %v1548_v51, %v1547_v54  ;;  %v1576_v54 = vld [vmem:[%s6118_s11 + $0x7b8] sm:$0xff] }
 0x186   : > { %5025 = vmatmul.f32.vlgmr.msra.gmra.mxu3 %v4624_v47  ;;  %v6626_v57 = vpop.xlane.xlu2 %3344  ;;  %5041 = vmatpush.msrb.mxu0 %v4087_v23  ;;  %v3490_v46 = vadd.f32 %v1574_v25, %v1573_v28  ;;  %v3448_v47 = vadd.f32 %v1546_v53, %v1545_v26  ;;  %v3658_v28 = vadd.f32 %v1686_v61, %v1685_v30  ;;  %v3862_v25 = vmul.f32 0.00390625, %v6532_v44  ;;  %v4105_v26 = vld [vmem:[#allocation6 + $0x2a8] sm:$0xff]  ;;  %v1617_v53 = vld [vmem:[%s6118_s11 + $0x900] sm:$0xff]  ;;  %v4103_v30 = vld [vmem:[#allocation6 + $0x298] sm:$0xff] }
 0x187   : > { %v6628_v63 = vpop.xlane.xlu1 %3383  ;;  %5053 = vmatpush.msrb.mxu1 %v4111_v24  ;;  %v4106_v24 = vld [vmem:[#allocation6 + $0x2b0] sm:$0xff]  ;;  %v4625_v16 = vperm.slane %v3860_v4, %v6232_v32  ;;  %v3866_v61 = vmul.f32 0.00390625, %v6592_v13 }
 0x188   : > { %v6630_v60 = vpop.xlane.xlu0 %3341  ;;  %5042 = vmatpush.msrb.mxu0 %v4086_v38  ;;  %v1618_v38 = vld [vmem:[%s6118_s11 + $0x908] sm:$0xff]  ;;  %v4628_v44 = vperm.slane %v3862_v25, %v6244_v43 }
 0x189   : > { %5054 = vmatpush.msrb.mxu1 %v4110_v52  ;;  %v1591_v52 = vld [vmem:[%s6118_s11 + $0x830] sm:$0xff]  ;;  %v3868_v13 = vmul.f32 0.00390625, %v6630_v60  ;;  %v4101_v25 = vld [vmem:[#allocation6 + $0x288] sm:$0xff]  ;;  %v4636_v58 = vperm.slane %v3866_v61, %v6268_v10  ;;  %v4638_v60 = vperm.slane %v3867_v62, %v6274_v19 }
 0x18a   : > { %5043 = vmatpush.msrb.mxu0 %v4085_v48  ;;  %v1592_v48 = vld [vmem:[%s6118_s11 + $0x838] sm:$0xff] }
 0x18b   : > { %3656 = vadd.xlane.f32.xlu2 %v3655_v1  ;;  %v4108_v1 = vld [vmem:[#allocation6 + $0x2c0] sm:$0xff]  ;;  %5055 = vmatpush.msrb.mxu1 %v4109_v50  ;;  %v1575_v50 = vld [vmem:[%s6118_s11 + $0x7b0] sm:$0xff] }
 0x18c   : > { %3653 = vadd.xlane.f32.xlu1 %v3652_v29  ;;  %v1658_v29 = vld [vmem:[%s6118_s11 + $0xa48] sm:$0xff]  ;;  %5044 = vmatpush.msrb.mxu0 %v4084_v12  ;;  %v3865_v12 = vmul.f32 0.00390625, %v6573_v59  ;;  %v3517_v59 = vadd.f32 %v1592_v48, %v1591_v52  ;;  %v3493_v4 = vadd.f32 %v1576_v54, %v1575_v50  ;;  %v1660_v48 = vld [vmem:[%s6118_s11 + $0xa58] sm:$0xff]  ;;  %v1619_v50 = vld [vmem:[%s6118_s11 + $0x910] sm:$0xff] }
 0x18d   : > { %3614 = vadd.xlane.f32.xlu0 %v3613_v2  ;;  %5056 = vmatpush.msrb.mxu1 %v4108_v1  ;;  %v3616_v23 = vadd.f32 %v1658_v29, %v1657_v17  ;;  %v3876_v1 = vmul.f32 0.00390625, %v6528_v40  ;;  %v3877_v40 = vmul.f32 0.00390625, %v6552_v14  ;;  %v1620_v54 = vld [vmem:[%s6118_s11 + $0x918] sm:$0xff] }
 0x18e   : > { %v6638_v33 = vpop.xlane.xlu2 %3389 }
 0x18f   : > { %v6640_v34 = vpop.xlane.xlu1 %3347  ;;  %5057 = vmatpush.msrb.mxu1 %v4107_v3  ;;  %v3556_v3 = vadd.f32 %v1618_v38, %v1617_v53  ;;  %v4656_v14 = vperm.slane %v3876_v1, %v6232_v32  ;;  %v3869_v53 = vmul.f32 0.00390625, %v6626_v57  ;;  %v4100_v38 = vld [vmem:[#allocation6 + $0x280] sm:$0xff] }
 0x190   : > { %v6642_v35 = vpop.xlane.xlu0 %3386 }
 0x191   : > { %5058 = vmatpush.msrb.mxu1 %v4106_v24  ;;  %v4634_v24 = vperm.slane %v3865_v12, %v6265_v6  ;;  %v3879_v12 = vmul.f32 0.00390625, %v6569_v55 }
 0x193   : > { %3515 = vadd.xlane.f32.xlu2 %v3514_v37  ;;  %v3863_v37 = vmul.f32 0.00390625, %v6530_v41  ;;  %5059 = vmatpush.msrb.mxu1 %v4105_v26  ;;  %v4627_v41 = vsel %vm4474_vm0, %v4626_v15, %v4625_v16  ;;  %v3878_v26 = vmul.f32 0.00390625, %v6546_v11  ;;  %v1687_v15 = vld [vmem:[%s6118_s11 + $0xb30] sm:$0xff] }
 0x194   : > { %3491 = vadd.xlane.f32.xlu1 %v3490_v46  ;;  %v4104_v46 = vld [vmem:[#allocation6 + $0x2a0] sm:$0xff]  ;;  %v1659_v11 = vld [vmem:[%s6118_s11 + $0xa50] sm:$0xff] }
 0x195   : > { %3449 = vadd.xlane.f32.xlu0 %v3448_v47  ;;  %v3864_v47 = vmul.f32 0.00390625, %v6550_v20  ;;  %5060 = vmatpush.msrb.mxu1 %v4104_v46  ;;  %v4630_v20 = vperm.slane %v3863_v37, %v6247_v45  ;;  %v1688_v37 = vld [vmem:[%s6118_s11 + $0xb38] sm:$0xff]  ;;  %v4657_v46 = vperm.slane %v3877_v40, %v6241_v42  ;;  %v4659_v1 = vperm.slane %v3878_v26, %v6244_v43 }
 0x196   : > { %v6650_v2 = vpop.xlane.xlu2 %3353  ;;  %v3661_v62 = vadd.f32 %v1688_v37, %v1687_v15  ;;  %v3619_v55 = vadd.f32 %v1660_v48, %v1659_v11  ;;  %v4661_v40 = vperm.slane %v3879_v12, %v6247_v45  ;;  %v3881_v26 = vmul.f32 0.00390625, %v6609_v8  ;;  %v1593_v15 = vld [vmem:[%s6118_s11 + $0x840] sm:$0xff] }
 0x197   : > { %v6654_v9 = vpop.xlane.xlu1 %3392  ;;  %5061 = vmatpush.msrb.mxu1 %v4103_v30  ;;  %v3882_v37 = vmul.f32 0.00390625, %v6628_v63  ;;  %v3883_v8 = vmul.f32 0.00390625, %v6642_v35 }
 0x198   : > { %v6656_v18 = vpop.xlane.xlu0 %3350 }
 0x199   : > { %v3871_v30 = vmul.f32 0.00390625, %v6656_v18 }
 0x19b   : > { %3452 = vadd.xlane.f32.xlu2 %v3451_v21  ;;  %v4102_v21 = vld [vmem:[#allocation6 + $0x290] sm:$0xff] }
 0x19c   : > { %3659 = vadd.xlane.f32.xlu1 %v3658_v28  ;;  %v4629_v28 = vsel %vm4478_vm1, %v4628_v44, %v4627_v41  ;;  %5062 = vmatpush.msrb.mxu1 %v4102_v21  ;;  %v4640_v44 = vperm.slane %v3868_v13, %v6283_v27  ;;  %v4658_v21 = vsel %vm4474_vm0, %v4657_v46, %v4656_v14  ;;  %v3880_v13 = vmul.f32 0.00390625, %v6590_v31  ;;  %v1578_v31 = vld [vmem:[%s6118_s11 + $0x7c8] sm:$0xff] }
 0x19d   : > { %3617 = vadd.xlane.f32.xlu0 %v3616_v23  ;;  %v4632_v23 = vperm.slane %v3864_v47, %v6258_v0  ;;  %v4631_v16 = vsel %vm4482_vm2, %v4630_v20, %v4629_v28  ;;  %v3870_v47 = vmul.f32 0.00390625, %v6640_v34  ;;  %v4660_v14 = vsel %vm4478_vm1, %v4659_v1, %v4658_v21 }
 0x19e   : > { %v6671_v51 = vpop.xlane.xlu2 %3398  ;;  %5063 = vmatpush.msrb.mxu1 %v4101_v25  ;;  %v4662_v46 = vsel %vm4482_vm2, %v4661_v40, %v4660_v14  ;;  %v1689_v40 = vld [vmem:[%s6118_s11 + $0xb40] sm:$0xff] }
 0x19f   : > { %v3357_v17 = vpop.xlane.xlu1 %3356  ;;  %v4633_v52 = vsel %vm4486_vm3, %v4632_v23, %v4631_v16  ;;  %v4644_v28 = vperm.slane %v3870_v47, %v6295_v49  ;;  %v3872_v23 = vmul.f32 0.00390625, %v6650_v2 }
 0x1a0   : > { %v6676_v29 = vpop.xlane.xlu0 %3395  ;;  %v4635_v57 = vsel %vm4490_vm4, %v4634_v24, %v4633_v52  ;;  %5064 = vmatpush.msrb.mxu1 %v4100_v38  ;;  %v4646_v24 = vperm.slane %v3871_v30, %v6302_v56  ;;  %v3873_v25 = vmul.f32 0.00390625, %v3357_v17  ;;  %v1549_v38 = vld [vmem:[%s6118_s11 + $0x6e0] sm:$0xff]  ;;  %v1550_v52 = vld [vmem:[%s6118_s11 + $0x6e8] sm:$0xff] }
 0x1a1   : > { %v4637_v61 = vsel %vm4494_vm5, %v4636_v58, %v4635_v57  ;;  %v4648_v11 = vperm.slane %v3872_v23, %v6312_v5 }
 0x1a2   : > { %v4639_v34 = vsel %vm4498_vm6, %v4638_v60, %v4637_v61  ;;  %v1594_v60 = vld [vmem:[%s6118_s11 + $0x848] sm:$0xff]  ;;  %v4650_v48 = vperm.slane %v3873_v25, %v6315_v7 }
 0x1a3   : > { %3557 = vadd.xlane.f32.xlu2 %v3556_v3  ;;  %v4641_v18 = vsel %vm4502_vm7, %v4640_v44, %v4639_v34  ;;  %v4663_v44 = vperm.slane %v3880_v13, %v6258_v0  ;;  %v3520_v35 = vadd.f32 %v1594_v60, %v1593_v15  ;;  %v3884_v34 = vmul.f32 0.00390625, %v6638_v33  ;;  %v1662_v15 = vld [vmem:[%s6118_s11 + $0xa68] sm:$0xff] }
 0x1a4   : > { %3518 = vadd.xlane.f32.xlu1 %v3517_v59  ;;  %v4642_v59 = vperm.slane %v3869_v53, %v6290_v36  ;;  %v1577_v53 = vld [vmem:[%s6118_s11 + $0x7c0] sm:$0xff] }
 0x1a5   : > { %3494 = vadd.xlane.f32.xlu0 %v3493_v4  ;;  %v3559_v4 = vadd.f32 %v1620_v54, %v1619_v50  ;;  %v4665_v54 = vperm.slane %v3881_v26, %v6265_v6  ;;  %v3496_v30 = vadd.f32 %v1578_v31, %v1577_v53  ;;  %v4664_v23 = vsel %vm4486_vm3, %v4663_v44, %v4662_v46  ;;  %v1690_v26 = vld [vmem:[%s6118_s11 + $0xb48] sm:$0xff] }
 0x1a6   : > { %v3414_v41 = vpop.xlane.xlu2 %3413  ;;  %v4643_v16 = vsel %vm4506_vm8, %v4642_v59, %v4641_v18  ;;  %v4669_v59 = vperm.slane %v3883_v8, %v6274_v19  ;;  %v4671_v60 = vperm.slane %v3884_v34, %v6283_v27 }
 0x1a7   : > { %v6706_v3 = vpop.xlane.xlu1 %3401  ;;  %v3892_v2 = vmul.f32 0.00390625, %v3414_v41  ;;  %v4645_v17 = vsel %vm4510_vm9, %v4644_v28, %v4643_v16  ;;  %v4666_v13 = vsel %vm4490_vm4, %v4665_v54, %v4664_v23  ;;  %v1621_v16 = vld [vmem:[%s6118_s11 + $0x920] sm:$0xff] }
 0x1a8   : > { %v3360_v20 = vpop.xlane.xlu0 %3359  ;;  %v4647_v47 = vsel %vm4514_vm10, %v4646_v24, %v4645_v17  ;;  %v3886_v24 = vmul.f32 0.00390625, %v6676_v29  ;;  %v3888_v44 = vmul.f32 0.00390625, %v6706_v3  ;;  %v1595_v3 = vld [vmem:[%s6118_s11 + $0x850] sm:$0xff] }
 0x1a9   : > { %v3874_v58 = vmul.f32 0.00390625, %v3360_v20  ;;  %v4687_v41 = vperm.slane %v3892_v2, %v6232_v32  ;;  %v3454_v20 = vadd.f32 %v1550_v52, %v1549_v38  ;;  %v1622_v2 = vld [vmem:[%s6118_s11 + $0x928] sm:$0xff]  ;;  %v3664_v38 = vadd.f32 %v1690_v26, %v1689_v40 }
 0x1aa   : > { %v4675_v46 = vperm.slane %v3886_v24, %v6295_v49 }
 0x1ab   : > { %3662 = vadd.xlane.f32.xlu2 %v3661_v62  ;;  %v4652_v63 = vperm.slane %v3874_v58, %v6321_v22  ;;  %v4667_v62 = vperm.slane %v3882_v37, %v6268_v10  ;;  %v1661_v58 = vld [vmem:[%s6118_s11 + $0xa60] sm:$0xff]  ;;  %v3887_v37 = vmul.f32 0.00390625, %v6671_v51 }
 0x1ac   : > { %3620 = vadd.xlane.f32.xlu1 %v3619_v55  ;;  %v4649_v55 = vsel %vm4518_vm11, %v4648_v11, %v4647_v47  ;;  %v3622_v52 = vadd.f32 %v1662_v15, %v1661_v58 }
 0x1ad   : > { %3560 = vadd.xlane.f32.xlu0 %v3559_v4  ;;  %v3885_v4 = vmul.f32 0.00390625, %v6654_v9  ;;  %v4651_v28 = vsel %vm4522_vm12, %v4650_v48, %v4649_v55  ;;  %v4668_v14 = vsel %vm4494_vm5, %v4667_v62, %v4666_v13  ;;  %v3562_v48 = vadd.f32 %v1622_v2, %v1621_v16  ;;  %v1580_v62 = vld [vmem:[%s6118_s11 + $0x7d8] sm:$0xff] }
 0x1ae   : > { %v3405_v50 = vpop.xlane.xlu2 %3404  ;;  %v4653_v33 = vsel %vm4526_vm13, %v4652_v63, %v4651_v28  ;;  %v4670_v53 = vsel %vm4498_vm6, %v4669_v59, %v4668_v14  ;;  %v1551_v59 = vld [vmem:[%s6118_s11 + $0x6f0] sm:$0xff]  ;;  %v1552_v55 = vld [vmem:[%s6118_s11 + $0x6f8] sm:$0xff] }
 0x1af   : > { %v3363_v12 = vpop.xlane.xlu1 %3362  ;;  %v4673_v29 = vperm.slane %v3885_v4, %v6290_v36  ;;  %v3889_v54 = vmul.f32 0.00390625, %v3405_v50  ;;  %v4672_v51 = vsel %vm4502_vm7, %v4671_v60, %v4670_v53  ;;  %v4679_v50 = vperm.slane %v3888_v44, %v6312_v5 }
 0x1b0   : > { %v3417_v57 = vpop.xlane.xlu0 %3416  ;;  %v3875_v1 = vmul.f32 0.00390625, %v3363_v12  ;;  %v3457_v58 = vadd.f32 %v1552_v55, %v1551_v59  ;;  %v1582_v59 = vld [vmem:[%s6118_s11 + $0x7e8] sm:$0xff] }
 0x1b1   : > { %v3893_v61 = vmul.f32 0.00390625, %v3417_v57  ;;  %v4681_v34 = vperm.slane %v3889_v54, %v6315_v7 }
 0x1b2   : > { %v4654_v21 = vperm.slane %v3875_v1, %v6333_v39 }
 0x1b3   : > { %v4688_v18 = vperm.slane %v3893_v61, %v6241_v42  ;;  %3521 = vadd.xlane.f32.xlu2 %v3520_v35  ;;  %v4674_v35 = vsel %vm4506_vm8, %v4673_v29, %v4672_v51  ;;  %v1596_v61 = vld [vmem:[%s6118_s11 + $0x858] sm:$0xff] }
 0x1b4   : > { %3497 = vadd.xlane.f32.xlu1 %v3496_v30  ;;  %v4655_v25 = vsel %vm4530_vm14, %v4654_v21, %v4653_v33  ;;  %v4677_v30 = vperm.slane %v3887_v37, %v6302_v56  ;;  %v3523_v13 = vadd.f32 %v1596_v61, %v1595_v3  ;;  %v1692_v37 = vld [vmem:[%s6118_s11 + $0xb58] sm:$0xff]  ;;  %v1597_v61 = vld [vmem:[%s6118_s11 + $0x860] sm:$0xff] }
 0x1b5   : > { %v4689_v9 = vsel %vm4474_vm0, %v4688_v18, %v4687_v41  ;;  %3455 = vadd.xlane.f32.xlu0 %v3454_v20  ;;  %5045 = vmatmul.f32.vlgmr.msrb.gmra.mxu0 %v4655_v25  ;;  %v4676_v41 = vsel %vm4510_vm9, %v4675_v46, %v4674_v35  ;;  %v1579_v20 = vld [vmem:[%s6118_s11 + $0x7d0] sm:$0xff] }
 0x1b6   : > { %v3423_v31 = vpop.xlane.xlu2 %3422  ;;  %v4678_v28 = vsel %vm4514_vm10, %v4677_v30, %v4676_v41  ;;  %v3499_v24 = vadd.f32 %v1580_v62, %v1579_v20  ;;  %v1598_v62 = vld [vmem:[%s6118_s11 + $0x868] sm:$0xff] }
 0x1b7   : > { %v3895_v17 = vmul.f32 0.00390625, %v3423_v31  ;;  %v3408_v8 = vpop.xlane.xlu1 %3407  ;;  %v1691_v31 = vld [vmem:[%s6118_s11 + $0xb50] sm:$0xff] }
 0x1b8   : > { %v3420_v11 = vpop.xlane.xlu0 %3419  ;;  %v3890_v12 = vmul.f32 0.00390625, %v3408_v8  ;;  %v1664_v8 = vld [vmem:[%s6118_s11 + $0xa78] sm:$0xff] }
 0x1b9   : > { %v3894_v47 = vmul.f32 0.00390625, %v3420_v11  ;;  %v4692_v63 = vperm.slane %v3895_v17, %v6247_v45  ;;  %v1663_v17 = vld [vmem:[%s6118_s11 + $0xa70] sm:$0xff] }
 0x1ba   : > { %v4683_v21 = vperm.slane %v3890_v12, %v6321_v22  ;;  %v1623_v11 = vld [vmem:[%s6118_s11 + $0x930] sm:$0xff]  ;;  %v3625_v51 = vadd.f32 %v1664_v8, %v1663_v17 }
 0x1bb   : > { %v4690_v57 = vperm.slane %v3894_v47, %v6244_v43  ;;  %3665 = vadd.xlane.f32.xlu2 %v3664_v38  ;;  %v1624_v38 = vld [vmem:[%s6118_s11 + $0x938] sm:$0xff] }
 0x1bc   : > { %3623 = vadd.xlane.f32.xlu1 %v3622_v52  ;;  %v3565_v12 = vadd.f32 %v1624_v38, %v1623_v11 }
 0x1bd   : > { %v4691_v1 = vsel %vm4478_vm1, %v4690_v57, %v4689_v9  ;;  %3563 = vadd.xlane.f32.xlu0 %v3562_v48  ;;  %v4680_v9 = vsel %vm4518_vm11, %v4679_v50, %v4678_v28  ;;  %v3667_v48 = vadd.f32 %v1692_v37, %v1691_v31  ;;  %v1625_v50 = vld [vmem:[%s6118_s11 + $0x940] sm:$0xff] }
 0x1be   : > { %v4693_v4 = vsel %vm4482_vm2, %v4692_v63, %v4691_v1  ;;  %v3411_v18 = vpop.xlane.xlu2 %3410  ;;  %v4682_v14 = vsel %vm4522_vm12, %v4681_v34, %v4680_v9  ;;  %v1626_v1 = vld [vmem:[%s6118_s11 + $0x948] sm:$0xff]  ;;  %v1581_v34 = vld [vmem:[%s6118_s11 + $0x7e0] sm:$0xff] }
 0x1bf   : > { %v3891_v23 = vmul.f32 0.00390625, %v3411_v18  ;;  %v3465_v33 = vpop.xlane.xlu1 %3464  ;;  %v4684_v60 = vsel %vm4526_vm13, %v4683_v21, %v4682_v14  ;;  %v1584_v14 = vld [vmem:[%s6118_s11 + $0x7f8] sm:$0xff] }
 0x1c0   : > { %v3462_v40 = vpop.xlane.xlu0 %3461  ;;  %v3909_v25 = vmul.f32 0.00390625, %v3465_v33 }
 0x1c1   : > { %v3908_v26 = vmul.f32 0.00390625, %v3462_v40  ;;  %v4685_v15 = vperm.slane %v3891_v23, %v6333_v39  ;;  %v3568_v23 = vadd.f32 %v1626_v1, %v1625_v50  ;;  %v3526_v40 = vadd.f32 %v1598_v62, %v1597_v61  ;;  %v1600_v50 = vld [vmem:[%s6118_s11 + $0x878] sm:$0xff] }
 0x1c2   : > { %v4719_v16 = vperm.slane %v3909_v25, %v6241_v42 }
 0x1c3   : > { %v4718_v2 = vperm.slane %v3908_v26, %v6232_v32  ;;  %3524 = vadd.xlane.f32.xlu2 %v3523_v13  ;;  %v4686_v53 = vsel %vm4530_vm14, %v4685_v15, %v4684_v60  ;;  %v3502_v13 = vadd.f32 %v1582_v59, %v1581_v34  ;;  %v1583_v15 = vld [vmem:[%s6118_s11 + $0x7f0] sm:$0xff]  ;;  %v1694_v60 = vld [vmem:[%s6118_s11 + $0xb68] sm:$0xff] }
 0x1c4   : > { %3500 = vadd.xlane.f32.xlu1 %v3499_v24  ;;  %5065 = vmatmul.f32.vlgmr.msrb.gmra.mxu1 %v4686_v53  ;;  %v1665_v53 = vld [vmem:[%s6118_s11 + $0xa80] sm:$0xff]  ;;  %v3505_v11 = vadd.f32 %v1584_v14, %v1583_v15 }
 0x1c5   : > { %v4720_v29 = vsel %vm4474_vm0, %v4719_v16, %v4718_v2  ;;  %3458 = vadd.xlane.f32.xlu0 %v3457_v58  ;;  %v1693_v16 = vld [vmem:[%s6118_s11 + $0xb60] sm:$0xff] }
 0x1c6   : > { %v3429_v52 = vpop.xlane.xlu2 %3428 }
 0x1c7   : > { %v3897_v46 = vmul.f32 0.00390625, %v3429_v52  ;;  %v3468_v44 = vpop.xlane.xlu1 %3467 }
 0x1c8   : > { %v3426_v47 = vpop.xlane.xlu0 %3425  ;;  %v3910_v54 = vmul.f32 0.00390625, %v3468_v44 }
 0x1c9   : > { %v3896_v63 = vmul.f32 0.00390625, %v3426_v47  ;;  %v4696_v57 = vperm.slane %v3897_v46, %v6265_v6  ;;  %v3670_v46 = vadd.f32 %v1694_v60, %v1693_v16 }
 0x1ca   : > { %v4721_v35 = vperm.slane %v3910_v54, %v6244_v43 }
 0x1cb   : > { %v4694_v30 = vperm.slane %v3896_v63, %v6258_v0  ;;  %3668 = vadd.xlane.f32.xlu2 %v3667_v48 }
 0x1cc   : > { %v4722_v3 = vsel %vm4478_vm1, %v4721_v35, %v4720_v29  ;;  %3626 = vadd.xlane.f32.xlu1 %v3625_v51  ;;  %v1666_v29 = vld [vmem:[%s6118_s11 + $0xa88] sm:$0xff]  ;;  %v1627_v35 = vld [vmem:[%s6118_s11 + $0x950] sm:$0xff] }
 0x1cd   : > { %v4695_v41 = vsel %vm4486_vm3, %v4694_v30, %v4693_v4  ;;  %3566 = vadd.xlane.f32.xlu0 %v3565_v12  ;;  %v3628_v44 = vadd.f32 %v1666_v29, %v1665_v53  ;;  %v1667_v12 = vld [vmem:[%s6118_s11 + $0xa90] sm:$0xff] }
 0x1ce   : > { %v4697_v20 = vsel %vm4490_vm4, %v4696_v57, %v4695_v41  ;;  %v3474_v55 = vpop.xlane.xlu2 %3473  ;;  %v1668_v57 = vld [vmem:[%s6118_s11 + $0xa98] sm:$0xff]  ;;  %v1599_v41 = vld [vmem:[%s6118_s11 + $0x870] sm:$0xff] }
 0x1cf   : > { %v3912_v21 = vmul.f32 0.00390625, %v3474_v55  ;;  %v3432_v18 = vpop.xlane.xlu1 %3431  ;;  %v3631_v34 = vadd.f32 %v1668_v57, %v1667_v12 }
 0x1d0   : > { %v3471_v28 = vpop.xlane.xlu0 %3470  ;;  %v3898_v33 = vmul.f32 0.00390625, %v3432_v18  ;;  %v3529_v18 = vadd.f32 %v1600_v50, %v1599_v41 }
 0x1d1   : > { %v3911_v4 = vmul.f32 0.00390625, %v3471_v28  ;;  %v4725_v24 = vperm.slane %v3912_v21, %v6258_v0 }
 0x1d2   : > { %v4698_v9 = vperm.slane %v3898_v33, %v6268_v10 }
 0x1d3   : > { %v4723_v25 = vperm.slane %v3911_v4, %v6247_v45  ;;  %3569 = vadd.xlane.f32.xlu2 %v3568_v23 }
 0x1d4   : > { %v4699_v26 = vsel %vm4494_vm5, %v4698_v9, %v4697_v20  ;;  %3527 = vadd.xlane.f32.xlu1 %v3526_v40  ;;  %v1601_v9 = vld [vmem:[%s6118_s11 + $0x880] sm:$0xff] }
 0x1d5   : > { %v4724_v58 = vsel %vm4482_vm2, %v4723_v25, %v4722_v3  ;;  %3503 = vadd.xlane.f32.xlu0 %v3502_v13  ;;  %v1628_v3 = vld [vmem:[%s6118_s11 + $0x958] sm:$0xff]  ;;  %v1629_v13 = vld [vmem:[%s6118_s11 + $0x960] sm:$0xff]  ;;  %v1602_v25 = vld [vmem:[%s6118_s11 + $0x888] sm:$0xff] }
 0x1d6   : > { %v4726_v2 = vsel %vm4486_vm3, %v4725_v24, %v4724_v58  ;;  %v3438_v31 = vpop.xlane.xlu2 %3437  ;;  %v3571_v21 = vadd.f32 %v1628_v3, %v1627_v35  ;;  %v1630_v24 = vld [vmem:[%s6118_s11 + $0x968] sm:$0xff]  ;;  %v1696_v58 = vld [vmem:[%s6118_s11 + $0xb78] sm:$0xff] }
 0x1d7   : > { %v3900_v37 = vmul.f32 0.00390625, %v3438_v31  ;;  %v3477_v17 = vpop.xlane.xlu1 %3476  ;;  %v3574_v53 = vadd.f32 %v1630_v24, %v1629_v13 }
 0x1d8   : > { %v3435_v8 = vpop.xlane.xlu0 %3434  ;;  %v3913_v38 = vmul.f32 0.00390625, %v3477_v17 }
 0x1d9   : > { %v3899_v52 = vmul.f32 0.00390625, %v3435_v8  ;;  %v4702_v47 = vperm.slane %v3900_v37, %v6283_v27  ;;  %v3532_v37 = vadd.f32 %v1602_v25, %v1601_v9 }
 0x1da   : > { %v4727_v48 = vperm.slane %v3913_v38, %v6265_v6 }
 0x1db   : > { %v4700_v54 = vperm.slane %v3899_v52, %v6274_v19  ;;  %3506 = vadd.xlane.f32.xlu2 %v3505_v11 }
 0x1dc   : > { %v4728_v63 = vsel %vm4490_vm4, %v4727_v48, %v4726_v2  ;;  %3671 = vadd.xlane.f32.xlu1 %v3670_v46  ;;  %v1697_v48 = vld [vmem:[%s6118_s11 + $0xb80] sm:$0xff] }
 0x1dd   : > { %v4701_v51 = vsel %vm4498_vm6, %v4700_v54, %v4699_v26  ;;  %3629 = vadd.xlane.f32.xlu0 %v3628_v44  ;;  %v1695_v26 = vld [vmem:[%s6118_s11 + $0xb70] sm:$0xff]  ;;  %v1698_v54 = vld [vmem:[%s6118_s11 + $0xb88] sm:$0xff] }
 0x1de   : > { %v4703_v30 = vsel %vm4502_vm7, %v4702_v47, %v4701_v51  ;;  %v3483_v1 = vpop.xlane.xlu2 %3482  ;;  %v3673_v17 = vadd.f32 %v1696_v58, %v1695_v26  ;;  %v1603_v44 = vld [vmem:[%s6118_s11 + $0x890] sm:$0xff]  ;;  %v1604_v47 = vld [vmem:[%s6118_s11 + $0x898] sm:$0xff]  ;;  %v1670_v51 = vld [vmem:[%s6118_s11 + $0xaa8] sm:$0xff] }
 0x1df   : > { %v3915_v61 = vmul.f32 0.00390625, %v3483_v1  ;;  %v3441_v20 = vpop.xlane.xlu1 %3440  ;;  %v3535_v3 = vadd.f32 %v1604_v47, %v1603_v44  ;;  %v3676_v1 = vadd.f32 %v1698_v54, %v1697_v48 }
 0x1e0   : > { %v3480_v62 = vpop.xlane.xlu0 %3479  ;;  %v3901_v59 = vmul.f32 0.00390625, %v3441_v20 }
 0x1e1   : > { %v3914_v55 = vmul.f32 0.00390625, %v3480_v62  ;;  %v4731_v28 = vperm.slane %v3915_v61, %v6274_v19 }
 0x1e2   : > { %v4704_v23 = vperm.slane %v3901_v59, %v6290_v36 }
 0x1e3   : > { %v4729_v33 = vperm.slane %v3914_v55, %v6268_v10  ;;  %3632 = vadd.xlane.f32.xlu2 %v3631_v34 }
 0x1e4   : > { %v4705_v4 = vsel %vm4506_vm8, %v4704_v23, %v4703_v30  ;;  %3572 = vadd.xlane.f32.xlu1 %v3571_v21  ;;  %v1671_v23 = vld [vmem:[%s6118_s11 + $0xab0] sm:$0xff] }
 0x1e5   : > { %v4730_v40 = vsel %vm4494_vm5, %v4729_v33, %v4728_v63  ;;  %3530 = vadd.xlane.f32.xlu0 %v3529_v18  ;;  %v1669_v63 = vld [vmem:[%s6118_s11 + $0xaa0] sm:$0xff]  ;;  %v1699_v18 = vld [vmem:[%s6118_s11 + $0xb90] sm:$0xff]  ;;  %v1672_v33 = vld [vmem:[%s6118_s11 + $0xab8] sm:$0xff] }
 0x1e6   : > { %v4732_v15 = vsel %vm4498_vm6, %v4731_v28, %v4730_v40  ;;  %v3444_v14 = vpop.xlane.xlu2 %3443  ;;  %v3634_v61 = vadd.f32 %v1670_v51, %v1669_v63  ;;  %v1700_v28 = vld [vmem:[%s6118_s11 + $0xb98] sm:$0xff]  ;;  %v4130_v51 = vld [vmem:[#allocation6 + $0x370] sm:$0xff] }
 0x1e7   : > { %v3902_v16 = vmul.f32 0.00390625, %v3444_v14  ;;  %v3609_v2 = vpop.xlane.xlu1 %3608  ;;  %v1632_v40 = vld [vmem:[%s6118_s11 + $0x978] sm:$0xff]  ;;  %v3679_v26 = vadd.f32 %v1700_v28, %v1699_v18  ;;  %v1673_v18 = vld [vmem:[%s6118_s11 + $0xac0] sm:$0xff] }
 0x1e8   : > { %v3606_v60 = vpop.xlane.xlu0 %3605  ;;  %v3957_v29 = vmul.f32 0.00390625, %v3609_v2  ;;  %v4127_v28 = vld [vmem:[#allocation6 + $0x358] sm:$0xff] }
 0x1e9   : > { %v3956_v31 = vmul.f32 0.00390625, %v3606_v60  ;;  %v4706_v8 = vperm.slane %v3902_v16, %v6295_v49 }
 0x1ea   : > { %v4812_v11 = vperm.slane %v3957_v29, %v6241_v42  ;;  %v1605_v29 = vld [vmem:[%s6118_s11 + $0x8a0] sm:$0xff] }
 0x1eb   : > { %v4811_v38 = vperm.slane %v3956_v31, %v6232_v32  ;;  %v4707_v52 = vsel %vm4510_vm9, %v4706_v8, %v4705_v4  ;;  %3575 = vadd.xlane.f32.xlu2 %v3574_v53  ;;  %v1631_v4 = vld [vmem:[%s6118_s11 + $0x970] sm:$0xff] }
 0x1ec   : > { %3533 = vadd.xlane.f32.xlu1 %v3532_v37  ;;  %v3577_v16 = vadd.f32 %v1632_v40, %v1631_v4  ;;  %v1715_v8 = vld [vmem:[%s6118_s11 + $0xc10] sm:$0xff]  ;;  %v1634_v4 = vld [vmem:[%s6118_s11 + $0x988] sm:$0xff] }
 0x1ed   : > { %v4813_v46 = vsel %vm4474_vm0, %v4812_v11, %v4811_v38  ;;  %3674 = vadd.xlane.f32.xlu0 %v3673_v17  ;;  %v1606_v17 = vld [vmem:[%s6118_s11 + $0x8a8] sm:$0xff]  ;;  %v4131_v11 = vld [vmem:[#allocation6 + $0x378] sm:$0xff] }
 0x1ee   : > { %v3447_v12 = vpop.xlane.xlu2 %3446  ;;  %v1716_v38 = vld [vmem:[%s6118_s11 + $0xc18] sm:$0xff]  ;;  %5069 = vmatpush.msrb.mxu2 %v4131_v11  ;;  %v3538_v63 = vadd.f32 %v1606_v17, %v1605_v29  ;;  %v4124_v29 = vld [vmem:[#allocation6 + $0x340] sm:$0xff]  ;;  %v1607_v11 = vld [vmem:[%s6118_s11 + $0x8b0] sm:$0xff] }
 0x1ef   : > { %v3903_v57 = vmul.f32 0.00390625, %v3447_v12  ;;  %v3612_v35 = vpop.xlane.xlu1 %3611 }
 0x1f0   : > { %v3486_v30 = vpop.xlane.xlu0 %3485  ;;  %v3958_v41 = vmul.f32 0.00390625, %v3612_v35  ;;  %v3703_v35 = vadd.f32 %v1716_v38, %v1715_v8  ;;  %5070 = vmatpush.msrb.mxu2 %v4130_v51  ;;  %v1636_v8 = vld [vmem:[%s6118_s11 + $0x998] sm:$0xff] }
 0x1f1   : > { %v3916_v50 = vmul.f32 0.00390625, %v3486_v30  ;;  %v4708_v20 = vperm.slane %v3903_v57, %v6302_v56  ;;  %v4123_v38 = vld [vmem:[#allocation6 + $0x338] sm:$0xff] }
 0x1f2   : > { %v4814_v62 = vperm.slane %v3958_v41, %v6244_v43  ;;  %v4129_v41 = vld [vmem:[#allocation6 + $0x368] sm:$0xff] }
 0x1f3   : > { %v4733_v34 = vperm.slane %v3916_v50, %v6283_v27  ;;  %v6859_v59 = vsel %vm4514_vm10, %v4708_v20, %v4707_v52  ;;  %3536 = vadd.xlane.f32.xlu2 %v3535_v3  ;;  %v1713_v52 = vld [vmem:[%s6118_s11 + $0xc00] sm:$0xff]  ;;  %5071 = vmatpush.msrb.mxu2 %v4129_v41  ;;  %v1719_v41 = vld [vmem:[%s6118_s11 + $0xc30] sm:$0xff] }
 0x1f4   : > { %v4815_v55 = vsel %vm4478_vm1, %v4814_v62, %v4813_v46  ;;  %3677 = vadd.xlane.f32.xlu1 %v3676_v1  ;;  %v1714_v46 = vld [vmem:[%s6118_s11 + $0xc08] sm:$0xff]  ;;  %v4128_v20 = vld [vmem:[#allocation6 + $0x360] sm:$0xff] }
 0x1f5   : > { %v4734_v21 = vsel %vm4502_vm7, %v4733_v34, %v4732_v15  ;;  %3635 = vadd.xlane.f32.xlu0 %v3634_v61  ;;  %v3637_v15 = vadd.f32 %v1672_v33, %v1671_v23  ;;  %v3700_v30 = vadd.f32 %v1714_v46, %v1713_v52  ;;  %v1701_v61 = vld [vmem:[%s6118_s11 + $0xba0] sm:$0xff]  ;;  %v1674_v23 = vld [vmem:[%s6118_s11 + $0xac8] sm:$0xff]  ;;  %5072 = vmatpush.msrb.mxu2 %v4128_v20  ;;  %v1608_v52 = vld [vmem:[%s6118_s11 + $0x8b8] sm:$0xff] }
 0x1f6   : > { %v3513_v13 = vpop.xlane.xlu2 %3512  ;;  %v1633_v33 = vld [vmem:[%s6118_s11 + $0x980] sm:$0xff] }
 0x1f7   : > { %v3925_v24 = vmul.f32 0.00390625, %v3513_v13  ;;  %v3510_v9 = vpop.xlane.xlu1 %3509  ;;  %5073 = vmatpush.msrb.mxu2 %v4127_v28  ;;  %v1717_v46 = vld [vmem:[%s6118_s11 + $0xc20] sm:$0xff]  ;;  %v4147_v28 = vld [vmem:[#allocation6 + $0x3f8] sm:$0xff] }
 0x1f8   : > { %v3489_v25 = vpop.xlane.xlu0 %3488  ;;  %v3924_v58 = vmul.f32 0.00390625, %v3510_v9  ;;  %5089 = vmatpush.msrb.mxu3 %v4147_v28 }
 0x1f9   : > { %v3917_v14 = vmul.f32 0.00390625, %v3489_v25  ;;  %v4750_v2 = vperm.slane %v3925_v24, %v6241_v42 }
 0x1fa   : > { %v4749_v60 = vperm.slane %v3924_v58, %v6232_v32  ;;  %v3640_v58 = vadd.f32 %v1674_v23, %v1673_v18  ;;  %v4119_v18 = vld [vmem:[#allocation6 + $0x318] sm:$0xff] }
 0x1fb   : > { %v4735_v53 = vperm.slane %v3917_v14, %v6290_v36  ;;  %3680 = vadd.xlane.f32.xlu2 %v3679_v26  ;;  %v4126_v26 = vld [vmem:[#allocation6 + $0x350] sm:$0xff]  ;;  %v3580_v14 = vadd.f32 %v1634_v4, %v1633_v33  ;;  %v1704_v23 = vld [vmem:[%s6118_s11 + $0xbb8] sm:$0xff] }
 0x1fc   : > { %v4751_v31 = vsel %vm4474_vm0, %v4750_v2, %v4749_v60  ;;  %3638 = vadd.xlane.f32.xlu1 %v3637_v15  ;;  %5074 = vmatpush.msrb.mxu2 %v4126_v26  ;;  %v1675_v33 = vld [vmem:[%s6118_s11 + $0xad0] sm:$0xff]  ;;  %v1676_v4 = vld [vmem:[%s6118_s11 + $0xad8] sm:$0xff] }
 0x1fd   : > { %v4736_v37 = vsel %vm4506_vm8, %v4735_v53, %v4734_v21  ;;  %3578 = vadd.xlane.f32.xlu0 %v3577_v16  ;;  %v1702_v21 = vld [vmem:[%s6118_s11 + $0xba8] sm:$0xff]  ;;  %v1635_v53 = vld [vmem:[%s6118_s11 + $0x990] sm:$0xff] }
 0x1fe   : > { %v3657_v44 = vpop.xlane.xlu2 %3656  ;;  %v3682_v25 = vadd.f32 %v1702_v21, %v1701_v61  ;;  %v4125_v16 = vld [vmem:[#allocation6 + $0x348] sm:$0xff]  ;;  %v1703_v21 = vld [vmem:[%s6118_s11 + $0xbb0] sm:$0xff] }
 0x1ff   : > { %v3973_v47 = vmul.f32 0.00390625, %v3657_v44  ;;  %v3654_v48 = vpop.xlane.xlu1 %3653  ;;  %5075 = vmatpush.msrb.mxu2 %v4125_v16  ;;  %v1718_v44 = vld [vmem:[%s6118_s11 + $0xc28] sm:$0xff] }
 0x200   : > { %v3615_v54 = vpop.xlane.xlu0 %3614  ;;  %v3972_v12 = vmul.f32 0.00390625, %v3654_v48 }
 0x201   : > { %v3959_v57 = vmul.f32 0.00390625, %v3615_v54  ;;  %v4843_v3 = vperm.slane %v3973_v47, %v6241_v42  ;;  %5076 = vmatpush.msrb.mxu2 %v4124_v29  ;;  %v3583_v54 = vadd.f32 %v1636_v8, %v1635_v53  ;;  %v4116_v53 = vld [vmem:[#allocation6 + $0x300] sm:$0xff] }
 0x202   : > { %v4842_v50 = vperm.slane %v3972_v12, %v6232_v32  ;;  %v3541_v12 = vadd.f32 %v1608_v52, %v1607_v11  ;;  %v4144_v29 = vld [vmem:[#allocation6 + $0x3e0] sm:$0xff]  ;;  %v1747_v52 = vld [vmem:[%s6118_s11 + $0xd10] sm:$0xff] }
 0x203   : > { %v4816_v1 = vperm.slane %v3959_v57, %v6247_v45  ;;  %3539 = vadd.xlane.f32.xlu2 %v3538_v63  ;;  %5077 = vmatpush.msrb.mxu2 %v4123_v38  ;;  %v4122_v63 = vld [vmem:[#allocation6 + $0x330] sm:$0xff]  ;;  %v3706_v57 = vadd.f32 %v1718_v44, %v1717_v46  ;;  %v1610_v38 = vld [vmem:[%s6118_s11 + $0x8c8] sm:$0xff]  ;;  %v1748_v46 = vld [vmem:[%s6118_s11 + $0xd18] sm:$0xff] }
 0x204   : > { %v4844_v62 = vsel %vm4474_vm0, %v4843_v3, %v4842_v50  ;;  %3704 = vadd.xlane.f32.xlu1 %v3703_v35  ;;  %v4121_v35 = vld [vmem:[#allocation6 + $0x328] sm:$0xff]  ;;  %v1720_v50 = vld [vmem:[%s6118_s11 + $0xc38] sm:$0xff]  ;;  %v1745_v44 = vld [vmem:[%s6118_s11 + $0xd00] sm:$0xff] }
 0x205   : > { %v4817_v34 = vsel %vm4482_vm2, %v4816_v1, %v4815_v55  ;;  %3701 = vadd.xlane.f32.xlu0 %v3700_v30  ;;  %5078 = vmatpush.msrb.mxu2 %v4122_v63  ;;  %v4120_v1 = vld [vmem:[#allocation6 + $0x320] sm:$0xff] }
 0x206   : > { %v3516_v40 = vpop.xlane.xlu2 %3515 }
 0x207   : > { %v3926_v13 = vmul.f32 0.00390625, %v3516_v40  ;;  %v3492_v24 = vpop.xlane.xlu1 %3491  ;;  %5079 = vmatpush.msrb.mxu2 %v4121_v35  ;;  %v4142_v35 = vld [vmem:[#allocation6 + $0x3d0] sm:$0xff] }
 0x208   : > { %v6891_v9 = vpop.xlane.xlu0 %3449  ;;  %v3918_v55 = vmul.f32 0.00390625, %v3492_v24 }
 0x209   : > { %v4752_v15 = vperm.slane %v3926_v13, %v6244_v43  ;;  %5080 = vmatpush.msrb.mxu2 %v4120_v1  ;;  %v4141_v1 = vld [vmem:[#allocation6 + $0x3c8] sm:$0xff] }
 0x20a   : > { %v4737_v2 = vperm.slane %v3918_v55, %v6295_v49  ;;  %v3685_v55 = vadd.f32 %v1704_v23, %v1703_v21  ;;  %v1705_v23 = vld [vmem:[%s6118_s11 + $0xbc0] sm:$0xff] }
 0x20b   : > { %v6896_v60 = vsel %vm4478_vm1, %v4752_v15, %v4751_v31  ;;  %3683 = vadd.xlane.f32.xlu2 %v3682_v25  ;;  %5081 = vmatpush.msrb.mxu2 %v4119_v18  ;;  %v4118_v25 = vld [vmem:[#allocation6 + $0x310] sm:$0xff]  ;;  %v4145_v15 = vld [vmem:[#allocation6 + $0x3e8] sm:$0xff] }
 0x20c   : > { %v6900_v17 = vsel %vm4510_vm9, %v4737_v2, %v4736_v37  ;;  %3641 = vadd.xlane.f32.xlu1 %v3640_v58  ;;  %v3643_v58 = vadd.f32 %v1676_v4, %v1675_v33  ;;  %v1609_v2 = vld [vmem:[%s6118_s11 + $0x8c0] sm:$0xff] }
 0x20d   : > { %3581 = vadd.xlane.f32.xlu0 %v3580_v14  ;;  %5082 = vmatpush.msrb.mxu2 %v4118_v25  ;;  %v4117_v14 = vld [vmem:[#allocation6 + $0x308] sm:$0xff]  ;;  %v4140_v33 = vld [vmem:[#allocation6 + $0x3c0] sm:$0xff]  ;;  %v4139_v25 = vld [vmem:[#allocation6 + $0x3b8] sm:$0xff] }
 0x20e   : > { %v6907_v47 = vpop.xlane.xlu2 %3452 }
 0x20f   : > { %v3660_v31 = vpop.xlane.xlu1 %3659  ;;  %5083 = vmatpush.msrb.mxu2 %v4117_v14 }
 0x210   : > { %v3618_v48 = vpop.xlane.xlu0 %3617  ;;  %v3974_v37 = vmul.f32 0.00390625, %v3660_v31  ;;  %v1746_v31 = vld [vmem:[%s6118_s11 + $0xd08] sm:$0xff] }
 0x211   : > { %v3960_v51 = vmul.f32 0.00390625, %v3618_v48  ;;  %5084 = vmatpush.msrb.mxu2 %v4116_v53  ;;  %v4143_v48 = vld [vmem:[#allocation6 + $0x3d8] sm:$0xff] }
 0x212   : > { %v4845_v30 = vperm.slane %v3974_v37, %v6244_v43 }
 0x213   : > { %v4818_v3 = vperm.slane %v3960_v51, %v6258_v0  ;;  %3584 = vadd.xlane.f32.xlu2 %v3583_v54 }
 0x214   : > { %v6914_v61 = vsel %vm4478_vm1, %v4845_v30, %v4844_v62  ;;  %3542 = vadd.xlane.f32.xlu1 %v3541_v12  ;;  %v3709_v62 = vadd.f32 %v1720_v50, %v1719_v41  ;;  %v3544_v12 = vadd.f32 %v1610_v38, %v1609_v2  ;;  %v3748_v41 = vadd.f32 %v1746_v31, %v1745_v44  ;;  %v1612_v44 = vld [vmem:[%s6118_s11 + $0x8d8] sm:$0xff]  ;;  %v1749_v31 = vld [vmem:[%s6118_s11 + $0xd20] sm:$0xff] }
 0x215   : > { %v6917_v20 = vsel %vm4486_vm3, %v4818_v3, %v4817_v34  ;;  %3707 = vadd.xlane.f32.xlu0 %v3706_v57  ;;  %v4146_v34 = vld [vmem:[#allocation6 + $0x3f0] sm:$0xff]  ;;  %v3751_v57 = vadd.f32 %v1748_v46, %v1747_v52  ;;  %v4136_v46 = vld [vmem:[#allocation6 + $0x3a0] sm:$0xff] }
 0x216   : > { %v3558_v40 = vpop.xlane.xlu2 %3557  ;;  %5090 = vmatpush.msrb.mxu3 %v4146_v34  ;;  %v1678_v34 = vld [vmem:[%s6118_s11 + $0xae8] sm:$0xff]  ;;  %v1611_v52 = vld [vmem:[%s6118_s11 + $0x8d0] sm:$0xff] }
 0x217   : > { %v3519_v13 = vpop.xlane.xlu1 %3518  ;;  %v3940_v8 = vmul.f32 0.00390625, %v3558_v40 }
 0x218   : > { %v6923_v24 = vpop.xlane.xlu0 %3494  ;;  %v3927_v26 = vmul.f32 0.00390625, %v3519_v13  ;;  %5091 = vmatpush.msrb.mxu3 %v4145_v15  ;;  %v1706_v13 = vld [vmem:[%s6118_s11 + $0xbc8] sm:$0xff] }
 0x21a   : > { %v4754_v16 = vperm.slane %v3927_v26, %v6247_v45  ;;  %5092 = vmatpush.msrb.mxu3 %v4144_v29  ;;  %v1637_v26 = vld [vmem:[%s6118_s11 + $0x9a0] sm:$0xff] }
 0x21b   : > { %3710 = vadd.xlane.f32.xlu2 %v3709_v62  ;;  %v1677_v62 = vld [vmem:[%s6118_s11 + $0xae0] sm:$0xff] }
 0x21c   : > { %v4755_v11 = vsel %vm4482_vm2, %v4754_v16, %v6896_v60  ;;  %3686 = vadd.xlane.f32.xlu1 %v3685_v55  ;;  %5093 = vmatpush.msrb.mxu3 %v4143_v48  ;;  %v4780_v60 = vperm.slane %v3940_v8, %v6232_v32  ;;  %v1638_v55 = vld [vmem:[%s6118_s11 + $0x9a8] sm:$0xff]  ;;  %v3688_v16 = vadd.f32 %v1706_v13, %v1705_v23  ;;  %v4135_v48 = vld [vmem:[#allocation6 + $0x398] sm:$0xff]  ;;  %v3905_v23 = vmul.f32 0.00390625, %v6907_v47  ;;  %v1707_v47 = vld [vmem:[%s6118_s11 + $0xbd0] sm:$0xff] }
 0x21d   : > { %3644 = vadd.xlane.f32.xlu0 %v3643_v58  ;;  %v3646_v2 = vadd.f32 %v1678_v34, %v1677_v62  ;;  %v3586_v53 = vadd.f32 %v1638_v55, %v1637_v26  ;;  %v4137_v8 = vld [vmem:[#allocation6 + $0x3a8] sm:$0xff]  ;;  %v1708_v55 = vld [vmem:[%s6118_s11 + $0xbd8] sm:$0xff] }
 0x21e   : > { %v3663_v54 = vpop.xlane.xlu2 %3662  ;;  %5094 = vmatpush.msrb.mxu3 %v4142_v35 }
 0x21f   : > { %v3975_v63 = vmul.f32 0.00390625, %v3663_v54  ;;  %v3621_v37 = vpop.xlane.xlu1 %3620  ;;  %v1750_v54 = vld [vmem:[%s6118_s11 + $0xd28] sm:$0xff] }
 0x220   : > { %v3561_v51 = vpop.xlane.xlu0 %3560  ;;  %v3961_v30 = vmul.f32 0.00390625, %v3621_v37  ;;  %5095 = vmatpush.msrb.mxu3 %v4141_v1  ;;  %v1722_v37 = vld [vmem:[%s6118_s11 + $0xc48] sm:$0xff]  ;;  %v3904_v1 = vmul.f32 0.00390625, %v6891_v9  ;;  %v4132_v9 = vld [vmem:[#allocation6 + $0x380] sm:$0xff] }
 0x221   : > { %v3941_v3 = vmul.f32 0.00390625, %v3561_v51  ;;  %v4847_v50 = vperm.slane %v3975_v63, %v6247_v45  ;;  %v1721_v63 = vld [vmem:[%s6118_s11 + $0xc40] sm:$0xff] }
 0x222   : > { %v4820_v21 = vperm.slane %v3961_v30, %v6265_v6  ;;  %5096 = vmatpush.msrb.mxu3 %v4140_v33 }
 0x223   : > { %v4781_v18 = vperm.slane %v3941_v3, %v6241_v42  ;;  %v4848_v28 = vsel %vm4482_vm2, %v4847_v50, %v6914_v61  ;;  %3545 = vadd.xlane.f32.xlu2 %v3544_v12  ;;  %v3712_v50 = vadd.f32 %v1722_v37, %v1721_v63 }
 0x224   : > { %v4821_v4 = vsel %vm4490_vm4, %v4820_v21, %v6917_v20  ;;  %3752 = vadd.xlane.f32.xlu1 %v3751_v57  ;;  %5097 = vmatpush.msrb.mxu3 %v4139_v25  ;;  %v4138_v20 = vld [vmem:[#allocation6 + $0x3b0] sm:$0xff] }
 0x225   : > { %v4782_v40 = vsel %vm4474_vm0, %v4781_v18, %v4780_v60  ;;  %3749 = vadd.xlane.f32.xlu0 %v3748_v41  ;;  %v3547_v60 = vadd.f32 %v1612_v44, %v1611_v52  ;;  %v3754_v41 = vadd.f32 %v1750_v54, %v1749_v31  ;;  %v4133_v18 = vld [vmem:[#allocation6 + $0x388] sm:$0xff] }
 0x226   : > { %v3522_v61 = vpop.xlane.xlu2 %3521  ;;  %5098 = vmatpush.msrb.mxu3 %v4138_v20  ;;  %v1639_v20 = vld [vmem:[%s6118_s11 + $0x9b0] sm:$0xff] }
 0x227   : > { %v3928_v58 = vmul.f32 0.00390625, %v3522_v61  ;;  %v6949_v14 = vpop.xlane.xlu1 %3497  ;;  %v1679_v61 = vld [vmem:[%s6118_s11 + $0xaf0] sm:$0xff] }
 0x228   : > { %v3456_v15 = vpop.xlane.xlu0 %3455  ;;  %5099 = vmatpush.msrb.mxu3 %v4137_v8  ;;  %v3691_v8 = vadd.f32 %v1708_v55, %v1707_v47 }
 0x229   : > { %v4756_v29 = vperm.slane %v3928_v58, %v6258_v0  ;;  %v3906_v62 = vmul.f32 0.00390625, %v3456_v15  ;;  %v4710_v58 = vperm.slane %v3904_v1, %v6312_v5 }
 0x22a   : > { %5100 = vmatpush.msrb.mxu3 %v4136_v46 }
 0x22b   : > { %v6953_v38 = vsel %vm4486_vm3, %v4756_v29, %v4755_v11  ;;  %3689 = vadd.xlane.f32.xlu2 %v3688_v16  ;;  %v4134_v11 = vld [vmem:[#allocation6 + $0x390] sm:$0xff]  ;;  %v1680_v16 = vld [vmem:[%s6118_s11 + $0xaf8] sm:$0xff]  ;;  %v4711_v31 = vsel %vm4518_vm11, %v4710_v58, %v6859_v59  ;;  %v1725_v58 = vld [vmem:[%s6118_s11 + $0xc60] sm:$0xff] }
 0x22c   : > { %3647 = vadd.xlane.f32.xlu1 %v3646_v2  ;;  %5101 = vmatpush.msrb.mxu3 %v4135_v48  ;;  %v1640_v2 = vld [vmem:[%s6118_s11 + $0x9b8] sm:$0xff]  ;;  %v3649_v46 = vadd.f32 %v1680_v16, %v1679_v61  ;;  %v1751_v59 = vld [vmem:[%s6118_s11 + $0xd30] sm:$0xff]  ;;  %v1726_v16 = vld [vmem:[%s6118_s11 + $0xc68] sm:$0xff] }
 0x22d   : > { %3587 = vadd.xlane.f32.xlu0 %v3586_v53  ;;  %v4714_v53 = vperm.slane %v3906_v62, %v6321_v22  ;;  %v3589_v44 = vadd.f32 %v1640_v2, %v1639_v20  ;;  %v1709_v20 = vld [vmem:[%s6118_s11 + $0xbe0] sm:$0xff]  ;;  %v1710_v2 = vld [vmem:[%s6118_s11 + $0xbe8] sm:$0xff] }
 0x22e   : > { %v3666_v51 = vpop.xlane.xlu2 %3665  ;;  %5102 = vmatpush.msrb.mxu3 %v4134_v11  ;;  %v1723_v11 = vld [vmem:[%s6118_s11 + $0xc50] sm:$0xff] }
 0x22f   : > { %v3976_v12 = vmul.f32 0.00390625, %v3666_v51  ;;  %v3624_v57 = vpop.xlane.xlu1 %3623 }
 0x230   : > { %v3564_v35 = vpop.xlane.xlu0 %3563  ;;  %v3962_v30 = vmul.f32 0.00390625, %v3624_v57  ;;  %5103 = vmatpush.msrb.mxu3 %v4133_v18  ;;  %v1613_v57 = vld [vmem:[%s6118_s11 + $0x8e0] sm:$0xff] }
 0x231   : > { %v3942_v3 = vmul.f32 0.00390625, %v3564_v35  ;;  %v4849_v21 = vperm.slane %v3976_v12, %v6258_v0  ;;  %v1614_v35 = vld [vmem:[%s6118_s11 + $0x8e8] sm:$0xff] }
 0x232   : > { %v4822_v33 = vperm.slane %v3962_v30, %v6268_v10  ;;  %5104 = vmatpush.msrb.mxu3 %v4132_v9  ;;  %v1724_v30 = vld [vmem:[%s6118_s11 + $0xc58] sm:$0xff] }
 0x233   : > { %v4783_v13 = vperm.slane %v3942_v3, %v6244_v43  ;;  %v4850_v25 = vsel %vm4486_vm3, %v4849_v21, %v4848_v28  ;;  %3548 = vadd.xlane.f32.xlu2 %v3547_v60  ;;  %v4712_v28 = vperm.slane %v3905_v23, %v6315_v7  ;;  %v1752_v60 = vld [vmem:[%s6118_s11 + $0xd38] sm:$0xff] }
 0x234   : > { %v4823_v34 = vsel %vm4494_vm5, %v4822_v33, %v4821_v4  ;;  %3755 = vadd.xlane.f32.xlu1 %v3754_v41  ;;  %v3757_v23 = vadd.f32 %v1752_v60, %v1751_v59  ;;  %v3715_v33 = vadd.f32 %v1724_v30, %v1723_v11  ;;  %v1616_v60 = vld [vmem:[%s6118_s11 + $0x8f8] sm:$0xff]  ;;  %v1753_v11 = vld [vmem:[%s6118_s11 + $0xd40] sm:$0xff]  ;;  %v1754_v30 = vld [vmem:[%s6118_s11 + $0xd48] sm:$0xff] }
 0x235   : > { %v4784_v26 = vsel %vm4478_vm1, %v4783_v13, %v4782_v40  ;;  %3713 = vadd.xlane.f32.xlu0 %v3712_v50  ;;  %v4713_v63 = vsel %vm4522_vm12, %v4712_v28, %v4711_v31  ;;  %v1641_v28 = vld [vmem:[%s6118_s11 + $0x9c0] sm:$0xff] }
 0x236   : > { %v3525_v15 = vpop.xlane.xlu2 %3524  ;;  %v4715_v51 = vsel %vm4526_vm13, %v4714_v53, %v4713_v63  ;;  %v3919_v53 = vmul.f32 0.00390625, %v6923_v24 }
 0x237   : > { %v3929_v29 = vmul.f32 0.00390625, %v3525_v15  ;;  %v3501_v4 = vpop.xlane.xlu1 %3500  ;;  %v1642_v15 = vld [vmem:[%s6118_s11 + $0x9c8] sm:$0xff] }
 0x238   : > { %v3459_v40 = vpop.xlane.xlu0 %3458  ;;  %v3921_v31 = vmul.f32 0.00390625, %v3501_v4  ;;  %v4739_v24 = vperm.slane %v3919_v53, %v6302_v56  ;;  %v1644_v4 = vld [vmem:[%s6118_s11 + $0x9d8] sm:$0xff] }
 0x239   : > { %v3907_v52 = vmul.f32 0.00390625, %v3459_v40  ;;  %v4758_v48 = vperm.slane %v3929_v29, %v6265_v6  ;;  %v3920_v40 = vmul.f32 0.00390625, %v6949_v14  ;;  %v1756_v53 = vld [vmem:[%s6118_s11 + $0xd58] sm:$0xff] }
 0x23a   : > { %v4743_v59 = vperm.slane %v3921_v31, %v6315_v7 }
 0x23b   : > { %v4716_v54 = vperm.slane %v3907_v52, %v6333_v39  ;;  %v4759_v37 = vsel %vm4490_vm4, %v4758_v48, %v6953_v38  ;;  %3692 = vadd.xlane.f32.xlu2 %v3691_v8  ;;  %v3550_v38 = vadd.f32 %v1614_v35, %v1613_v57  ;;  %v4741_v63 = vperm.slane %v3920_v40, %v6312_v5  ;;  %v1643_v57 = vld [vmem:[%s6118_s11 + $0x9d0] sm:$0xff]  ;;  %v1728_v40 = vld [vmem:[%s6118_s11 + $0xc78] sm:$0xff] }
 0x23c   : > { %3650 = vadd.xlane.f32.xlu1 %v3649_v46  ;;  %v3694_v46 = vadd.f32 %v1710_v2, %v1709_v20  ;;  %v1615_v35 = vld [vmem:[%s6118_s11 + $0x8f0] sm:$0xff] }
 0x23d   : > { %3590 = vadd.xlane.f32.xlu0 %v3589_v44  ;;  %v4717_v12 = vsel %vm4530_vm14, %v4716_v54, %v4715_v51  ;;  %v3592_v44 = vadd.f32 %v1642_v15, %v1641_v28  ;;  %v1755_v15 = vld [vmem:[%s6118_s11 + $0xd50] sm:$0xff] }
 0x23e   : > { %5085 = vmatmul.f32.vlgmr.msrb.gmra.mxu2 %v4717_v12  ;;  %v3669_v3 = vpop.xlane.xlu2 %3668 }
 0x23f   : > { %v3977_v41 = vmul.f32 0.00390625, %v3669_v3  ;;  %v3627_v50 = vpop.xlane.xlu1 %3626  ;;  %v4740_v3 = vsel %vm4514_vm10, %v4739_v24, %v6900_v17 }
 0x240   : > { %v3567_v1 = vpop.xlane.xlu0 %3566  ;;  %v3963_v21 = vmul.f32 0.00390625, %v3627_v50 }
 0x241   : > { %v3943_v18 = vmul.f32 0.00390625, %v3567_v1  ;;  %v4851_v13 = vperm.slane %v3977_v41, %v6265_v6  ;;  %v4742_v1 = vsel %vm4518_vm11, %v4741_v63, %v4740_v3  ;;  %v1646_v3 = vld [vmem:[%s6118_s11 + $0x9e8] sm:$0xff] }
 0x242   : > { %v4824_v62 = vperm.slane %v3963_v21, %v6274_v19  ;;  %v4744_v17 = vsel %vm4522_vm12, %v4743_v59, %v4742_v1  ;;  %v1758_v59 = vld [vmem:[%s6118_s11 + $0xd68] sm:$0xff] }
 0x243   : > { %v4785_v9 = vperm.slane %v3943_v18, %v6247_v45  ;;  %v4852_v47 = vsel %vm4490_vm4, %v4851_v13, %v4850_v25  ;;  %3551 = vadd.xlane.f32.xlu2 %v3550_v38  ;;  %v3595_v18 = vadd.f32 %v1644_v4, %v1643_v57  ;;  %v3553_v13 = vadd.f32 %v1616_v60, %v1615_v35  ;;  %v1757_v35 = vld [vmem:[%s6118_s11 + $0xd60] sm:$0xff] }
 0x244   : > { %v4825_v55 = vsel %vm4498_vm6, %v4824_v62, %v4823_v34  ;;  %3758 = vadd.xlane.f32.xlu1 %v3757_v23  ;;  %v3718_v34 = vadd.f32 %v1726_v16, %v1725_v58  ;;  %v3760_v62 = vadd.f32 %v1754_v30, %v1753_v11  ;;  %v1729_v60 = vld [vmem:[%s6118_s11 + $0xc80] sm:$0xff]  ;;  %v1730_v11 = vld [vmem:[%s6118_s11 + $0xc88] sm:$0xff] }
 0x245   : > { %v4786_v61 = vsel %vm4482_vm2, %v4785_v9, %v4784_v26  ;;  %3716 = vadd.xlane.f32.xlu0 %v3715_v33  ;;  %v1645_v30 = vld [vmem:[%s6118_s11 + $0x9e0] sm:$0xff] }
 0x246   : > { %v3570_v29 = vpop.xlane.xlu2 %3569 }
 0x247   : > { %v3944_v8 = vmul.f32 0.00390625, %v3570_v29  ;;  %v3528_v25 = vpop.xlane.xlu1 %3527  ;;  %v1727_v29 = vld [vmem:[%s6118_s11 + $0xc70] sm:$0xff] }
 0x248   : > { %v3504_v52 = vpop.xlane.xlu0 %3503  ;;  %v3930_v26 = vmul.f32 0.00390625, %v3528_v25  ;;  %v1712_v25 = vld [vmem:[%s6118_s11 + $0xbf8] sm:$0xff]  ;;  %v3721_v31 = vadd.f32 %v1728_v40, %v1727_v29 }
 0x249   : > { %v4787_v48 = vperm.slane %v3944_v8, %v6258_v0  ;;  %v3922_v54 = vmul.f32 0.00390625, %v3504_v52  ;;  %v1711_v8 = vld [vmem:[%s6118_s11 + $0xbf0] sm:$0xff] }
 0x24a   : > { %v4760_v14 = vperm.slane %v3930_v26, %v6268_v10 }
 0x24b   : > { %v4788_v51 = vsel %vm4486_vm3, %v4787_v48, %v4786_v61  ;;  %3719 = vadd.xlane.f32.xlu2 %v3718_v34  ;;  %v4745_v41 = vperm.slane %v3922_v54, %v6321_v22  ;;  %v3697_v48 = vadd.f32 %v1712_v25, %v1711_v8 }
 0x24c   : > { %v4761_v12 = vsel %vm4494_vm5, %v4760_v14, %v4759_v37  ;;  %3695 = vadd.xlane.f32.xlu1 %v3694_v46 }
 0x24d   : > { %3593 = vadd.xlane.f32.xlu0 %v3592_v44  ;;  %v4746_v16 = vsel %vm4526_vm13, %v4745_v41, %v4744_v17  ;;  %v3763_v44 = vadd.f32 %v1756_v53, %v1755_v15  ;;  %v1648_v15 = vld [vmem:[%s6118_s11 + $0x9f8] sm:$0xff] }
 0x24e   : > { %v3507_v50 = vpop.xlane.xlu2 %3506 }
 0x24f   : > { %v3923_v38 = vmul.f32 0.00390625, %v3507_v50  ;;  %v3672_v37 = vpop.xlane.xlu1 %3671 }
 0x250   : > { %v3630_v21 = vpop.xlane.xlu0 %3629  ;;  %v3978_v23 = vmul.f32 0.00390625, %v3672_v37  ;;  %v3766_v37 = vadd.f32 %v1758_v59, %v1757_v35  ;;  %v1734_v35 = vld [vmem:[%s6118_s11 + $0xca8] sm:$0xff] }
 0x251   : > { %v3964_v33 = vmul.f32 0.00390625, %v3630_v21  ;;  %v4747_v9 = vperm.slane %v3923_v38, %v6333_v39 }
 0x252   : > { %v4853_v61 = vperm.slane %v3978_v23, %v6268_v10 }
 0x253   : > { %v4826_v58 = vperm.slane %v3964_v33, %v6283_v27  ;;  %3596 = vadd.xlane.f32.xlu2 %v3595_v18  ;;  %v4748_v20 = vsel %vm4530_vm14, %v4747_v9, %v4746_v16  ;;  %v3598_v18 = vadd.f32 %v1646_v3, %v1645_v30  ;;  %v1731_v16 = vld [vmem:[%s6118_s11 + $0xc90] sm:$0xff] }
 0x254   : > { %v4854_v2 = vsel %vm4494_vm5, %v4853_v61, %v4852_v47  ;;  %3554 = vadd.xlane.f32.xlu1 %v3553_v13  ;;  %5105 = vmatmul.f32.vlgmr.msrb.gmra.mxu3 %v4748_v20  ;;  %v1759_v61 = vld [vmem:[%s6118_s11 + $0xd70] sm:$0xff]  ;;  %v1732_v20 = vld [vmem:[%s6118_s11 + $0xc98] sm:$0xff] }
 0x255   : > { %v4827_v28 = vsel %vm4502_vm7, %v4826_v58, %v4825_v55  ;;  %3761 = vadd.xlane.f32.xlu0 %v3760_v62  ;;  %v1760_v58 = vld [vmem:[%s6118_s11 + $0xd78] sm:$0xff] }
 0x256   : > { %v3633_v52 = vpop.xlane.xlu2 %3632  ;;  %v3769_v25 = vadd.f32 %v1760_v58, %v1759_v61 }
 0x257   : > { %v3965_v34 = vmul.f32 0.00390625, %v3633_v52  ;;  %v3573_v26 = vpop.xlane.xlu1 %3572 }
 0x258   : > { %v3531_v46 = vpop.xlane.xlu0 %3530  ;;  %v3945_v47 = vmul.f32 0.00390625, %v3573_v26 }
 0x259   : > { %v3931_v55 = vmul.f32 0.00390625, %v3531_v46  ;;  %v4828_v24 = vperm.slane %v3965_v34, %v6290_v36 }
 0x25a   : > { %v4789_v14 = vperm.slane %v3945_v47, %v6265_v6 }
 0x25b   : > { %v4762_v54 = vperm.slane %v3931_v55, %v6274_v19  ;;  %v4829_v63 = vsel %vm4506_vm8, %v4828_v24, %v4827_v28  ;;  %3764 = vadd.xlane.f32.xlu2 %v3763_v44  ;;  %v1647_v28 = vld [vmem:[%s6118_s11 + $0x9f0] sm:$0xff]  ;;  %v1761_v24 = vld [vmem:[%s6118_s11 + $0xd80] sm:$0xff] }
 0x25c   : > { %v4790_v57 = vsel %vm4490_vm4, %v4789_v14, %v4788_v51  ;;  %3722 = vadd.xlane.f32.xlu1 %v3721_v31  ;;  %v3601_v26 = vadd.f32 %v1648_v15, %v1647_v28  ;;  %v1735_v14 = vld [vmem:[%s6118_s11 + $0xcb0] sm:$0xff] }
 0x25d   : > { %v4763_v4 = vsel %vm4498_vm6, %v4762_v54, %v4761_v12  ;;  %3698 = vadd.xlane.f32.xlu0 %v3697_v48  ;;  %v3724_v12 = vadd.f32 %v1730_v11, %v1729_v60  ;;  %v1736_v54 = vld [vmem:[%s6118_s11 + $0xcb8] sm:$0xff]  ;;  %v4194_v28 = vld [vmem:[#allocation6 + $0x570] sm:$0xff] }
 0x25e   : > { %v3576_v41 = vpop.xlane.xlu2 %3575  ;;  %v3733_v3 = vadd.f32 %v1736_v54, %v1735_v14  ;;  %v1739_v14 = vld [vmem:[%s6118_s11 + $0xcd0] sm:$0xff]  ;;  %v1740_v54 = vld [vmem:[%s6118_s11 + $0xcd8] sm:$0xff] }
 0x25f   : > { %v3946_v50 = vmul.f32 0.00390625, %v3576_v41  ;;  %v3534_v1 = vpop.xlane.xlu1 %3533 }
 0x260   : > { %v3675_v38 = vpop.xlane.xlu0 %3674  ;;  %v3932_v21 = vmul.f32 0.00390625, %v3534_v1 }
 0x261   : > { %v3979_v51 = vmul.f32 0.00390625, %v3675_v38  ;;  %v4791_v23 = vperm.slane %v3946_v50, %v6268_v10 }
 0x262   : > { %v4764_v33 = vperm.slane %v3932_v21, %v6283_v27  ;;  %v1737_v21 = vld [vmem:[%s6118_s11 + $0xcc0] sm:$0xff] }
 0x263   : > { %v4855_v13 = vperm.slane %v3979_v51, %v6274_v19  ;;  %v4792_v62 = vsel %vm4494_vm5, %v4791_v23, %v4790_v57  ;;  %3767 = vadd.xlane.f32.xlu2 %v3766_v37  ;;  %v1762_v57 = vld [vmem:[%s6118_s11 + $0xd88] sm:$0xff]  ;;  %v4195_v23 = vld [vmem:[#allocation6 + $0x578] sm:$0xff] }
 0x264   : > { %v4765_v9 = vsel %vm4502_vm7, %v4764_v33, %v4763_v4  ;;  %3725 = vadd.xlane.f32.xlu1 %v3724_v12  ;;  %v1733_v4 = vld [vmem:[%s6118_s11 + $0xca0] sm:$0xff]  ;;  %v3772_v41 = vadd.f32 %v1762_v57, %v1761_v24  ;;  %v1738_v33 = vld [vmem:[%s6118_s11 + $0xcc8] sm:$0xff]  ;;  %5149 = vmatpush.msra.mxu2 %v4195_v23  ;;  %v1768_v24 = vld [vmem:[%s6118_s11 + $0xdb8] sm:$0xff] }
 0x265   : > { %v4856_v17 = vsel %vm4498_vm6, %v4855_v13, %v4854_v2  ;;  %3599 = vadd.xlane.f32.xlu0 %v3598_v18  ;;  %v3727_v2 = vadd.f32 %v1732_v20, %v1731_v16  ;;  %v3730_v50 = vadd.f32 %v1734_v35, %v1733_v4  ;;  %v1765_v12 = vld [vmem:[%s6118_s11 + $0xda0] sm:$0xff]  ;;  %v1766_v18 = vld [vmem:[%s6118_s11 + $0xda8] sm:$0xff]  ;;  %v1763_v13 = vld [vmem:[%s6118_s11 + $0xd90] sm:$0xff] }
 0x266   : > { %v3537_v53 = vpop.xlane.xlu2 %3536  ;;  %v3778_v20 = vadd.f32 %v1766_v18, %v1765_v12  ;;  %5150 = vmatpush.msra.mxu2 %v4194_v28  ;;  %v4188_v12 = vld [vmem:[#allocation6 + $0x540] sm:$0xff]  ;;  %v1771_v23 = vld [vmem:[%s6118_s11 + $0xdd0] sm:$0xff] }
 0x267   : > { %v3933_v29 = vmul.f32 0.00390625, %v3537_v53  ;;  %v3678_v40 = vpop.xlane.xlu1 %3677 }
 0x268   : > { %v3636_v8 = vpop.xlane.xlu0 %3635  ;;  %v3980_v52 = vmul.f32 0.00390625, %v3678_v40 }
 0x269   : > { %v3966_v34 = vmul.f32 0.00390625, %v3636_v8  ;;  %v4766_v46 = vperm.slane %v3933_v29, %v6290_v36  ;;  %v4193_v8 = vld [vmem:[#allocation6 + $0x568] sm:$0xff] }
 0x26a   : > { %v4857_v44 = vperm.slane %v3980_v52, %v6283_v27  ;;  %5151 = vmatpush.msra.mxu2 %v4193_v8 }
 0x26b   : > { %v4830_v47 = vperm.slane %v3966_v34, %v6295_v49  ;;  %v4767_v55 = vsel %vm4506_vm8, %v4766_v46, %v4765_v9  ;;  %3770 = vadd.xlane.f32.xlu2 %v3769_v25  ;;  %v1764_v9 = vld [vmem:[%s6118_s11 + $0xd98] sm:$0xff] }
 0x26c   : > { %v4858_v31 = vsel %vm4502_vm7, %v4857_v44, %v4856_v17  ;;  %3728 = vadd.xlane.f32.xlu1 %v3727_v2  ;;  %v3775_v29 = vadd.f32 %v1764_v9, %v1763_v13  ;;  %v1767_v2 = vld [vmem:[%s6118_s11 + $0xdb0] sm:$0xff]  ;;  %v1741_v44 = vld [vmem:[%s6118_s11 + $0xce0] sm:$0xff]  ;;  %v4187_v13 = vld [vmem:[#allocation6 + $0x538] sm:$0xff] }
 0x26d   : > { %v7068_v48 = vsel %vm4510_vm9, %v4830_v47, %v4829_v63  ;;  %3602 = vadd.xlane.f32.xlu0 %v3601_v26  ;;  %v4192_v26 = vld [vmem:[#allocation6 + $0x560] sm:$0xff]  ;;  %v1742_v47 = vld [vmem:[%s6118_s11 + $0xce8] sm:$0xff]  ;;  %v1744_v9 = vld [vmem:[%s6118_s11 + $0xcf8] sm:$0xff] }
 0x26e   : > { %v3681_v59 = vpop.xlane.xlu2 %3680  ;;  %5152 = vmatpush.msra.mxu2 %v4192_v26  ;;  %v1773_v26 = vld [vmem:[%s6118_s11 + $0xde0] sm:$0xff] }
 0x26f   : > { %v3981_v60 = vmul.f32 0.00390625, %v3681_v59  ;;  %v7076_v11 = vpop.xlane.xlu1 %3638  ;;  %v3742_v59 = vadd.f32 %v1742_v47, %v1741_v44  ;;  %v4163_v44 = vld [vmem:[#allocation6 + $0x478] sm:$0xff] }
 0x270   : > { %v3579_v30 = vpop.xlane.xlu0 %3578  ;;  %v4183_v47 = vld [vmem:[#allocation6 + $0x518] sm:$0xff]  ;;  %5109 = vmatpush.msra.mxu0 %v4163_v44  ;;  %v4205_v44 = vld [vmem:[#allocation6 + $0x5c8] sm:$0xff] }
 0x271   : > { %v3947_v63 = vmul.f32 0.00390625, %v3579_v30  ;;  %v4859_v1 = vperm.slane %v3981_v60, %v6290_v36  ;;  %v4190_v60 = vld [vmem:[#allocation6 + $0x550] sm:$0xff] }
 0x273   : > { %v4793_v38 = vperm.slane %v3947_v63, %v6274_v19  ;;  %v4860_v37 = vsel %vm4506_vm8, %v4859_v1, %v4858_v31  ;;  %3734 = vadd.xlane.f32.xlu2 %v3733_v3  ;;  %v4191_v31 = vld [vmem:[#allocation6 + $0x558] sm:$0xff]  ;;  %v3781_v3 = vadd.f32 %v1768_v24, %v1767_v2  ;;  %v3739_v63 = vadd.f32 %v1740_v54, %v1739_v14  ;;  %v1775_v24 = vld [vmem:[%s6118_s11 + $0xdf0] sm:$0xff] }
 0x274   : > { %3773 = vadd.xlane.f32.xlu1 %v3772_v41  ;;  %5153 = vmatpush.msra.mxu2 %v4191_v31  ;;  %v1774_v31 = vld [vmem:[%s6118_s11 + $0xde8] sm:$0xff]  ;;  %v1776_v14 = vld [vmem:[%s6118_s11 + $0xdf8] sm:$0xff] }
 0x275   : > { %v4794_v51 = vsel %vm4498_vm6, %v4793_v38, %v4792_v62  ;;  %3731 = vadd.xlane.f32.xlu0 %v3730_v50  ;;  %v3736_v62 = vadd.f32 %v1738_v33, %v1737_v21  ;;  %v4189_v50 = vld [vmem:[#allocation6 + $0x548] sm:$0xff]  ;;  %v1743_v21 = vld [vmem:[%s6118_s11 + $0xcf0] sm:$0xff]  ;;  %v1772_v33 = vld [vmem:[%s6118_s11 + $0xdd8] sm:$0xff] }
 0x276   : > { %v3540_v17 = vpop.xlane.xlu2 %3539  ;;  %5154 = vmatpush.msra.mxu2 %v4190_v60  ;;  %v3787_v28 = vadd.f32 %v1772_v33, %v1771_v23  ;;  %v4182_v60 = vld [vmem:[#allocation6 + $0x510] sm:$0xff] }
 0x277   : > { %v3934_v61 = vmul.f32 0.00390625, %v3540_v17  ;;  %v3705_v58 = vpop.xlane.xlu1 %3704  ;;  %v1769_v17 = vld [vmem:[%s6118_s11 + $0xdc0] sm:$0xff] }
 0x278   : > { %v3702_v16 = vpop.xlane.xlu0 %3701  ;;  %v3989_v15 = vmul.f32 0.00390625, %v3705_v58  ;;  %5155 = vmatpush.msra.mxu2 %v4189_v50 }
 0x279   : > { %v3988_v53 = vmul.f32 0.00390625, %v3702_v16  ;;  %v4768_v40 = vperm.slane %v3934_v61, %v6295_v49  ;;  %v1770_v61 = vld [vmem:[%s6118_s11 + $0xdc8] sm:$0xff] }
 0x27a   : > { %v4874_v25 = vperm.slane %v3989_v15, %v6241_v42  ;;  %5156 = vmatpush.msra.mxu2 %v4188_v12  ;;  %v4186_v15 = vld [vmem:[#allocation6 + $0x530] sm:$0xff]  ;;  %v4159_v12 = vld [vmem:[#allocation6 + $0x458] sm:$0xff] }
 0x27b   : > { %v4873_v52 = vperm.slane %v3988_v53, %v6232_v32  ;;  %v7092_v34 = vsel %vm4510_vm9, %v4768_v40, %v4767_v55  ;;  %3779 = vadd.xlane.f32.xlu2 %v3778_v20  ;;  %v4185_v40 = vld [vmem:[#allocation6 + $0x528] sm:$0xff] }
 0x27c   : > { %3737 = vadd.xlane.f32.xlu1 %v3736_v62  ;;  %5157 = vmatpush.msra.mxu2 %v4187_v13  ;;  %v3784_v62 = vadd.f32 %v1770_v61, %v1769_v17  ;;  %v4210_v17 = vld [vmem:[#allocation6 + $0x5f0] sm:$0xff] }
 0x27d   : > { %v4875_v46 = vsel %vm4474_vm0, %v4874_v25, %v4873_v52  ;;  %3776 = vadd.xlane.f32.xlu0 %v3775_v29  ;;  %v4184_v52 = vld [vmem:[#allocation6 + $0x520] sm:$0xff] }
 0x27e   : > { %v3684_v57 = vpop.xlane.xlu2 %3683  ;;  %5158 = vmatpush.msra.mxu2 %v4186_v15 }
 0x27f   : > { %v3982_v4 = vmul.f32 0.00390625, %v3684_v57  ;;  %v7101_v35 = vpop.xlane.xlu1 %3641 }
 0x280   : > { %v3582_v55 = vpop.xlane.xlu0 %3581  ;;  %5159 = vmatpush.msra.mxu2 %v4185_v40  ;;  %v4207_v40 = vld [vmem:[#allocation6 + $0x5d8] sm:$0xff] }
 0x281   : > { %v3948_v30 = vmul.f32 0.00390625, %v3582_v55  ;;  %v4861_v41 = vperm.slane %v3982_v4, %v6295_v49 }
 0x282   : > { %5160 = vmatpush.msra.mxu2 %v4184_v52 }
 0x283   : > { %v4795_v1 = vperm.slane %v3948_v30, %v6283_v27  ;;  %v7106_v38 = vsel %vm4510_vm9, %v4861_v41, %v4860_v37  ;;  %3743 = vadd.xlane.f32.xlu2 %v3742_v59  ;;  %v4162_v59 = vld [vmem:[#allocation6 + $0x470] sm:$0xff]  ;;  %v3793_v30 = vadd.f32 %v1776_v14, %v1775_v24  ;;  %v4181_v41 = vld [vmem:[#allocation6 + $0x508] sm:$0xff]  ;;  %v4151_v24 = vld [vmem:[#allocation6 + $0x418] sm:$0xff] }
 0x284   : > { %3782 = vadd.xlane.f32.xlu1 %v3781_v3  ;;  %5161 = vmatpush.msra.mxu2 %v4183_v47  ;;  %v4152_v47 = vld [vmem:[#allocation6 + $0x420] sm:$0xff]  ;;  %v4179_v14 = vld [vmem:[#allocation6 + $0x4f8] sm:$0xff] }
 0x285   : > { %v4796_v18 = vsel %vm4502_vm7, %v4795_v1, %v4794_v51  ;;  %3740 = vadd.xlane.f32.xlu0 %v3739_v63  ;;  %v3745_v51 = vadd.f32 %v1744_v9, %v1743_v21  ;;  %5110 = vmatpush.msra.mxu0 %v4162_v59  ;;  %v4161_v63 = vld [vmem:[#allocation6 + $0x468] sm:$0xff]  ;;  %v4160_v1 = vld [vmem:[#allocation6 + $0x460] sm:$0xff]  ;;  %v4158_v9 = vld [vmem:[#allocation6 + $0x450] sm:$0xff] }
 0x286   : > { %v3585_v58 = vpop.xlane.xlu2 %3584  ;;  %5162 = vmatpush.msra.mxu2 %v4182_v60  ;;  %v4180_v21 = vld [vmem:[#allocation6 + $0x500] sm:$0xff]  ;;  %5129 = vmatpush.msra.mxu1 %v4179_v14 }
 0x287   : > { %v3949_v16 = vmul.f32 0.00390625, %v3585_v58  ;;  %v7115_v20 = vpop.xlane.xlu1 %3542  ;;  %5111 = vmatpush.msra.mxu0 %v4161_v63  ;;  %v3967_v63 = vmul.f32 0.00390625, %v7076_v11  ;;  %v4148_v11 = vld [vmem:[#allocation6 + $0x400] sm:$0xff] }
 0x288   : > { %v3708_v37 = vpop.xlane.xlu0 %3707  ;;  %5163 = vmatpush.msra.mxu2 %v4181_v41 }
 0x289   : > { %v3990_v53 = vmul.f32 0.00390625, %v3708_v37  ;;  %v4797_v29 = vperm.slane %v3949_v16, %v6290_v36  ;;  %5112 = vmatpush.msra.mxu0 %v4160_v1  ;;  %v4157_v16 = vld [vmem:[#allocation6 + $0x448] sm:$0xff] }
 0x28a   : > { %5164 = vmatpush.msra.mxu2 %v4180_v21  ;;  %v4209_v37 = vld [vmem:[#allocation6 + $0x5e8] sm:$0xff]  ;;  %v3968_v21 = vmul.f32 0.00390625, %v7101_v35 }
 0x28b   : > { %v4876_v8 = vperm.slane %v3990_v53, %v6244_v43  ;;  %v7120_v25 = vsel %vm4506_vm8, %v4797_v29, %v4796_v18  ;;  %3788 = vadd.xlane.f32.xlu2 %v3787_v28  ;;  %v4211_v18 = vld [vmem:[#allocation6 + $0x5f8] sm:$0xff]  ;;  %5113 = vmatpush.msra.mxu0 %v4159_v12  ;;  %v4156_v53 = vld [vmem:[#allocation6 + $0x440] sm:$0xff]  ;;  %v4149_v12 = vld [vmem:[#allocation6 + $0x408] sm:$0xff] }
 0x28c   : > { %3746 = vadd.xlane.f32.xlu1 %v3745_v51  ;;  %5169 = vmatpush.msra.mxu3 %v4211_v18  ;;  %v4208_v51 = vld [vmem:[#allocation6 + $0x5e0] sm:$0xff]  ;;  %v4155_v29 = vld [vmem:[#allocation6 + $0x438] sm:$0xff]  ;;  %v4177_v18 = vld [vmem:[#allocation6 + $0x4e8] sm:$0xff] }
 0x28d   : > { %v4877_v2 = vsel %vm4478_vm1, %v4876_v8, %v4875_v46  ;;  %3785 = vadd.xlane.f32.xlu0 %v3784_v62  ;;  %v3790_v46 = vadd.f32 %v1774_v31, %v1773_v26  ;;  %5114 = vmatpush.msra.mxu0 %v4158_v9  ;;  %v4206_v26 = vld [vmem:[#allocation6 + $0x5d0] sm:$0xff]  ;;  %v4204_v31 = vld [vmem:[#allocation6 + $0x5c0] sm:$0xff] }
 0x28e   : > { %v3711_v54 = vpop.xlane.xlu2 %3710  ;;  %5170 = vmatpush.msra.mxu3 %v4210_v17 }
 0x28f   : > { %v3991_v57 = vmul.f32 0.00390625, %v3711_v54  ;;  %v7127_v4 = vpop.xlane.xlu1 %3686  ;;  %5115 = vmatpush.msra.mxu0 %v4157_v16  ;;  %v4203_v54 = vld [vmem:[#allocation6 + $0x5b8] sm:$0xff]  ;;  %v4200_v16 = vld [vmem:[#allocation6 + $0x5a0] sm:$0xff] }
 0x290   : > { %v7129_v55 = vpop.xlane.xlu0 %3644  ;;  %5171 = vmatpush.msra.mxu3 %v4209_v37  ;;  %v4832_v37 = vperm.slane %v3967_v63, %v6302_v56  ;;  %v4170_v63 = vld [vmem:[#allocation6 + $0x4b0] sm:$0xff] }
 0x291   : > { %v4878_v3 = vperm.slane %v3991_v57, %v6247_v45  ;;  %5116 = vmatpush.msra.mxu0 %v4156_v53 }
 0x292   : > { %5172 = vmatpush.msra.mxu3 %v4208_v51 }
 0x293   : > { %v7133_v50 = vsel %vm4482_vm2, %v4878_v3, %v4877_v2  ;;  %5117 = vmatpush.msra.mxu0 %v4155_v29  ;;  %v4202_v3 = vld [vmem:[#allocation6 + $0x5b0] sm:$0xff] }
 0x294   : > { %3794 = vadd.xlane.f32.xlu1 %v3793_v30  ;;  %5173 = vmatpush.msra.mxu3 %v4207_v40  ;;  %v4178_v30 = vld [vmem:[#allocation6 + $0x4f0] sm:$0xff] }
 0x295   : > { %3791 = vadd.xlane.f32.xlu0 %v3790_v46  ;;  %v4150_v46 = vld [vmem:[#allocation6 + $0x410] sm:$0xff]  ;;  %5130 = vmatpush.msra.mxu1 %v4178_v30 }
 0x296   : > { %v7135_v23 = vpop.xlane.xlu2 %3545  ;;  %5174 = vmatpush.msra.mxu3 %v4206_v26 }
 0x297   : > { %v3753_v33 = vpop.xlane.xlu1 %3752  ;;  %5131 = vmatpush.msra.mxu1 %v4177_v18 }
 0x298   : > { %v3750_v13 = vpop.xlane.xlu0 %3749  ;;  %v4005_v61 = vmul.f32 0.00390625, %v3753_v33  ;;  %5175 = vmatpush.msra.mxu3 %v4205_v44  ;;  %v4201_v33 = vld [vmem:[#allocation6 + $0x5a8] sm:$0xff] }
 0x299   : > { %v4004_v58 = vmul.f32 0.00390625, %v3750_v13  ;;  %v3969_v13 = vmul.f32 0.00390625, %v7129_v55  ;;  %v4175_v55 = vld [vmem:[#allocation6 + $0x4d8] sm:$0xff]  ;;  %v4173_v44 = vld [vmem:[#allocation6 + $0x4c8] sm:$0xff] }
 0x29a   : > { %v4905_v28 = vperm.slane %v4005_v61, %v6241_v42  ;;  %v4154_v42 = vld [vmem:[#allocation6 + $0x430] sm:$0xff]  ;;  %5176 = vmatpush.msra.mxu3 %v4204_v31 }
 0x29b   : > { %v4904_v15 = vperm.slane %v4004_v58, %v6232_v32  ;;  %5118 = vmatpush.msra.mxu0 %v4154_v42  ;;  %v4153_v32 = vld [vmem:[#allocation6 + $0x428] sm:$0xff]  ;;  %v4176_v58 = vld [vmem:[#allocation6 + $0x4e0] sm:$0xff]  ;;  %v4836_v53 = vperm.slane %v3969_v13, %v6315_v7  ;;  %v4833_v42 = vsel %vm4514_vm10, %v4832_v37, %v7068_v48  ;;  %v4171_v48 = vld [vmem:[#allocation6 + $0x4b8] sm:$0xff] }
 0x29c   : > { %5177 = vmatpush.msra.mxu3 %v4203_v54  ;;  %5132 = vmatpush.msra.mxu1 %v4176_v58  ;;  %v4172_v54 = vld [vmem:[#allocation6 + $0x4c0] sm:$0xff]  ;;  %v3936_v58 = vmul.f32 0.00390625, %v7135_v23 }
 0x29d   : > { %v4906_v62 = vsel %vm4474_vm0, %v4905_v28, %v4904_v15  ;;  %5119 = vmatpush.msra.mxu0 %v4153_v32  ;;  %v4199_v15 = vld [vmem:[#allocation6 + $0x598] sm:$0xff] }
 0x29e   : > { %v7140_v8 = vpop.xlane.xlu2 %3689  ;;  %5178 = vmatpush.msra.mxu3 %v4202_v3  ;;  %5133 = vmatpush.msra.mxu1 %v4175_v55  ;;  %v4772_v55 = vperm.slane %v3936_v58, %v6312_v5 }
 0x29f   : > { %v3648_v52 = vpop.xlane.xlu1 %3647  ;;  %5120 = vmatpush.msra.mxu0 %v4152_v47  ;;  %v4197_v47 = vld [vmem:[#allocation6 + $0x588] sm:$0xff] }
 0x2a0   : > { %v7142_v2 = vpop.xlane.xlu0 %3587  ;;  %5179 = vmatpush.msra.mxu3 %v4201_v33  ;;  %v3970_v61 = vmul.f32 0.00390625, %v3648_v52  ;;  %v4198_v52 = vld [vmem:[#allocation6 + $0x590] sm:$0xff]  ;;  %v4167_v33 = vld [vmem:[#allocation6 + $0x498] sm:$0xff] }
 0x2a1   : > { %5121 = vmatpush.msra.mxu0 %v4151_v24 }
 0x2a2   : > { %5180 = vmatpush.msra.mxu3 %v4200_v16  ;;  %v4838_v29 = vperm.slane %v3970_v61, %v6321_v22  ;;  %v4166_v61 = vld [vmem:[#allocation6 + $0x490] sm:$0xff] }
 0x2a3   : > { %5122 = vmatpush.msra.mxu0 %v4150_v46 }
 0x2a4   : > { %5181 = vmatpush.msra.mxu3 %v4199_v15  ;;  %v4227_v15 = vld [vmem:[#allocation6 + $0x678] sm:$0xff] }
 0x2a5   : > { %5123 = vmatpush.msra.mxu0 %v4149_v12  ;;  %v4168_v12 = vld [vmem:[#allocation6 + $0x4a0] sm:$0xff] }
 0x2a6   : > { %v7144_v57 = vpop.xlane.xlu2 %3548  ;;  %5182 = vmatpush.msra.mxu3 %v4198_v52  ;;  %v3983_v52 = vmul.f32 0.00390625, %v7127_v4 }
 0x2a7   : > { %v3756_v59 = vpop.xlane.xlu1 %3755  ;;  %5124 = vmatpush.msra.mxu0 %v4148_v11  ;;  %v3935_v11 = vmul.f32 0.00390625, %v7115_v20  ;;  %v3937_v16 = vmul.f32 0.00390625, %v7144_v57  ;;  %v4226_v57 = vld [vmem:[#allocation6 + $0x670] sm:$0xff] }
 0x2a8   : > { %v3714_v60 = vpop.xlane.xlu0 %3713  ;;  %v4006_v41 = vmul.f32 0.00390625, %v3756_v59  ;;  %5183 = vmatpush.msra.mxu3 %v4197_v47  ;;  %v4196_v59 = vld [vmem:[#allocation6 + $0x580] sm:$0xff]  ;;  %v4863_v4 = vperm.slane %v3983_v52, %v6302_v56  ;;  %v4238_v52 = vld [vmem:[#allocation6 + $0x6d0] sm:$0xff] }
 0x2a9   : > { %v3992_v1 = vmul.f32 0.00390625, %v3714_v60  ;;  %5189 = vmatpush.msrb.mxu0 %v4227_v15  ;;  %v4239_v15 = vld [vmem:[#allocation6 + $0x6d8] sm:$0xff] }
 0x2aa   : > { %v4907_v9 = vperm.slane %v4006_v41, %v6244_v43  ;;  %v4834_v43 = vperm.slane %v3968_v21, %v6312_v5  ;;  %5184 = vmatpush.msra.mxu3 %v4196_v59 }
 0x2ab   : > { %v4880_v17 = vperm.slane %v3992_v1, %v6258_v0  ;;  %v4169_v1 = vld [vmem:[#allocation6 + $0x4a8] sm:$0xff]  ;;  %5190 = vmatpush.msrb.mxu0 %v4226_v57  ;;  %v4218_v57 = vld [vmem:[#allocation6 + $0x630] sm:$0xff] }
 0x2ac   : > { %v4908_v35 = vsel %vm4478_vm1, %v4907_v9, %v4906_v62  ;;  %v4835_v32 = vsel %vm4518_vm11, %v4834_v43, %v4833_v42  ;;  %v4770_v43 = vperm.slane %v3935_v11, %v6302_v56 }
 0x2ad   : > { %v7155_v28 = vsel %vm4486_vm3, %v4880_v17, %v7133_v50  ;;  %v4174_v50 = vld [vmem:[#allocation6 + $0x4d0] sm:$0xff]  ;;  %v4837_v31 = vsel %vm4522_vm12, %v4836_v53, %v4835_v32  ;;  %v4774_v53 = vperm.slane %v3937_v16, %v6315_v7  ;;  %v3984_v32 = vmul.f32 0.00390625, %v7140_v8  ;;  %v4223_v8 = vld [vmem:[#allocation6 + $0x658] sm:$0xff] }
 0x2ae   : > { %v7159_v51 = vpop.xlane.xlu2 %3692  ;;  %5134 = vmatpush.msra.mxu1 %v4174_v50  ;;  %v4839_v14 = vsel %vm4526_vm13, %v4838_v29, %v4837_v31  ;;  %v4771_v50 = vsel %vm4514_vm10, %v4770_v43, %v7092_v34  ;;  %v4224_v34 = vld [vmem:[#allocation6 + $0x660] sm:$0xff]  ;;  %v4219_v43 = vld [vmem:[#allocation6 + $0x638] sm:$0xff] }
 0x2af   : > { %v3651_v62 = vpop.xlane.xlu1 %3650  ;;  %v3985_v31 = vmul.f32 0.00390625, %v7159_v51  ;;  %v4243_v51 = vld [vmem:[#allocation6 + $0x6f8] sm:$0xff] }
 0x2b0   : > { %v7162_v40 = vpop.xlane.xlu0 %3590  ;;  %v3971_v26 = vmul.f32 0.00390625, %v3651_v62  ;;  %5135 = vmatpush.msra.mxu1 %v4173_v44  ;;  %v4225_v44 = vld [vmem:[#allocation6 + $0x668] sm:$0xff] }
 0x2b1   : > { %5191 = vmatpush.msrb.mxu0 %v4225_v44  ;;  %v4237_v44 = vld [vmem:[#allocation6 + $0x6c8] sm:$0xff] }
 0x2b2   : > { %v4840_v24 = vperm.slane %v3971_v26, %v6333_v39  ;;  %5136 = vmatpush.msra.mxu1 %v4172_v54  ;;  %v4773_v26 = vsel %vm4518_vm11, %v4772_v55, %v4771_v50  ;;  %v3951_v50 = vmul.f32 0.00390625, %v7162_v40  ;;  %v4215_v40 = vld [vmem:[#allocation6 + $0x618] sm:$0xff] }
 0x2b3   : > { %v4775_v47 = vsel %vm4522_vm12, %v4774_v53, %v4773_v26  ;;  %5192 = vmatpush.msrb.mxu0 %v4224_v34  ;;  %v3950_v53 = vmul.f32 0.00390625, %v7142_v2  ;;  %v4217_v26 = vld [vmem:[#allocation6 + $0x628] sm:$0xff] }
 0x2b4   : > { %v4841_v60 = vsel %vm4530_vm14, %v4840_v24, %v4839_v14  ;;  %5137 = vmatpush.msra.mxu1 %v4171_v48  ;;  %v4867_v48 = vperm.slane %v3985_v31, %v6315_v7  ;;  %v4216_v31 = vld [vmem:[#allocation6 + $0x620] sm:$0xff] }
 0x2b5   : > { %5165 = vmatmul.f32.vlgmr.msra.gmra.mxu2 %v4841_v60  ;;  %v4865_v60 = vperm.slane %v3984_v32, %v6312_v5  ;;  %5193 = vmatpush.msrb.mxu0 %v4223_v8 }
 0x2b6   : > { %v3552_v46 = vpop.xlane.xlu2 %3551  ;;  %5138 = vmatpush.msra.mxu1 %v4170_v63 }
 0x2b7   : > { %v3759_v30 = vpop.xlane.xlu1 %3758  ;;  %v3938_v37 = vmul.f32 0.00390625, %v3552_v46 }
 0x2b8   : > { %v7171_v3 = vpop.xlane.xlu0 %3716  ;;  %v4007_v41 = vmul.f32 0.00390625, %v3759_v30  ;;  %5139 = vmatpush.msra.mxu1 %v4169_v1  ;;  %v4222_v1 = vld [vmem:[#allocation6 + $0x650] sm:$0xff] }
 0x2b9   : > { %v4776_v20 = vperm.slane %v3938_v37, %v6321_v22  ;;  %5194 = vmatpush.msrb.mxu0 %v4222_v1  ;;  %v4220_v37 = vld [vmem:[#allocation6 + $0x640] sm:$0xff] }
 0x2ba   : > { %v4909_v21 = vperm.slane %v4007_v41, %v6247_v45  ;;  %5140 = vmatpush.msra.mxu1 %v4168_v12  ;;  %v4165_v45 = vld [vmem:[#allocation6 + $0x488] sm:$0xff] }
 0x2bb   : > { %v4777_v54 = vsel %vm4526_vm13, %v4776_v20, %v4775_v47  ;;  %v4799_v47 = vperm.slane %v3950_v53, %v6295_v49  ;;  %v3993_v53 = vmul.f32 0.00390625, %v7171_v3 }
 0x2bc   : > { %v7175_v18 = vsel %vm4482_vm2, %v4909_v21, %v4908_v35  ;;  %5141 = vmatpush.msra.mxu1 %v4167_v33  ;;  %v4164_v35 = vld [vmem:[#allocation6 + $0x480] sm:$0xff]  ;;  %v4864_v21 = vsel %vm4514_vm10, %v4863_v4, %v7106_v38  ;;  %v4242_v33 = vld [vmem:[#allocation6 + $0x6f0] sm:$0xff] }
 0x2bd   : > { %v4240_v38 = vld [vmem:[#allocation6 + $0x6e0] sm:$0xff]  ;;  %v4800_v4 = vsel %vm4510_vm9, %v4799_v47, %v7120_v25  ;;  %v4233_v25 = vld [vmem:[#allocation6 + $0x6a8] sm:$0xff] }
 0x2be   : > { %v7177_v13 = vpop.xlane.xlu2 %3719  ;;  %5142 = vmatpush.msra.mxu1 %v4166_v61  ;;  %v4221_v61 = vld [vmem:[#allocation6 + $0x648] sm:$0xff] }
 0x2bf   : > { %v3696_v9 = vpop.xlane.xlu1 %3695  ;;  %5195 = vmatpush.msrb.mxu0 %v4221_v61  ;;  %v4212_v61 = vld [vmem:[#allocation6 + $0x600] sm:$0xff] }
 0x2c0   : > { %v7179_v17 = vpop.xlane.xlu0 %3593  ;;  %5143 = vmatpush.msra.mxu1 %v4165_v45  ;;  %v3986_v14 = vmul.f32 0.00390625, %v3696_v9  ;;  %v4866_v9 = vsel %vm4518_vm11, %v4865_v60, %v4864_v21  ;;  %v4241_v45 = vld [vmem:[#allocation6 + $0x6e8] sm:$0xff] }
 0x2c1   : > { %v4868_v11 = vsel %vm4522_vm12, %v4867_v48, %v4866_v9  ;;  %5196 = vmatpush.msrb.mxu0 %v4220_v37  ;;  %v4214_v48 = vld [vmem:[#allocation6 + $0x610] sm:$0xff]  ;;  %v4213_v21 = vld [vmem:[#allocation6 + $0x608] sm:$0xff] }
 0x2c2   : > { %5144 = vmatpush.msra.mxu1 %v4164_v35  ;;  %v4869_v30 = vperm.slane %v3986_v14, %v6321_v22  ;;  %v4236_v14 = vld [vmem:[#allocation6 + $0x6c0] sm:$0xff] }
 0x2c3   : > { %5197 = vmatpush.msrb.mxu0 %v4219_v43  ;;  %v4229_v43 = vld [vmem:[#allocation6 + $0x688] sm:$0xff] }
 0x2c4   : > { %5209 = vmatpush.msrb.mxu1 %v4243_v51  ;;  %v4870_v16 = vsel %vm4526_vm13, %v4869_v30, %v4868_v11 }
 0x2c5   : > { %5198 = vmatpush.msrb.mxu0 %v4218_v57  ;;  %v3994_v57 = vmul.f32 0.00390625, %v7177_v13 }
 0x2c6   : > { %v7187_v29 = vpop.xlane.xlu2 %3596  ;;  %5210 = vmatpush.msrb.mxu1 %v4242_v33 }
 0x2c7   : > { %v3555_v23 = vpop.xlane.xlu1 %3554  ;;  %v3953_v32 = vmul.f32 0.00390625, %v7187_v29  ;;  %5199 = vmatpush.msrb.mxu0 %v4217_v26  ;;  %v4235_v29 = vld [vmem:[#allocation6 + $0x6b8] sm:$0xff]  ;;  %v4884_v47 = vperm.slane %v3994_v57, %v6268_v10 }
 0x2c8   : > { %v7190_v62 = vpop.xlane.xlu0 %3761  ;;  %v3939_v42 = vmul.f32 0.00390625, %v3555_v23  ;;  %5211 = vmatpush.msrb.mxu1 %v4241_v45  ;;  %v4231_v45 = vld [vmem:[#allocation6 + $0x698] sm:$0xff] }
 0x2c9   : > { %5200 = vmatpush.msrb.mxu0 %v4216_v31  ;;  %v4008_v3 = vmul.f32 0.00390625, %v7190_v62 }
 0x2ca   : > { %v4778_v24 = vperm.slane %v3939_v42, %v6333_v39  ;;  %5212 = vmatpush.msrb.mxu1 %v4240_v38  ;;  %v3952_v42 = vmul.f32 0.00390625, %v7179_v17  ;;  %v4805_v17 = vperm.slane %v3953_v32, %v6315_v7  ;;  %v4230_v38 = vld [vmem:[#allocation6 + $0x690] sm:$0xff]  ;;  %v4882_v32 = vperm.slane %v3993_v53, %v6265_v6 }
 0x2cb   : > { %5201 = vmatpush.msrb.mxu0 %v4215_v40 }
 0x2cc   : > { %v4779_v59 = vsel %vm4530_vm14, %v4778_v24, %v4777_v54  ;;  %5213 = vmatpush.msrb.mxu1 %v4239_v15  ;;  %v4801_v24 = vperm.slane %v3951_v50, %v6302_v56  ;;  %v4803_v54 = vperm.slane %v3952_v42, %v6312_v5  ;;  %v4228_v15 = vld [vmem:[#allocation6 + $0x680] sm:$0xff]  ;;  %v4883_v13 = vsel %vm4490_vm4, %v4882_v32, %v7155_v28 }
 0x2cd   : > { %5125 = vmatmul.f32.vlgmr.msra.gmra.mxu0 %v4779_v59  ;;  %v4911_v28 = vperm.slane %v4008_v3, %v6258_v0 }
 0x2ce   : > { %v7205_v46 = vpop.xlane.xlu2 %3764  ;;  %5214 = vmatpush.msrb.mxu1 %v4238_v52  ;;  %v4802_v51 = vsel %vm4514_vm10, %v4801_v24, %v4800_v4  ;;  %5202 = vmatpush.msrb.mxu0 %v4214_v48 }
 0x2cf   : > { %v7208_v63 = vpop.xlane.xlu1 %3722  ;;  %v4804_v1 = vsel %vm4518_vm11, %v4803_v54, %v4802_v51  ;;  %v4885_v54 = vsel %vm4494_vm5, %v4884_v47, %v4883_v13 }
 0x2d0   : > { %v3699_v41 = vpop.xlane.xlu0 %3698  ;;  %5215 = vmatpush.msrb.mxu1 %v4237_v44  ;;  %5203 = vmatpush.msrb.mxu0 %v4213_v21  ;;  %v3995_v42 = vmul.f32 0.00390625, %v7208_v63 }
 0x2d1   : > { %v3987_v12 = vmul.f32 0.00390625, %v3699_v41  ;;  %v4234_v41 = vld [vmem:[#allocation6 + $0x6b0] sm:$0xff] }
 0x2d2   : > { %5216 = vmatpush.msrb.mxu1 %v4236_v14  ;;  %5204 = vmatpush.msrb.mxu0 %v4212_v61  ;;  %v4886_v31 = vperm.slane %v3995_v42, %v6274_v19  ;;  %v4009_v14 = vmul.f32 0.00390625, %v7205_v46 }
 0x2d3   : > { %v4871_v58 = vperm.slane %v3987_v12, %v6333_v39  ;;  %v4806_v12 = vsel %vm4522_vm12, %v4805_v17, %v4804_v1 }
 0x2d4   : > { %5217 = vmatpush.msrb.mxu1 %v4235_v29  ;;  %v4887_v62 = vsel %vm4498_vm6, %v4886_v31, %v4885_v54  ;;  %v4913_v51 = vperm.slane %v4009_v14, %v6265_v6  ;;  %v5244_v54 = vld [vmem:[%s7402_s3 + $0x70] sm:$0xff] }
 0x2d5   : > { %v4872_v35 = vsel %vm4530_vm14, %v4871_v58, %v4870_v16  ;;  %v4232_v58 = vld [vmem:[#allocation6 + $0x6a0] sm:$0xff] }
 0x2d6   : > { %5185 = vmatmul.f32.vlgmr.msra.gmra.mxu3 %v4872_v35  ;;  %v7217_v55 = vpop.xlane.xlu2 %3767  ;;  %5218 = vmatpush.msrb.mxu1 %v4234_v41 }
 0x2d7   : > { %v7220_v20 = vpop.xlane.xlu1 %3725 }
 0x2d8   : > { %v3600_v23 = vpop.xlane.xlu0 %3599  ;;  %5219 = vmatpush.msrb.mxu1 %v4233_v25  ;;  %v3996_v26 = vmul.f32 0.00390625, %v7220_v20 }
 0x2d9   : > { %v3954_v2 = vmul.f32 0.00390625, %v3600_v23 }
 0x2da   : > { %5220 = vmatpush.msrb.mxu1 %v4232_v58  ;;  %v4888_v24 = vperm.slane %v3996_v26, %v6283_v27 }
 0x2db   : > { %v4807_v59 = vperm.slane %v3954_v2, %v6321_v22 }
 0x2dc   : > { %5221 = vmatpush.msrb.mxu1 %v4231_v45  ;;  %v4889_v46 = vsel %vm4502_vm7, %v4888_v24, %v4887_v62  ;;  %v5237_v62 = vld [vmem:[%s7402_s3 + $0x38] sm:$0xff] }
 0x2dd   : > { %v4808_v9 = vsel %vm4526_vm13, %v4807_v59, %v4806_v12 }
 0x2de   : > { %v7229_v34 = vpop.xlane.xlu2 %3770  ;;  %5222 = vmatpush.msrb.mxu1 %v4230_v38 }
 0x2df   : > { %v3729_v60 = vpop.xlane.xlu1 %3728  ;;  %v4011_v48 = vmul.f32 0.00390625, %v7229_v34  ;;  %v4912_v34 = vsel %vm4486_vm3, %v4911_v28, %v7175_v18  ;;  %v5234_v28 = vld [vmem:[%s7402_s3 + $0x20] sm:$0xff] }
 0x2e0   : > { %v3603_v8 = vpop.xlane.xlu0 %3602  ;;  %5223 = vmatpush.msrb.mxu1 %v4229_v43  ;;  %v3997_v44 = vmul.f32 0.00390625, %v3729_v60  ;;  %v4010_v60 = vmul.f32 0.00390625, %v7217_v55 }
 0x2e1   : > { %v3955_v30 = vmul.f32 0.00390625, %v3603_v8  ;;  %v4917_v6 = vperm.slane %v4011_v48, %v6274_v19  ;;  %v5232_v48 = vld [vmem:[%s7402_s3 + $0x10] sm:$0xff] }
 0x2e2   : > { %5224 = vmatpush.msrb.mxu1 %v4228_v15  ;;  %v4890_v63 = vperm.slane %v3997_v44, %v6290_v36  ;;  %v4915_v25 = vperm.slane %v4010_v60, %v6268_v10  ;;  %v5236_v60 = vld [vmem:[%s7402_s3 + $0x30] sm:$0xff] }
 0x2e3   : > { %v4809_v33 = vperm.slane %v3955_v30, %v6333_v39 }
 0x2e4   : > { %v4891_v30 = vsel %vm4506_vm8, %v4890_v63, %v4889_v46  ;;  %v5233_v46 = vld [vmem:[%s7402_s3 + $0x18] sm:$0xff] }
 0x2e5   : > { %v4810_v11 = vsel %vm4530_vm14, %v4809_v33, %v4808_v9  ;;  %v4914_v9 = vsel %vm4490_vm4, %v4913_v51, %v4912_v34  ;;  %v5231_v51 = vld [vmem:[%s7402_s3 + $0x8] sm:$0xff] }
 0x2e6   : > { %5145 = vmatmul.f32.vlgmr.msra.gmra.mxu1 %v4810_v11  ;;  %v3735_v16 = vpop.xlane.xlu2 %3734  ;;  %v4916_v18 = vsel %vm4494_vm5, %v4915_v25, %v4914_v9  ;;  %v5006_v25 = vpop.f32.mrf.mxu2  ;;  %v5273_v34 = vld [vmem:[#allocation11 + $0x28] sm:$0xff] }
 0x2e7   : > { %v3774_v37 = vpop.xlane.xlu1 %3773  ;;  %v3999_v20 = vmul.f32 0.00390625, %v3735_v16 }
 0x2e8   : > { %v3732_v35 = vpop.xlane.xlu0 %3731  ;;  %v4012_v41 = vmul.f32 0.00390625, %v3774_v37 }
 0x2e9   : > { %v3998_v2 = vmul.f32 0.00390625, %v3732_v35  ;;  %v4894_v1 = vperm.slane %v3999_v20, %v6302_v56 }
 0x2ea   : > { %v4919_v61 = vperm.slane %v4012_v41, %v6283_v27  ;;  %v4918_v27 = vsel %vm4498_vm6, %v4917_v6, %v4916_v18  ;;  %v4966_v41 = vpop.f32.mrf.mxu0  ;;  %v5026_v6 = vpop.f32.mrf.mxu3 }
 0x2eb   : > { %v4892_v17 = vperm.slane %v3998_v2, %v6295_v49 }
 0x2ed   : > { %v4893_v21 = vsel %vm4510_vm9, %v4892_v17, %v4891_v30  ;;  %v5241_v17 = vld [vmem:[%s7402_s3 + $0x58] sm:$0xff]  ;;  %v4244_v30 = vld [vmem:[#allocation8] sm:$0x1] }
 0x2ee   : > { %v3780_v23 = vpop.xlane.xlu2 %3779  ;;  %v4895_v11 = vsel %vm4514_vm10, %v4894_v1, %v4893_v21  ;;  %v5230_v1 = vld [vmem:[%s7402_s3] sm:$0xff]  ;;  %v4986_v21 = vpop.f32.mrf.mxu1 }
 0x2ef   : > { %v3738_v50 = vpop.xlane.xlu1 %3737  ;;  %v4014_v58 = vmul.f32 0.00390625, %v3780_v23  ;;  %v4920_v23 = vsel %vm4502_vm7, %v4919_v61, %v4918_v27  ;;  %v5272_v61 = vld [vmem:[#allocation11 + $0x20] sm:$0xff] }
 0x2f0   : > { %v3777_v52 = vpop.xlane.xlu0 %3776  ;;  %v4000_v29 = vmul.f32 0.00390625, %v3738_v50 }
 0x2f1   : > { %v4013_v33 = vmul.f32 0.00390625, %v3777_v52  ;;  %v4923_v57 = vperm.slane %v4014_v58, %v6295_v49 }
 0x2f2   : > { %v4896_v12 = vperm.slane %v4000_v29, %v6312_v5  ;;  %v5240_v29 = vld [vmem:[%s7402_s3 + $0x50] sm:$0xff] }
 0x2f3   : > { %v4921_v16 = vperm.slane %v4013_v33, %v6290_v36  ;;  %v5275_v33 = vld [vmem:[#allocation11 + $0x38] sm:$0xff] }
 0x2f4   : > { %v4897_v45 = vsel %vm4518_vm11, %v4896_v12, %v4895_v11  ;;  %v4967_v12 = vadd.f32 %v4966_v41, %v4244_v30  ;;  %5289 = vmatpush.msrb.mxu3 %v5275_v33  ;;  %v5046_v11 = vpop.f32.mrf.mxu0 }
 0x2f5   : > { %v4922_v50 = vsel %vm4506_vm8, %v4921_v16, %v4920_v23 }
 0x2f6   : > { %v3744_v40 = vpop.xlane.xlu2 %3743  ;;  %v4924_v47 = vsel %vm4510_vm9, %v4923_v57, %v4922_v50  ;;  %v5066_v16 = vpop.f32.mrf.mxu1 }
 0x2f7   : > { %v3783_v4 = vpop.xlane.xlu1 %3782  ;;  %v4002_v55 = vmul.f32 0.00390625, %v3744_v40 }
 0x2f8   : > { %v3741_v59 = vpop.xlane.xlu0 %3740  ;;  %v4015_v37 = vmul.f32 0.00390625, %v3783_v4  ;;  %v5239_v4 = vld [vmem:[%s7402_s3 + $0x48] sm:$0xff] }
 0x2f9   : > { %v4001_v8 = vmul.f32 0.00390625, %v3741_v59  ;;  %v4900_v10 = vperm.slane %v4002_v55, %v6321_v22  ;;  %v5238_v59 = vld [vmem:[%s7402_s3 + $0x40] sm:$0xff]  ;;  %v5274_v55 = vld [vmem:[#allocation11 + $0x30] sm:$0xff] }
 0x2fa   : > { %v4925_v52 = vperm.slane %v4015_v37, %v6302_v56  ;;  %5290 = vmatpush.msrb.mxu3 %v5274_v55 }
 0x2fb   : > { %v4898_v0 = vperm.slane %v4001_v8, %v6315_v7  ;;  %v5235_v8 = vld [vmem:[%s7402_s3 + $0x28] sm:$0xff] }
 0x2fc   : > { %v4926_v2 = vsel %vm4514_vm10, %v4925_v52, %v4924_v47  ;;  %5291 = vmatpush.msrb.mxu3 %v5273_v34  ;;  %v5269_v47 = vld [vmem:[#allocation11 + $0x8] sm:$0xff] }
 0x2fd   : > { %v4899_v19 = vsel %vm4522_vm12, %v4898_v0, %v4897_v45  ;;  %v4987_v0 = vadd.f32 %v4986_v21, %v4967_v12  ;;  %v5271_v45 = vld [vmem:[#allocation11 + $0x18] sm:$0xff] }
 0x2fe   : > { %v3789_v53 = vpop.xlane.xlu2 %3788  ;;  %v4901_v26 = vsel %vm4526_vm13, %v4900_v10, %v4899_v19  ;;  %5292 = vmatpush.msrb.mxu3 %v5272_v61  ;;  %v5086_v10 = vpop.f32.mrf.mxu2 }
 0x2ff   : > { %v3747_v35 = vpop.xlane.xlu1 %3746  ;;  %v4017_v42 = vmul.f32 0.00390625, %v3789_v53  ;;  %v5007_v9 = vadd.f32 %v5006_v25, %v4987_v0 }
 0x300   : > { %v3786_v38 = vpop.xlane.xlu0 %3785  ;;  %v4003_v43 = vmul.f32 0.00390625, %v3747_v35  ;;  %5293 = vmatpush.msrb.mxu3 %v5271_v45 }
 0x301   : > { %v4016_v15 = vmul.f32 0.00390625, %v3786_v38  ;;  %v4929_v49 = vperm.slane %v4017_v42, %v6315_v7  ;;  %v5245_v7 = vld [vmem:[%s7402_s3 + $0x78] sm:$0xff]  ;;  %v5027_v58 = vadd.f32 %v5026_v6, %v5007_v9  ;;  %v5106_v38 = vpop.f32.mrf.mxu3 }
 0x302   : > { %v4902_v36 = vperm.slane %v4003_v43, %v6333_v39  ;;  %5247 = vmatpush.msrb.mxu2 %v5245_v7 }
 0x303   : > { %v4927_v32 = vperm.slane %v4016_v15, %v6312_v5  ;;  %v5047_v37 = vadd.f32 %v5046_v11, %v5027_v58 }
 0x304   : > { %v4903_v44 = vsel %vm4530_vm14, %v4902_v36, %v4901_v26  ;;  %5248 = vmatpush.msrb.mxu2 %v5244_v54 }
 0x305   : > { %5205 = vmatmul.f32.vlgmr.msrb.gmra.mxu0 %v4903_v44  ;;  %v4928_v24 = vsel %vm4518_vm11, %v4927_v32, %v4926_v2  ;;  %v5067_v35 = vadd.f32 %v5066_v16, %v5047_v37  ;;  %v5270_v44 = vld [vmem:[#allocation11 + $0x10] sm:$0xff]  ;;  %v5268_v2 = vld [vmem:[#allocation11] sm:$0xff] }
 0x306   : > { %v4930_v5 = vsel %vm4522_vm12, %v4929_v49, %v4928_v24  ;;  %5294 = vmatpush.msrb.mxu3 %v5270_v44  ;;  %v5246_v49 = vld [vmem:[#allocation9] sm:$0x1] }
 0x307   : > { %v3795_v3 = vpop.xlane.xlu1 %3794  ;;  %v5087_v18 = vadd.f32 %v5086_v10, %v5067_v35 }
 0x308   : > { %v3792_v31 = vpop.xlane.xlu0 %3791  ;;  %v4019_v56 = vmul.f32 0.00390625, %v3795_v3  ;;  %5295 = vmatpush.msrb.mxu3 %v5269_v47 }
 0x309   : > { %v4018_v13 = vmul.f32 0.00390625, %v3792_v31  ;;  %v5107_v43 = vadd.f32 %v5106_v38, %v5087_v18 }
 0x30a   : > { %v4933_v63 = vperm.slane %v4019_v56, %v6333_v39  ;;  %v5242_v39 = vld [vmem:[%s7402_s3 + $0x60] sm:$0xff]  ;;  %5296 = vmatpush.msrb.mxu3 %v5268_v2 }
 0x30b   : > { %v4931_v14 = vperm.slane %v4018_v13, %v6321_v22  ;;  %v5243_v22 = vld [vmem:[%s7402_s3 + $0x68] sm:$0xff] }
 0x30c   : > { %5249 = vmatpush.msrb.mxu2 %v5243_v22 }
 0x30d   : > { %v4932_v20 = vsel %vm4526_vm13, %v4931_v14, %v4930_v5 }
 0x30e   : > { %v4934_v40 = vsel %vm4530_vm14, %v4933_v63, %v4932_v20  ;;  %5250 = vmatpush.msrb.mxu2 %v5242_v39 }
 0x30f   : > { %5225 = vmatmul.f32.vlgmr.msrb.gmra.mxu1 %v4934_v40 }
 0x310   : > { %5251 = vmatpush.msrb.mxu2 %v5241_v17 }
 0x312   : > { %5252 = vmatpush.msrb.mxu2 %v5240_v29 }
 0x314   : > { %5253 = vmatpush.msrb.mxu2 %v5239_v4 }
 0x316   : > { %5254 = vmatpush.msrb.mxu2 %v5238_v59 }
 0x318   : > { %5255 = vmatpush.msrb.mxu2 %v5237_v62 }
 0x31a   : > { %5256 = vmatpush.msrb.mxu2 %v5236_v60 }
 0x31c   : > { %5257 = vmatpush.msrb.mxu2 %v5235_v8 }
 0x31e   : > { %5258 = vmatpush.msrb.mxu2 %v5234_v28 }
 0x320   : > { %5259 = vmatpush.msrb.mxu2 %v5233_v46 }
 0x322   : > { %5260 = vmatpush.msrb.mxu2 %v5232_v48 }
 0x324   : > { %5261 = vmatpush.msrb.mxu2 %v5231_v51 }
 0x326   : > { %5262 = vmatpush.msrb.mxu2 %v5230_v1 }
 0x338   : > { %v5166_v23 = vpop.f32.mrf.mxu2 }
 0x34a   : > { %v5126_v19 = vpop.f32.mrf.mxu0 }
 0x34b   : > { %v5127_v53 = vadd.f32 %v5126_v19, %v5107_v43 }
 0x359   : > { %v5186_v36 = vpop.f32.mrf.mxu3 }
 0x363   : > { %v5146_v15 = vpop.f32.mrf.mxu1 }
 0x364   : > { %v5147_v27 = vadd.f32 %v5146_v15, %v5127_v53 }
 0x366   : > { %v5167_v57 = vadd.f32 %v5166_v23, %v5147_v27 }
 0x368   : > { %v5187_v52 = vadd.f32 %v5186_v36, %v5167_v57 }
 0x382   : > { %v5206_v50 = vpop.f32.mrf.mxu0 }
 0x383   : > { %v5207_v42 = vadd.f32 %v5206_v50, %v5187_v52 }
 0x38c   : > { %v5226_v26 = vpop.f32.mrf.mxu1 }
 0x38d   : > { %v5227_v32 = vadd.f32 %v5226_v26, %v5207_v42 }
 0x38f   : > { %5229 = vst [vmem:[%s421_s5] sm:$0x1] %v5227_v32  ;;  %5263 = vmatmul.f32.vlgmr.msrb.gmra.mxu2 %v5227_v32 }
 0x412   : > { %v5264_v31 = vpop.f32.mrf.mxu2 }
 0x413   : > { %v5265_v3 = vadd.f32 %v5264_v31, %v5246_v49 }
 0x415   : > { %v5267_v24 = vmax.f32 %v5265_v3, 0.0 }
 0x417   : > { %5501 = vmatmul.msk.f32.vlgmr.msrb.gmra.mxu3 %vm5277_vm15, %v5267_v24 }
 0x418   : > { %5836 = shalt.err (!%p5833_p13)
}
 0x419   : > { %5529 = dma.vmem_to_hbm [thread:$0]  (%p6092_p4), %s5318_s25, 16, %s5320_s13, %s5303_s14   ;;  %v5276_v13 = vld [vmem:[#allocation12] sm:$0x1] }
 0x41a   : > { %s5328_s12 = scalar_lea.hbm %s7407_s8, %s5927_s30  ;;  %s427_s16 = scalar_lea.vmem [#allocation15], %s6114_s23 }
 0x41b   : > { %s5330_s19 = sshll.u32 %s427_s16, 4  ;;  %s5332_s20 = sshll.u32 %s5328_s12, 4  ;;  %s5331_s19 = int_to_ptr.vmem [resolvable:$true] %s5330_s19  ;;  %s5333_s20 = int_to_ptr.hbm [resolvable:$true] %s5332_s20 }
 0x41c   : > { %s5307_s24 = scalar_lea.sflag [#allocation16], %s6114_s23  ;;  %s5851_s21 = sshra.s32 %s5333_s20, 4  ;;  %s5852_s21 = int_to_ptr.hbm [resolvable:$true] %s5851_s21 }
 0x41d   : > { %s5853_s1 = scalar_lea.hbm %s5852_s21, 1  ;;  %s5857_s30 = scalar_lea.hbm %s7407_s8, 2 }
 0x41e   : > { %p5854_p0 = scmp.ne.s32.totalorder %s5852_s21, %s5853_s1  ;;  %p5858_p9 = scmp.lt.s32.totalorder %s5852_s21, %s7407_s8 }
 0x41f   : > { %p5859_p1 = scmp.lt.s32.totalorder %s5857_s30, %s5853_s1 }
 0x420   : > { %p5855_p2 = pnand %p5854_p0, %p6092_p4 }
 0x421   : > { %p5860_p3 = por %p5859_p1, %p5858_p9 }
 0x422   : > { %p5856_p5 = pneg %p5855_p2 }
 0x424   : > { %p5861_p8 = pnand %p5860_p3, %p5856_p5 }
 0x49a   : > { %v5298_v56 = vpop.f32.mrf.mxu3 }
 0x49b   : > { %v5299_v14 = vadd.f32 %v5298_v56, %v5276_v13 }
 0x49d   : > { %5301 = vst [vmem:[%s427_s16] sm:$0x1] %v5299_v14 }
 0x49e   : > { %5864 = shalt.err (!%p5861_p8)
}
 0x49f   : > { %5530 = dma.vmem_to_hbm [thread:$0]  (%p6092_p4), %s5331_s19, 16, %s5333_s20, %s5307_s24  }
 0x4a0 PF: > { %s5344_s23 = sand.u32 1, %s5915_s27   ;;  %p5554_p10 = pnand %p5493_p6, %p6100_p7 }
 0x4a1   : > { %s5345_s11 = scalar_lea.sflag [#allocation5], %s5344_s23 }
 0x4a2   : > { %p5555_p11 = pneg %p5554_p10 }
 0x4a4   : > { %5906 = dma.done.wait (%p5555_p11), %s5345_s11, 16  }
 0x4a5   : > { %5908 = vsyncadd (%p5555_p11), %s5345_s11, 4294967280  ;;  %s5354_s2 = scalar_lea.sflag [#allocation16], %s5344_s23 }
 0x4a6   : > { %5910 = dma.done.wait (%p5555_p11), %s5354_s2, 16  }
 0x4a7   : > { %5912 = vsyncadd (%p5555_p11), %s5354_s2, 4294967280  ;;  %s31_s10 = sadd.s32 1, %s5935_s10   ;;  %s7425_s27 = smov %s5919_s28 }
 0x4a8   : > { %p28_p12 = scmp.ge.s32.totalorder %s31_s10, 4   ;;  %s7426_s28 = smov %s5923_s29 }
 0x4a9   : > { %s7427_s29 = smov %s6098_s18  ;;  %s7428_s30 = smov %s5931_s9 }
 0x4aa   : > { %s7429_s9 = smov %s7431_s17  ;;  %30 = sbr.rel (!%p28_p12) target bundleno = 16 (0x10), region = 138 }
 0x4af   :  { %5359 = vsyncpa [#allocation4], 1 }
 0x4b0   :  { %5361 = vsyncpa [#allocation4 + $0x1], 1 }
 0x4b1   :  { %5362 = vsyncpa [#allocation7], 1 }
 0x4b2   :  { %5363 = vsyncpa [#allocation10], 1 }
 0x4b3   :  { %5364 = vsyncpa [#allocation13], 1 }
 0x4b4   :  { %5365 = vsyncpa [#allocation5], 1 }
 0x4b5   :  { %5367 = vsyncpa [#allocation5 + $0x1], 1 }
 0x4b6   :  { %5368 = vsyncpa [#allocation16], 1 }
 0x4b7   :  { %5370 = vsyncpa [#allocation16 + $0x1], 1 }

</bundles_post_ra>
